<compile_context>
chip_gen: v5e
topology: v5e:2x2
jax: 0.10.0
libtpu: 0.0.40
codegen_flags: <defaults>
</compile_context>

<pallas_src>
import math

import jax
import jax.numpy as jnp
from jax import lax
from jax.experimental import pallas as pl
from jax.experimental.pallas import tpu as pltpu

EPSILON = 1e-6


# ----------------------------- fused forward kernel -----------------------------

def _make_fused_kernel(*, BB, N, E, D, num_heads, F, node_dim,
                       layout, n_num, n_gcn, n_fc):
    head_dim = D // num_heads
    scale = 1.0 / math.sqrt(head_dim)
    BBN, BBE = BB * N, BB * E
    node_base = n_num
    gcn_base = n_num + 1
    att_base = gcn_base + n_gcn * n_fc          # q, k, v, out (folded)

    def kernel(misc_ref, nodes_ref, meta_ref, w_ref, b_ref,
               out_lu_ref, out_road_ref, out_val_ref):

        def dense(x, li, act=False):
            # static views into the packed weight / bias slabs (zero-cost slices)
            r0, rin, rout = layout[li]
            w = w_ref[pl.ds(r0, rin), pl.ds(0, rout)]          # bf16
            b = b_ref[pl.ds(8 * li, 1), pl.ds(0, rout)]        # f32
            y = jnp.dot(x.astype(jnp.bfloat16), w,
                        preferred_element_type=jnp.float32) + b
            return jnp.tanh(y) if act else y

        # ---- packed small inputs: numerical features | current node features ----
        misc = misc_ref[...][:, 0, :]                          # (BB, F + node_dim)
        h_num = misc[:, :F]
        cur_feat = misc[:, F:]

        # ---- numerical feature encoder (Flatten done in wrapper) ----------------
        for i in range(n_num):
            h_num = dense(h_num, i, act=True)                  # (BB, H_i)

        # ---- node encoder (nodes + current node share the same weights) ---------
        nodes = nodes_ref[...].reshape(BBN, node_dim)
        h_nodes = dense(nodes, node_base)                      # (BB*N, D)
        h_cur = dense(cur_feat, node_base)                     # (BB, D)

        # ---- packed graph metadata ----------------------------------------------
        meta = meta_ref[...]                                   # (BB, M, 4) f32
        e0 = meta[:, :E, 0:1].astype(jnp.int32)                # (BB, E, 1)
        e1 = meta[:, :E, 1:2].astype(jnp.int32)
        em = meta[:, :E, 2:3].reshape(BBE, 1)                  # (BB*E, 1)
        nm = meta[:, :N, 3:4].reshape(BBN, 1)                  # (BB*N, 1)

        # block-diagonal one-hot gather/scatter operators (MXU friendly)
        samp = lax.broadcasted_iota(jnp.int32, (BB, E, 1), 0) * N
        g0 = (e0 + samp).reshape(BBE, 1)
        g1 = (e1 + samp).reshape(BBE, 1)
        iota_n = lax.broadcasted_iota(jnp.int32, (BBE, BBN), 1)
        oh0 = (g0 == iota_n).astype(jnp.float32)               # (BB*E, BB*N)
        oh1 = (g1 == iota_n).astype(jnp.float32)
        oh_sum = oh0 + oh1
        # per-node incident valid-edge count -- loop invariant, hoisted
        cnt = lax.dot_general(oh_sum, em, (((0,), (0,)), ((), ())),
                              preferred_element_type=jnp.float32)   # (BB*N, 1)

        # ---- GCN message passing (all layers in-kernel, h_nodes stays resident) -
        h_edges = None
        for l in range(n_gcn):
            h_e1 = jnp.dot(oh0, h_nodes, preferred_element_type=jnp.float32)
            h_e2 = jnp.dot(oh1, h_nodes, preferred_element_type=jnp.float32)
            # row-stack first (cheap sublane concat), then a single lane concat
            # builds both edge orderings for one pass through the edge MLP.
            he_a = jnp.concatenate([h_e1, h_e2], axis=0)       # (2*BB*E, D)
            he_b = jnp.concatenate([h_e2, h_e1], axis=0)
            h = jnp.concatenate([he_a, he_b], axis=-1)         # (2*BB*E, 2D)
            for f in range(n_fc):
                h = dense(h, gcn_base + l * n_fc + f, act=True)
            h_edges = (h[:BBE] + h[BBE:]) * 0.5
            h_edges = h_edges * em                             # zero padded edges
            agg = lax.dot_general(oh_sum, h_edges, (((0,), (0,)), ((), ())),
                                  preferred_element_type=jnp.float32)  # (BB*N, D)
            h_nodes = h_nodes + agg / (cnt + EPSILON)

        # ---- masked means (exact division, per sample) ---------------------------
        em_sum = jnp.sum(em.reshape(BB, E, 1), axis=1)                   # (BB, 1)
        nm_sum = jnp.sum(nm.reshape(BB, N, 1), axis=1)
        h_edges_mean = jnp.sum(h_edges.reshape(BB, E, D), axis=1) / em_sum
        h_nodes_mean = jnp.sum((h_nodes * nm).reshape(BB, N, D), axis=1) / nm_sum

        # ---- multi-head self-attention: current node over all nodes --------------
        q = dense(h_cur, att_base + 0)                         # (BB, D)
        k = dense(h_nodes, att_base + 1)                       # (BB*N, D)
        v = dense(h_nodes, att_base + 2)
        d_idx = lax.broadcasted_iota(jnp.int32, (D, num_heads), 0)
        h_idx = lax.broadcasted_iota(jnp.int32, (D, num_heads), 1)
        Gh = ((d_idx >= h_idx * head_dim) &
              (d_idx < (h_idx + 1) * head_dim)).astype(jnp.float32)   # (D, H)
        kq = (k.reshape(BB, N, D) * q[:, None, :]).reshape(BBN, D)
        scores = jnp.dot(kq, Gh, preferred_element_type=jnp.float32) * scale
        scores = jnp.where(nm > 0.5, scores, jnp.float32(-1e30))      # key padding
        # TODO(synk): a fully-masked sample attends uniformly over padded nodes
        #             instead of producing NaN like torch.nn.MultiheadAttention.
        s3 = scores.reshape(BB, N, num_heads)
        m = jnp.max(s3, axis=1, keepdims=True)
        p3 = jnp.exp(s3 - m)
        p3 = p3 / jnp.sum(p3, axis=1, keepdims=True)           # exact softmax denom
        p_full = lax.dot_general(p3.reshape(BBN, num_heads), Gh,
                                 (((1,), (1,)), ((), ())),
                                 preferred_element_type=jnp.float32)   # (BB*N, D)
        attn = jnp.sum((p_full * v).reshape(BB, N, D), axis=1)         # (BB, D)
        h_att = dense(attn, att_base + 3)

        # ---- outputs (lane-dense slabs; stage concatenated in the wrapper) -------
        out_val_ref[0] = jnp.concatenate(
            [h_num, h_nodes_mean, h_edges_mean, h_att], axis=-1)       # (BB, 128)
        rep = jnp.broadcast_to(h_cur[:, None, :], (BB, E, D)).reshape(BBE, D)
        out_lu_ref[0] = jnp.concatenate(
            [h_edges, rep, h_edges * rep, h_edges - rep], axis=-1)     # (BB*E, 4D)
        # TODO(synk): repack h_nodes into a 128-lane-wide slab before the store once
        #             Mosaic's (BB*N, D)->(BB*N*D/128, 128) reshape is verified.
        out_road_ref[0] = h_nodes

    return kernel


# ----------------------------- parameter construction -----------------------------

class ParamGen:
    def __init__(self, key):
        self.key = key

    def dense(self, fan_in, fan_out):
        self.key, k1, k2 = jax.random.split(self.key, 3)
        w = 0.1 * jax.random.normal(k1, (fan_in, fan_out), jnp.float32)
        b = 0.02 * jax.random.normal(k2, (1, fan_out), jnp.float32)
        return w, b


def init_params(key, cfg, node_dim, numerical_feature_size):
    D = cfg["gcn_node_dim"]
    gen = ParamGen(key)
    params = {}

    hidden = cfg["state_encoder_hidden_size"]
    num_enc, prev = [], numerical_feature_size
    for h in hidden:
        num_enc.append(gen.dense(prev, h))
        prev = h
    params["numerical_encoder"] = num_enc

    params["node_encoder_w"], params["node_encoder_b"] = gen.dense(node_dim, D)

    edge_layers = []
    for _ in range(cfg["num_gcn_layers"]):
        fcs, prev = [], 2 * D
        for _ in range(cfg["num_edge_fc_layers"]):
            fcs.append(gen.dense(prev, D))
            prev = D
        edge_layers.append(fcs)
    params["edge_fc_layers"] = edge_layers

    attn = {}
    attn["wq"], attn["bq"] = gen.dense(D, D)
    attn["wk"], attn["bk"] = gen.dense(D, D)
    attn["wv"], attn["bv"] = gen.dense(D, D)
    attn["wqi"], attn["bqi"] = gen.dense(D, D)
    attn["wki"], attn["bki"] = gen.dense(D, D)
    attn["wvi"], attn["bvi"] = gen.dense(D, D)
    attn["wo"], attn["bo"] = gen.dense(D, D)
    params["attention"] = attn
    return params


def pack_weights(params):
    """Fold the doubled attention projections and pack everything into two slabs."""
    a = params["attention"]
    mats = []
    for (w, b) in params["numerical_encoder"]:
        mats.append((w, b))
    mats.append((params["node_encoder_w"], params["node_encoder_b"]))
    for fcs in params["edge_fc_layers"]:
        for (w, b) in fcs:
            mats.append((w, b))
    # (x@Wq + bq)@Wqi + bqi == x@(Wq@Wqi) + (bq@Wqi + bqi) -- exact fold.
    mats.append((a["wq"] @ a["wqi"], a["bq"] @ a["wqi"] + a["bqi"]))
    mats.append((a["wk"] @ a["wki"], a["bk"] @ a["wki"] + a["bki"]))
    mats.append((a["wv"] @ a["wvi"], a["bv"] @ a["wvi"] + a["bvi"]))
    mats.append((a["wo"], a["bo"]))

    wmax = max(int(w.shape[1]) for w, _ in mats)
    layout, w_blocks, b_blocks, row = [], [], [], 0
    for w, b in mats:
        rin, rout = int(w.shape[0]), int(w.shape[1])
        rpad = -(-rin // 16) * 16            # bf16 sublane-tile aligned offsets
        wp = jnp.zeros((rpad, wmax), jnp.float32).at[:rin, :rout].set(w)
        bp = jnp.zeros((8, wmax), jnp.float32).at[0:1, :rout].set(b)
        w_blocks.append(wp)
        b_blocks.append(bp)
        layout.append((row, rin, rout))
        row += rpad
    w_slab = jnp.concatenate(w_blocks, axis=0).astype(jnp.bfloat16)
    b_slab = jnp.concatenate(b_blocks, axis=0)
    return w_slab, b_slab, tuple(layout)


# ----------------------------- full forward -----------------------------

def sgnn_state_encoder_forward(params, cfg, inputs):
    (numerical_features, node_features, edge_index, current_node_features,
     node_mask, edge_mask, land_use_mask, road_mask, stage) = inputs

    B, N, node_dim = node_features.shape
    E = edge_index.shape[1]
    D = cfg["gcn_node_dim"]
    H_last = cfg["state_encoder_hidden_size"][-1]
    heads = cfg["num_attention_heads"]
    VAL = H_last + 3 * D
    F = numerical_features.reshape(B, -1).shape[-1]

    # ---- batch-block size: push BB*N toward 128 lanes, keep >= 2 grid steps ----
    BB = max(1, min(B, 128 // max(1, N)))
    if B > 1 and B <= BB:
        BB = max(1, (B + 1) // 2)            # >= 2 grid steps so v7x's 2 TCs shard
    G = -(-B // BB)
    Bp = G * BB

    def bpad(x):
        if Bp == B:
            return x
        return jnp.pad(x, [(0, Bp - B)] + [(0, 0)] * (x.ndim - 1))

    # ---- pack data into a few lane-dense slabs (few DMA descriptors) -----------
    num_flat = numerical_features.reshape(B, 1, F).astype(jnp.float32)
    misc = jnp.concatenate(
        [num_flat, current_node_features.astype(jnp.float32)[:, None, :]],
        axis=-1)                                               # (B, 1, F + node_dim)
    nodes = node_features.astype(jnp.float32)                  # (B, N, node_dim)
    M = max(E, N)
    meta = jnp.zeros((B, M, 4), jnp.float32)
    meta = meta.at[:, :E, 0].set(edge_index[:, :, 0].astype(jnp.float32))
    meta = meta.at[:, :E, 1].set(edge_index[:, :, 1].astype(jnp.float32))
    meta = meta.at[:, :E, 2].set(edge_mask.astype(jnp.float32))
    meta = meta.at[:, :N, 3].set(node_mask.astype(jnp.float32))
    misc, nodes, meta = bpad(misc), bpad(nodes), bpad(meta)

    # ---- pack weights into two slabs (bf16 weights, f32 biases) ----------------
    w_slab, b_slab, layout = pack_weights(params)

    kernel = _make_fused_kernel(
        BB=BB, N=N, E=E, D=D, num_heads=heads, F=F, node_dim=node_dim,
        layout=layout, n_num=len(params["numerical_encoder"]),
        n_gcn=cfg["num_gcn_layers"], n_fc=cfg["num_edge_fc_layers"])

    lu, road, val = pl.pallas_call(
        kernel,
        out_shape=(jax.ShapeDtypeStruct((G, BB * E, 4 * D), jnp.float32),
                   jax.ShapeDtypeStruct((G, BB * N, D), jnp.float32),
                   jax.ShapeDtypeStruct((G, BB, VAL), jnp.float32)),
        grid=(G,),
        in_specs=[
            pl.BlockSpec((BB, 1, F + node_dim), lambda g: (g, 0, 0)),
            pl.BlockSpec((BB, N, node_dim), lambda g: (g, 0, 0)),
            pl.BlockSpec((BB, M, 4), lambda g: (g, 0, 0)),
            pl.BlockSpec(w_slab.shape, lambda g: (0, 0)),
            pl.BlockSpec(b_slab.shape, lambda g: (0, 0)),
        ],
        out_specs=(pl.BlockSpec((1, BB * E, 4 * D), lambda g: (g, 0, 0)),
                   pl.BlockSpec((1, BB * N, D), lambda g: (g, 0, 0)),
                   pl.BlockSpec((1, BB, VAL), lambda g: (g, 0, 0))),
        # "parallel" only buys speed on v7x (2 TCs); harmless no-op on v5e/v6e.
        compiler_params=pltpu.CompilerParams(
            dimension_semantics=("parallel",)),
    )(misc, nodes, meta, w_slab, b_slab)

    state_policy_land_use = lu.reshape(Bp, E, 4 * D)[:B]
    state_policy_road = road.reshape(Bp, N, D)[:B]
    state_value = jnp.concatenate(
        [val.reshape(Bp, VAL)[:B], stage.astype(jnp.float32)], axis=-1)

    return (state_policy_land_use, state_policy_road, state_value,
            land_use_mask, road_mask, stage)


# ----------------------------- main -----------------------------

if __name__ == "__main__":
    cfg = {
        "gcn_node_dim": 32,
        "num_gcn_layers": 2,
        "num_edge_fc_layers": 2,
        "max_num_nodes": 16,
        "max_num_edges": 32,
        "num_attention_heads": 4,
        "state_encoder_hidden_size": [32, 32],
    }
    B = 8
    N = cfg["max_num_nodes"]
    E = cfg["max_num_edges"]
    node_dim = 8
    numerical_feature_size = 16   # = 4 * 4 after Flatten

    key = jax.random.PRNGKey(0)
    kk = jax.random.split(key, 8)

    numerical_features = jax.random.normal(kk[0], (B, 4, 4), jnp.float32)
    node_features = jax.random.normal(kk[1], (B, N, node_dim), jnp.float32)
    current_node_features = jax.random.normal(kk[2], (B, node_dim), jnp.float32)

    num_valid_nodes = 12
    num_valid_edges = 24
    edge_index = jax.random.randint(kk[3], (B, E, 2), 0, num_valid_nodes, jnp.int32)

    node_mask = (jnp.arange(N)[None, :] < num_valid_nodes).astype(jnp.bool_)
    node_mask = jnp.broadcast_to(node_mask, (B, N))
    edge_mask = (jnp.arange(E)[None, :] < num_valid_edges).astype(jnp.bool_)
    edge_mask = jnp.broadcast_to(edge_mask, (B, E))
    # padded edge indices set to 0 (valid index, contributions are masked out)
    edge_index = jnp.where(edge_mask[:, :, None], edge_index, 0)

    land_use_mask = jax.random.bernoulli(kk[4], 0.5, (B, E))
    road_mask = jax.random.bernoulli(kk[5], 0.5, (B, N))
    stage = jax.nn.one_hot(jax.random.randint(kk[6], (B,), 0, 3), 3, dtype=jnp.float32)

    params = init_params(jax.random.PRNGKey(42), cfg, node_dim, numerical_feature_size)

    inputs = (numerical_features, node_features, edge_index, current_node_features,
              node_mask, edge_mask, land_use_mask, road_mask, stage)

    outs = sgnn_state_encoder_forward(params, cfg, inputs)
    outs = jax.block_until_ready(outs)

    state_policy_land_use, state_policy_road, state_value, lm, rm, st = outs
    D = cfg["gcn_node_dim"]
    assert state_policy_land_use.shape == (B, E, 4 * D)
    assert state_policy_road.shape == (B, N, D)
    assert state_value.shape == (B, cfg["state_encoder_hidden_size"][-1] + 3 * D + 3)
    assert bool(jnp.all(jnp.isfinite(state_value)))
    assert bool(jnp.all(jnp.isfinite(state_policy_land_use)))
    assert bool(jnp.all(jnp.isfinite(state_policy_road)))
    print("KERNEL_OK")
</pallas_src>

<mosaic_0001>
module attributes {stable_mosaic.version = 11 : i64} {
  func.func @kernel(%arg0: i32, %arg1: memref<4x1x24xf32, #tpu.memory_space<vmem>>, %arg2: memref<4x16x8xf32, #tpu.memory_space<vmem>>, %arg3: memref<4x32x4xf32, #tpu.memory_space<vmem>>, %arg4: memref<384x32xbf16, #tpu.memory_space<vmem>>, %arg5: memref<88x32xf32, #tpu.memory_space<vmem>>, %arg6: memref<1x128x128xf32, #tpu.memory_space<vmem>>, %arg7: memref<1x64x32xf32, #tpu.memory_space<vmem>>, %arg8: memref<1x4x128xf32, #tpu.memory_space<vmem>>) attributes {dimension_semantics = [#tpu.dimension_semantics<parallel>], iteration_bounds = array<i64: 2>, scalar_prefetch = 0 : i64, scratch_operands = 0 : i64, tpu.core_type = #tpu.core_type<tc>, window_params = [{transform_indices = @transform_0, window_bounds = array<i64: 4, 1, 24>}, {transform_indices = @transform_1, window_bounds = array<i64: 4, 16, 8>}, {transform_indices = @transform_2, window_bounds = array<i64: 4, 32, 4>}, {pipeline_mode = #tpu.pipeline_mode<synchronous>, transform_indices = @transform_3, window_bounds = array<i64: 384, 32>}, {pipeline_mode = #tpu.pipeline_mode<synchronous>, transform_indices = @transform_4, window_bounds = array<i64: 88, 32>}, {transform_indices = @transform_5, window_bounds = array<i64: 1, 128, 128>}, {transform_indices = @transform_6, window_bounds = array<i64: 1, 64, 32>}, {transform_indices = @transform_7, window_bounds = array<i64: 1, 4, 128>}]} {
    %c0 = arith.constant 0 : index
    %c0_0 = arith.constant 0 : index
    %c0_1 = arith.constant 0 : index
    %0 = vector.load %arg1[%c0, %c0_0, %c0_1] : memref<4x1x24xf32, #tpu.memory_space<vmem>>, vector<4x1x24xf32>
    %1 = vector.shape_cast %0 : vector<4x1x24xf32> to vector<4x24xf32>
    %2 = vector.extract_strided_slice %1 {offsets = [0, 0], sizes = [4, 16], strides = [1, 1]} : vector<4x24xf32> to vector<4x16xf32>
    %3 = vector.extract_strided_slice %1 {offsets = [0, 16], sizes = [4, 8], strides = [1, 1]} : vector<4x24xf32> to vector<4x8xf32>
    %c0_2 = arith.constant 0 : index
    %c0_3 = arith.constant 0 : index
    %4 = vector.load %arg4[%c0_2, %c0_3] : memref<384x32xbf16, #tpu.memory_space<vmem>>, vector<16x32xbf16>
    %c0_4 = arith.constant 0 : index
    %c0_5 = arith.constant 0 : index
    %5 = vector.load %arg5[%c0_4, %c0_5] : memref<88x32xf32, #tpu.memory_space<vmem>>, vector<1x32xf32>
    %6 = arith.truncf %2 : vector<4x16xf32> to vector<4x16xbf16>
    %cst = arith.constant dense<0.000000e+00> : vector<4x32xf32>
    %7 = tpu.matmul %6, %4, %cst {dimension_numbers = #tpu.dot_dimension_numbers<[1], [0], [0], [1], [0, 0, 1, 1], [], []>} : vector<4x16xbf16>, vector<16x32xbf16>, vector<4x32xf32> -> vector<4x32xf32>
    %8 = vector.broadcast %5 : vector<1x32xf32> to vector<4x32xf32>
    %9 = arith.addf %7, %8 : vector<4x32xf32>
    %10 = math.tanh %9 : vector<4x32xf32>
    %c16 = arith.constant 16 : index
    %c0_6 = arith.constant 0 : index
    %11 = vector.load %arg4[%c16, %c0_6] : memref<384x32xbf16, #tpu.memory_space<vmem>>, vector<32x32xbf16>
    %c8 = arith.constant 8 : index
    %c0_7 = arith.constant 0 : index
    %12 = vector.load %arg5[%c8, %c0_7] : memref<88x32xf32, #tpu.memory_space<vmem>>, vector<1x32xf32>
    %13 = arith.truncf %10 : vector<4x32xf32> to vector<4x32xbf16>
    %cst_8 = arith.constant dense<0.000000e+00> : vector<4x32xf32>
    %14 = tpu.matmul %13, %11, %cst_8 {dimension_numbers = #tpu.dot_dimension_numbers<[1], [0], [0], [1], [0, 0, 1, 1], [], []>} : vector<4x32xbf16>, vector<32x32xbf16>, vector<4x32xf32> -> vector<4x32xf32>
    %15 = vector.broadcast %12 : vector<1x32xf32> to vector<4x32xf32>
    %16 = arith.addf %14, %15 : vector<4x32xf32>
    %17 = math.tanh %16 : vector<4x32xf32>
    %c0_9 = arith.constant 0 : index
    %c0_10 = arith.constant 0 : index
    %c0_11 = arith.constant 0 : index
    %18 = vector.load %arg2[%c0_9, %c0_10, %c0_11] : memref<4x16x8xf32, #tpu.memory_space<vmem>>, vector<4x16x8xf32>
    %19 = vector.shape_cast %18 : vector<4x16x8xf32> to vector<64x8xf32>
    %c48 = arith.constant 48 : index
    %c0_12 = arith.constant 0 : index
    %20 = vector.load %arg4[%c48, %c0_12] : memref<384x32xbf16, #tpu.memory_space<vmem>>, vector<8x32xbf16>
    %c16_13 = arith.constant 16 : index
    %c0_14 = arith.constant 0 : index
    %21 = vector.load %arg5[%c16_13, %c0_14] : memref<88x32xf32, #tpu.memory_space<vmem>>, vector<1x32xf32>
    %22 = arith.truncf %19 : vector<64x8xf32> to vector<64x8xbf16>
    %cst_15 = arith.constant dense<0.000000e+00> : vector<64x32xf32>
    %23 = tpu.matmul %22, %20, %cst_15 {dimension_numbers = #tpu.dot_dimension_numbers<[1], [0], [0], [1], [0, 0, 1, 1], [], []>} : vector<64x8xbf16>, vector<8x32xbf16>, vector<64x32xf32> -> vector<64x32xf32>
    %24 = vector.broadcast %21 : vector<1x32xf32> to vector<64x32xf32>
    %25 = arith.addf %23, %24 : vector<64x32xf32>
    %c48_16 = arith.constant 48 : index
    %c0_17 = arith.constant 0 : index
    %26 = vector.load %arg4[%c48_16, %c0_17] : memref<384x32xbf16, #tpu.memory_space<vmem>>, vector<8x32xbf16>
    %c16_18 = arith.constant 16 : index
    %c0_19 = arith.constant 0 : index
    %27 = vector.load %arg5[%c16_18, %c0_19] : memref<88x32xf32, #tpu.memory_space<vmem>>, vector<1x32xf32>
    %28 = arith.truncf %3 : vector<4x8xf32> to vector<4x8xbf16>
    %cst_20 = arith.constant dense<0.000000e+00> : vector<4x32xf32>
    %29 = tpu.matmul %28, %26, %cst_20 {dimension_numbers = #tpu.dot_dimension_numbers<[1], [0], [0], [1], [0, 0, 1, 1], [], []>} : vector<4x8xbf16>, vector<8x32xbf16>, vector<4x32xf32> -> vector<4x32xf32>
    %30 = vector.broadcast %27 : vector<1x32xf32> to vector<4x32xf32>
    %31 = arith.addf %29, %30 : vector<4x32xf32>
    %c0_21 = arith.constant 0 : index
    %c0_22 = arith.constant 0 : index
    %c0_23 = arith.constant 0 : index
    %32 = vector.load %arg3[%c0_21, %c0_22, %c0_23] : memref<4x32x4xf32, #tpu.memory_space<vmem>>, vector<4x32x4xf32>
    %33 = vector.extract_strided_slice %32 {offsets = [0, 0, 0], sizes = [4, 32, 1], strides = [1, 1, 1]} : vector<4x32x4xf32> to vector<4x32x1xf32>
    %34 = arith.fptosi %33 : vector<4x32x1xf32> to vector<4x32x1xi32>
    %35 = vector.extract_strided_slice %32 {offsets = [0, 0, 1], sizes = [4, 32, 1], strides = [1, 1, 1]} : vector<4x32x4xf32> to vector<4x32x1xf32>
    %36 = arith.fptosi %35 : vector<4x32x1xf32> to vector<4x32x1xi32>
    %37 = vector.extract_strided_slice %32 {offsets = [0, 0, 2], sizes = [4, 32, 1], strides = [1, 1, 1]} : vector<4x32x4xf32> to vector<4x32x1xf32>
    %38 = vector.shape_cast %37 : vector<4x32x1xf32> to vector<128x1xf32>
    %39 = vector.extract_strided_slice %32 {offsets = [0, 0, 3], sizes = [4, 16, 1], strides = [1, 1, 1]} : vector<4x32x4xf32> to vector<4x16x1xf32>
    %40 = vector.shape_cast %39 : vector<4x16x1xf32> to vector<64x1xf32>
    %41 = tpu.iota {dimensions = array<i32: 0>} : vector<4x32x1xi32>
    %c16_i32 = arith.constant 16 : i32
    %42 = vector.broadcast %c16_i32 : i32 to vector<4x32x1xi32>
    %43 = arith.muli %41, %42 : vector<4x32x1xi32>
    %44 = arith.addi %34, %43 : vector<4x32x1xi32>
    %45 = vector.shape_cast %44 : vector<4x32x1xi32> to vector<128x1xi32>
    %46 = arith.addi %36, %43 : vector<4x32x1xi32>
    %47 = vector.shape_cast %46 : vector<4x32x1xi32> to vector<128x1xi32>
    %48 = tpu.iota {dimensions = array<i32: 1>} : vector<128x64xi32>
    %49 = vector.broadcast %45 : vector<128x1xi32> to vector<128x64xi32>
    %50 = arith.cmpi eq, %49, %48 : vector<128x64xi32>
    %51 = arith.extui %50 : vector<128x64xi1> to vector<128x64xi32>
    %52 = arith.sitofp %51 : vector<128x64xi32> to vector<128x64xf32>
    %53 = vector.broadcast %47 : vector<128x1xi32> to vector<128x64xi32>
    %54 = arith.cmpi eq, %53, %48 : vector<128x64xi32>
    %55 = arith.extui %54 : vector<128x64xi1> to vector<128x64xi32>
    %56 = arith.sitofp %55 : vector<128x64xi32> to vector<128x64xf32>
    %57 = arith.addf %52, %56 : vector<128x64xf32>
    %cst_24 = arith.constant dense<0.000000e+00> : vector<64x1xf32>
    %58 = tpu.matmul %57, %38, %cst_24 {dimension_numbers = #tpu.dot_dimension_numbers<[0], [0], [1], [1], [0, 1, 1, 1], [], []>} : vector<128x64xf32>, vector<128x1xf32>, vector<64x1xf32> -> vector<64x1xf32>
    %cst_25 = arith.constant dense<0.000000e+00> : vector<128x32xf32>
    %59 = tpu.matmul %52, %25, %cst_25 {dimension_numbers = #tpu.dot_dimension_numbers<[1], [0], [0], [1], [0, 0, 1, 1], [], []>} : vector<128x64xf32>, vector<64x32xf32>, vector<128x32xf32> -> vector<128x32xf32>
    %cst_26 = arith.constant dense<0.000000e+00> : vector<128x32xf32>
    %60 = tpu.matmul %56, %25, %cst_26 {dimension_numbers = #tpu.dot_dimension_numbers<[1], [0], [0], [1], [0, 0, 1, 1], [], []>} : vector<128x64xf32>, vector<64x32xf32>, vector<128x32xf32> -> vector<128x32xf32>
    %61 = tpu.concatenate %59, %60 in 0 : vector<128x32xf32>, vector<128x32xf32> -> vector<256x32xf32>
    %62 = tpu.concatenate %60, %59 in 0 : vector<128x32xf32>, vector<128x32xf32> -> vector<256x32xf32>
    %63 = tpu.concatenate %61, %62 in 1 : vector<256x32xf32>, vector<256x32xf32> -> vector<256x64xf32>
    %c64 = arith.constant 64 : index
    %c0_27 = arith.constant 0 : index
    %64 = vector.load %arg4[%c64, %c0_27] : memref<384x32xbf16, #tpu.memory_space<vmem>>, vector<64x32xbf16>
    %c24 = arith.constant 24 : index
    %c0_28 = arith.constant 0 : index
    %65 = vector.load %arg5[%c24, %c0_28] : memref<88x32xf32, #tpu.memory_space<vmem>>, vector<1x32xf32>
    %66 = arith.truncf %63 : vector<256x64xf32> to vector<256x64xbf16>
    %cst_29 = arith.constant dense<0.000000e+00> : vector<256x32xf32>
    %67 = tpu.matmul %66, %64, %cst_29 {dimension_numbers = #tpu.dot_dimension_numbers<[1], [0], [0], [1], [0, 0, 1, 1], [], []>} : vector<256x64xbf16>, vector<64x32xbf16>, vector<256x32xf32> -> vector<256x32xf32>
    %68 = vector.broadcast %65 : vector<1x32xf32> to vector<256x32xf32>
    %69 = arith.addf %67, %68 : vector<256x32xf32>
    %70 = math.tanh %69 : vector<256x32xf32>
    %c128 = arith.constant 128 : index
    %c0_30 = arith.constant 0 : index
    %71 = vector.load %arg4[%c128, %c0_30] : memref<384x32xbf16, #tpu.memory_space<vmem>>, vector<32x32xbf16>
    %c32 = arith.constant 32 : index
    %c0_31 = arith.constant 0 : index
    %72 = vector.load %arg5[%c32, %c0_31] : memref<88x32xf32, #tpu.memory_space<vmem>>, vector<1x32xf32>
    %73 = arith.truncf %70 : vector<256x32xf32> to vector<256x32xbf16>
    %cst_32 = arith.constant dense<0.000000e+00> : vector<256x32xf32>
    %74 = tpu.matmul %73, %71, %cst_32 {dimension_numbers = #tpu.dot_dimension_numbers<[1], [0], [0], [1], [0, 0, 1, 1], [], []>} : vector<256x32xbf16>, vector<32x32xbf16>, vector<256x32xf32> -> vector<256x32xf32>
    %75 = vector.broadcast %72 : vector<1x32xf32> to vector<256x32xf32>
    %76 = arith.addf %74, %75 : vector<256x32xf32>
    %77 = math.tanh %76 : vector<256x32xf32>
    %78 = vector.extract_strided_slice %77 {offsets = [0, 0], sizes = [128, 32], strides = [1, 1]} : vector<256x32xf32> to vector<128x32xf32>
    %79 = vector.extract_strided_slice %77 {offsets = [128, 0], sizes = [128, 32], strides = [1, 1]} : vector<256x32xf32> to vector<128x32xf32>
    %80 = arith.addf %78, %79 : vector<128x32xf32>
    %cst_33 = arith.constant 5.000000e-01 : f32
    %81 = vector.broadcast %cst_33 : f32 to vector<128x32xf32>
    %82 = arith.mulf %80, %81 : vector<128x32xf32>
    %83 = vector.broadcast %38 : vector<128x1xf32> to vector<128x32xf32>
    %84 = arith.mulf %82, %83 : vector<128x32xf32>
    %cst_34 = arith.constant dense<0.000000e+00> : vector<64x32xf32>
    %85 = tpu.matmul %57, %84, %cst_34 {dimension_numbers = #tpu.dot_dimension_numbers<[0], [0], [1], [1], [0, 1, 1, 1], [], []>} : vector<128x64xf32>, vector<128x32xf32>, vector<64x32xf32> -> vector<64x32xf32>
    %cst_35 = arith.constant 9.99999997E-7 : f32
    %86 = vector.broadcast %cst_35 : f32 to vector<64x1xf32>
    %87 = arith.addf %58, %86 : vector<64x1xf32>
    %88 = vector.broadcast %87 : vector<64x1xf32> to vector<64x32xf32>
    %89 = arith.divf %85, %88 : vector<64x32xf32>
    %90 = arith.addf %25, %89 : vector<64x32xf32>
    %cst_36 = arith.constant dense<0.000000e+00> : vector<128x32xf32>
    %91 = tpu.matmul %52, %90, %cst_36 {dimension_numbers = #tpu.dot_dimension_numbers<[1], [0], [0], [1], [0, 0, 1, 1], [], []>} : vector<128x64xf32>, vector<64x32xf32>, vector<128x32xf32> -> vector<128x32xf32>
    %cst_37 = arith.constant dense<0.000000e+00> : vector<128x32xf32>
    %92 = tpu.matmul %56, %90, %cst_37 {dimension_numbers = #tpu.dot_dimension_numbers<[1], [0], [0], [1], [0, 0, 1, 1], [], []>} : vector<128x64xf32>, vector<64x32xf32>, vector<128x32xf32> -> vector<128x32xf32>
    %93 = tpu.concatenate %91, %92 in 0 : vector<128x32xf32>, vector<128x32xf32> -> vector<256x32xf32>
    %94 = tpu.concatenate %92, %91 in 0 : vector<128x32xf32>, vector<128x32xf32> -> vector<256x32xf32>
    %95 = tpu.concatenate %93, %94 in 1 : vector<256x32xf32>, vector<256x32xf32> -> vector<256x64xf32>
    %c160 = arith.constant 160 : index
    %c0_38 = arith.constant 0 : index
    %96 = vector.load %arg4[%c160, %c0_38] : memref<384x32xbf16, #tpu.memory_space<vmem>>, vector<64x32xbf16>
    %c40 = arith.constant 40 : index
    %c0_39 = arith.constant 0 : index
    %97 = vector.load %arg5[%c40, %c0_39] : memref<88x32xf32, #tpu.memory_space<vmem>>, vector<1x32xf32>
    %98 = arith.truncf %95 : vector<256x64xf32> to vector<256x64xbf16>
    %cst_40 = arith.constant dense<0.000000e+00> : vector<256x32xf32>
    %99 = tpu.matmul %98, %96, %cst_40 {dimension_numbers = #tpu.dot_dimension_numbers<[1], [0], [0], [1], [0, 0, 1, 1], [], []>} : vector<256x64xbf16>, vector<64x32xbf16>, vector<256x32xf32> -> vector<256x32xf32>
    %100 = vector.broadcast %97 : vector<1x32xf32> to vector<256x32xf32>
    %101 = arith.addf %99, %100 : vector<256x32xf32>
    %102 = math.tanh %101 : vector<256x32xf32>
    %c224 = arith.constant 224 : index
    %c0_41 = arith.constant 0 : index
    %103 = vector.load %arg4[%c224, %c0_41] : memref<384x32xbf16, #tpu.memory_space<vmem>>, vector<32x32xbf16>
    %c48_42 = arith.constant 48 : index
    %c0_43 = arith.constant 0 : index
    %104 = vector.load %arg5[%c48_42, %c0_43] : memref<88x32xf32, #tpu.memory_space<vmem>>, vector<1x32xf32>
    %105 = arith.truncf %102 : vector<256x32xf32> to vector<256x32xbf16>
    %cst_44 = arith.constant dense<0.000000e+00> : vector<256x32xf32>
    %106 = tpu.matmul %105, %103, %cst_44 {dimension_numbers = #tpu.dot_dimension_numbers<[1], [0], [0], [1], [0, 0, 1, 1], [], []>} : vector<256x32xbf16>, vector<32x32xbf16>, vector<256x32xf32> -> vector<256x32xf32>
    %107 = vector.broadcast %104 : vector<1x32xf32> to vector<256x32xf32>
    %108 = arith.addf %106, %107 : vector<256x32xf32>
    %109 = math.tanh %108 : vector<256x32xf32>
    %110 = vector.extract_strided_slice %109 {offsets = [0, 0], sizes = [128, 32], strides = [1, 1]} : vector<256x32xf32> to vector<128x32xf32>
    %111 = vector.extract_strided_slice %109 {offsets = [128, 0], sizes = [128, 32], strides = [1, 1]} : vector<256x32xf32> to vector<128x32xf32>
    %112 = arith.addf %110, %111 : vector<128x32xf32>
    %cst_45 = arith.constant 5.000000e-01 : f32
    %113 = vector.broadcast %cst_45 : f32 to vector<128x32xf32>
    %114 = arith.mulf %112, %113 : vector<128x32xf32>
    %115 = vector.broadcast %38 : vector<128x1xf32> to vector<128x32xf32>
    %116 = arith.mulf %114, %115 : vector<128x32xf32>
    %cst_46 = arith.constant dense<0.000000e+00> : vector<64x32xf32>
    %117 = tpu.matmul %57, %116, %cst_46 {dimension_numbers = #tpu.dot_dimension_numbers<[0], [0], [1], [1], [0, 1, 1, 1], [], []>} : vector<128x64xf32>, vector<128x32xf32>, vector<64x32xf32> -> vector<64x32xf32>
    %cst_47 = arith.constant 9.99999997E-7 : f32
    %118 = vector.broadcast %cst_47 : f32 to vector<64x1xf32>
    %119 = arith.addf %58, %118 : vector<64x1xf32>
    %120 = vector.broadcast %119 : vector<64x1xf32> to vector<64x32xf32>
    %121 = arith.divf %117, %120 : vector<64x32xf32>
    %122 = arith.addf %90, %121 : vector<64x32xf32>
    %123 = vector.shape_cast %38 : vector<128x1xf32> to vector<4x32x1xf32>
    %cst_48 = arith.constant dense<0.000000e+00> : vector<4x1xf32>
    %124 = vector.multi_reduction <add>, %123, %cst_48 [1] : vector<4x32x1xf32> to vector<4x1xf32>
    %125 = vector.shape_cast %40 : vector<64x1xf32> to vector<4x16x1xf32>
    %cst_49 = arith.constant dense<0.000000e+00> : vector<4x1xf32>
    %126 = vector.multi_reduction <add>, %125, %cst_49 [1] : vector<4x16x1xf32> to vector<4x1xf32>
    %127 = vector.shape_cast %116 : vector<128x32xf32> to vector<4x32x32xf32>
    %cst_50 = arith.constant dense<0.000000e+00> : vector<4x32xf32>
    %128 = vector.multi_reduction <add>, %127, %cst_50 [1] : vector<4x32x32xf32> to vector<4x32xf32>
    %129 = vector.broadcast %124 : vector<4x1xf32> to vector<4x32xf32>
    %130 = arith.divf %128, %129 : vector<4x32xf32>
    %131 = vector.broadcast %40 : vector<64x1xf32> to vector<64x32xf32>
    %132 = arith.mulf %122, %131 : vector<64x32xf32>
    %133 = vector.shape_cast %132 : vector<64x32xf32> to vector<4x16x32xf32>
    %cst_51 = arith.constant dense<0.000000e+00> : vector<4x32xf32>
    %134 = vector.multi_reduction <add>, %133, %cst_51 [1] : vector<4x16x32xf32> to vector<4x32xf32>
    %135 = vector.broadcast %126 : vector<4x1xf32> to vector<4x32xf32>
    %136 = arith.divf %134, %135 : vector<4x32xf32>
    %c256 = arith.constant 256 : index
    %c0_52 = arith.constant 0 : index
    %137 = vector.load %arg4[%c256, %c0_52] : memref<384x32xbf16, #tpu.memory_space<vmem>>, vector<32x32xbf16>
    %c56 = arith.constant 56 : index
    %c0_53 = arith.constant 0 : index
    %138 = vector.load %arg5[%c56, %c0_53] : memref<88x32xf32, #tpu.memory_space<vmem>>, vector<1x32xf32>
    %139 = arith.truncf %31 : vector<4x32xf32> to vector<4x32xbf16>
    %cst_54 = arith.constant dense<0.000000e+00> : vector<4x32xf32>
    %140 = tpu.matmul %139, %137, %cst_54 {dimension_numbers = #tpu.dot_dimension_numbers<[1], [0], [0], [1], [0, 0, 1, 1], [], []>} : vector<4x32xbf16>, vector<32x32xbf16>, vector<4x32xf32> -> vector<4x32xf32>
    %141 = vector.broadcast %138 : vector<1x32xf32> to vector<4x32xf32>
    %142 = arith.addf %140, %141 : vector<4x32xf32>
    %c288 = arith.constant 288 : index
    %c0_55 = arith.constant 0 : index
    %143 = vector.load %arg4[%c288, %c0_55] : memref<384x32xbf16, #tpu.memory_space<vmem>>, vector<32x32xbf16>
    %c64_56 = arith.constant 64 : index
    %c0_57 = arith.constant 0 : index
    %144 = vector.load %arg5[%c64_56, %c0_57] : memref<88x32xf32, #tpu.memory_space<vmem>>, vector<1x32xf32>
    %145 = arith.truncf %122 : vector<64x32xf32> to vector<64x32xbf16>
    %cst_58 = arith.constant dense<0.000000e+00> : vector<64x32xf32>
    %146 = tpu.matmul %145, %143, %cst_58 {dimension_numbers = #tpu.dot_dimension_numbers<[1], [0], [0], [1], [0, 0, 1, 1], [], []>} : vector<64x32xbf16>, vector<32x32xbf16>, vector<64x32xf32> -> vector<64x32xf32>
    %147 = vector.broadcast %144 : vector<1x32xf32> to vector<64x32xf32>
    %148 = arith.addf %146, %147 : vector<64x32xf32>
    %c320 = arith.constant 320 : index
    %c0_59 = arith.constant 0 : index
    %149 = vector.load %arg4[%c320, %c0_59] : memref<384x32xbf16, #tpu.memory_space<vmem>>, vector<32x32xbf16>
    %c72 = arith.constant 72 : index
    %c0_60 = arith.constant 0 : index
    %150 = vector.load %arg5[%c72, %c0_60] : memref<88x32xf32, #tpu.memory_space<vmem>>, vector<1x32xf32>
    %151 = arith.truncf %122 : vector<64x32xf32> to vector<64x32xbf16>
    %cst_61 = arith.constant dense<0.000000e+00> : vector<64x32xf32>
    %152 = tpu.matmul %151, %149, %cst_61 {dimension_numbers = #tpu.dot_dimension_numbers<[1], [0], [0], [1], [0, 0, 1, 1], [], []>} : vector<64x32xbf16>, vector<32x32xbf16>, vector<64x32xf32> -> vector<64x32xf32>
    %153 = vector.broadcast %150 : vector<1x32xf32> to vector<64x32xf32>
    %154 = arith.addf %152, %153 : vector<64x32xf32>
    %155 = tpu.iota {dimensions = array<i32: 0>} : vector<32x4xi32>
    %156 = tpu.iota {dimensions = array<i32: 1>} : vector<32x4xi32>
    %c8_i32 = arith.constant 8 : i32
    %157 = vector.broadcast %c8_i32 : i32 to vector<32x4xi32>
    %158 = arith.muli %156, %157 : vector<32x4xi32>
    %159 = arith.cmpi sge, %155, %158 : vector<32x4xi32>
    %c1_i32 = arith.constant 1 : i32
    %160 = vector.broadcast %c1_i32 : i32 to vector<32x4xi32>
    %161 = arith.addi %156, %160 : vector<32x4xi32>
    %c8_i32_62 = arith.constant 8 : i32
    %162 = vector.broadcast %c8_i32_62 : i32 to vector<32x4xi32>
    %163 = arith.muli %161, %162 : vector<32x4xi32>
    %164 = arith.cmpi slt, %155, %163 : vector<32x4xi32>
    %165 = arith.andi %159, %164 : vector<32x4xi1>
    %166 = arith.extui %165 : vector<32x4xi1> to vector<32x4xi32>
    %167 = arith.sitofp %166 : vector<32x4xi32> to vector<32x4xf32>
    %168 = vector.shape_cast %148 : vector<64x32xf32> to vector<4x16x32xf32>
    %169 = vector.shape_cast %142 : vector<4x32xf32> to vector<4x1x32xf32>
    %170 = vector.broadcast %169 : vector<4x1x32xf32> to vector<4x16x32xf32>
    %171 = arith.mulf %168, %170 : vector<4x16x32xf32>
    %172 = vector.shape_cast %171 : vector<4x16x32xf32> to vector<64x32xf32>
    %cst_63 = arith.constant dense<0.000000e+00> : vector<64x4xf32>
    %173 = tpu.matmul %172, %167, %cst_63 {dimension_numbers = #tpu.dot_dimension_numbers<[1], [0], [0], [1], [0, 0, 1, 1], [], []>} : vector<64x32xf32>, vector<32x4xf32>, vector<64x4xf32> -> vector<64x4xf32>
    %cst_64 = arith.constant 0.353553385 : f32
    %174 = vector.broadcast %cst_64 : f32 to vector<64x4xf32>
    %175 = arith.mulf %173, %174 : vector<64x4xf32>
    %cst_65 = arith.constant 5.000000e-01 : f32
    %176 = vector.broadcast %cst_65 : f32 to vector<64x1xf32>
    %177 = arith.cmpf ogt, %40, %176 : vector<64x1xf32>
    %cst_66 = arith.constant -1.000000e+30 : f32
    %178 = vector.shape_cast %177 : vector<64x1xi1> to vector<64x1xi1>
    %179 = vector.broadcast %178 : vector<64x1xi1> to vector<64x4xi1>
    %180 = vector.broadcast %cst_66 : f32 to vector<64x4xf32>
    %181 = arith.select %179, %175, %180 : vector<64x4xi1>, vector<64x4xf32>
    %182 = vector.shape_cast %181 : vector<64x4xf32> to vector<4x16x4xf32>
    %cst_67 = arith.constant dense<0xFF800000> : vector<4x4xf32>
    %183 = vector.multi_reduction <maximumf>, %182, %cst_67 [1] : vector<4x16x4xf32> to vector<4x4xf32>
    %184 = vector.shape_cast %183 : vector<4x4xf32> to vector<4x1x4xf32>
    %185 = vector.broadcast %184 : vector<4x1x4xf32> to vector<4x16x4xf32>
    %186 = arith.subf %182, %185 : vector<4x16x4xf32>
    %187 = math.exp %186 : vector<4x16x4xf32>
    %cst_68 = arith.constant dense<0.000000e+00> : vector<4x4xf32>
    %188 = vector.multi_reduction <add>, %187, %cst_68 [1] : vector<4x16x4xf32> to vector<4x4xf32>
    %189 = vector.shape_cast %188 : vector<4x4xf32> to vector<4x1x4xf32>
    %190 = vector.broadcast %189 : vector<4x1x4xf32> to vector<4x16x4xf32>
    %191 = arith.divf %187, %190 : vector<4x16x4xf32>
    %192 = vector.shape_cast %191 : vector<4x16x4xf32> to vector<64x4xf32>
    %cst_69 = arith.constant dense<0.000000e+00> : vector<64x32xf32>
    %193 = tpu.matmul %192, %167, %cst_69 {dimension_numbers = #tpu.dot_dimension_numbers<[1], [1], [0], [0], [0, 0, 1, 0], [], []>} : vector<64x4xf32>, vector<32x4xf32>, vector<64x32xf32> -> vector<64x32xf32>
    %194 = arith.mulf %193, %154 : vector<64x32xf32>
    %195 = vector.shape_cast %194 : vector<64x32xf32> to vector<4x16x32xf32>
    %cst_70 = arith.constant dense<0.000000e+00> : vector<4x32xf32>
    %196 = vector.multi_reduction <add>, %195, %cst_70 [1] : vector<4x16x32xf32> to vector<4x32xf32>
    %c352 = arith.constant 352 : index
    %c0_71 = arith.constant 0 : index
    %197 = vector.load %arg4[%c352, %c0_71] : memref<384x32xbf16, #tpu.memory_space<vmem>>, vector<32x32xbf16>
    %c80 = arith.constant 80 : index
    %c0_72 = arith.constant 0 : index
    %198 = vector.load %arg5[%c80, %c0_72] : memref<88x32xf32, #tpu.memory_space<vmem>>, vector<1x32xf32>
    %199 = arith.truncf %196 : vector<4x32xf32> to vector<4x32xbf16>
    %cst_73 = arith.constant dense<0.000000e+00> : vector<4x32xf32>
    %200 = tpu.matmul %199, %197, %cst_73 {dimension_numbers = #tpu.dot_dimension_numbers<[1], [0], [0], [1], [0, 0, 1, 1], [], []>} : vector<4x32xbf16>, vector<32x32xbf16>, vector<4x32xf32> -> vector<4x32xf32>
    %201 = vector.broadcast %198 : vector<1x32xf32> to vector<4x32xf32>
    %202 = arith.addf %200, %201 : vector<4x32xf32>
    %203 = tpu.concatenate %17, %136, %130, %202 in 1 : vector<4x32xf32>, vector<4x32xf32>, vector<4x32xf32>, vector<4x32xf32> -> vector<4x128xf32>
    %c0_74 = arith.constant 0 : index
    %c0_75 = arith.constant 0 : index
    %c0_76 = arith.constant 0 : index
    %204 = vector.load %arg8[%c0_74, %c0_75, %c0_76] : memref<1x4x128xf32, #tpu.memory_space<vmem>>, vector<1x4x128xf32>
    %205 = vector.shape_cast %204 : vector<1x4x128xf32> to vector<4x128xf32>
    %206 = vector.shape_cast %203 : vector<4x128xf32> to vector<1x4x128xf32>
    tpu.vector_store %arg8[%c0_74, %c0_75, %c0_76], %206 {strides = array<i32>} : memref<1x4x128xf32, #tpu.memory_space<vmem>>, vector<1x4x128xf32>,
    %207 = vector.shape_cast %31 : vector<4x32xf32> to vector<4x1x32xf32>
    %208 = vector.shape_cast %207 : vector<4x1x32xf32> to vector<4x1x32xf32>
    %209 = vector.broadcast %208 : vector<4x1x32xf32> to vector<4x32x32xf32>
    %210 = vector.shape_cast %209 : vector<4x32x32xf32> to vector<128x32xf32>
    %211 = arith.mulf %116, %210 : vector<128x32xf32>
    %212 = arith.subf %116, %210 : vector<128x32xf32>
    %213 = tpu.concatenate %116, %210, %211, %212 in 1 : vector<128x32xf32>, vector<128x32xf32>, vector<128x32xf32>, vector<128x32xf32> -> vector<128x128xf32>
    %c0_77 = arith.constant 0 : index
    %c0_78 = arith.constant 0 : index
    %c0_79 = arith.constant 0 : index
    %214 = vector.load %arg6[%c0_77, %c0_78, %c0_79] : memref<1x128x128xf32, #tpu.memory_space<vmem>>, vector<1x128x128xf32>
    %215 = vector.shape_cast %214 : vector<1x128x128xf32> to vector<128x128xf32>
    %216 = vector.shape_cast %213 : vector<128x128xf32> to vector<1x128x128xf32>
    tpu.vector_store %arg6[%c0_77, %c0_78, %c0_79], %216 {strides = array<i32>} : memref<1x128x128xf32, #tpu.memory_space<vmem>>, vector<1x128x128xf32>,
    %c0_80 = arith.constant 0 : index
    %c0_81 = arith.constant 0 : index
    %c0_82 = arith.constant 0 : index
    %217 = vector.load %arg7[%c0_80, %c0_81, %c0_82] : memref<1x64x32xf32, #tpu.memory_space<vmem>>, vector<1x64x32xf32>
    %218 = vector.shape_cast %217 : vector<1x64x32xf32> to vector<64x32xf32>
    %219 = vector.shape_cast %122 : vector<64x32xf32> to vector<1x64x32xf32>
    tpu.vector_store %arg7[%c0_80, %c0_81, %c0_82], %219 {strides = array<i32>} : memref<1x64x32xf32, #tpu.memory_space<vmem>>, vector<1x64x32xf32>,
    return
  }
  func.func @transform_0(%arg0: i32) -> (i32, i32, i32) {
    %c0_i32 = arith.constant 0 : i32
    %c0_i32_0 = arith.constant 0 : i32
    %c0_i32_1 = arith.constant 0 : i32
    return %arg0, %c0_i32, %c0_i32_0 : i32, i32, i32
  }
  func.func @transform_1(%arg0: i32) -> (i32, i32, i32) {
    %c0_i32 = arith.constant 0 : i32
    %c0_i32_0 = arith.constant 0 : i32
    %c0_i32_1 = arith.constant 0 : i32
    return %arg0, %c0_i32, %c0_i32_0 : i32, i32, i32
  }
  func.func @transform_2(%arg0: i32) -> (i32, i32, i32) {
    %c0_i32 = arith.constant 0 : i32
    %c0_i32_0 = arith.constant 0 : i32
    %c0_i32_1 = arith.constant 0 : i32
    return %arg0, %c0_i32, %c0_i32_0 : i32, i32, i32
  }
  func.func @transform_3(%arg0: i32) -> (i32, i32) {
    %c0_i32 = arith.constant 0 : i32
    %c0_i32_0 = arith.constant 0 : i32
    %c0_i32_1 = arith.constant 0 : i32
    return %c0_i32, %c0_i32_0 : i32, i32
  }
  func.func @transform_4(%arg0: i32) -> (i32, i32) {
    %c0_i32 = arith.constant 0 : i32
    %c0_i32_0 = arith.constant 0 : i32
    %c0_i32_1 = arith.constant 0 : i32
    return %c0_i32, %c0_i32_0 : i32, i32
  }
  func.func @transform_5(%arg0: i32) -> (i32, i32, i32) {
    %c0_i32 = arith.constant 0 : i32
    %c0_i32_0 = arith.constant 0 : i32
    %c0_i32_1 = arith.constant 0 : i32
    return %arg0, %c0_i32, %c0_i32_0 : i32, i32, i32
  }
  func.func @transform_6(%arg0: i32) -> (i32, i32, i32) {
    %c0_i32 = arith.constant 0 : i32
    %c0_i32_0 = arith.constant 0 : i32
    %c0_i32_1 = arith.constant 0 : i32
    return %arg0, %c0_i32, %c0_i32_0 : i32, i32, i32
  }
  func.func @transform_7(%arg0: i32) -> (i32, i32, i32) {
    %c0_i32 = arith.constant 0 : i32
    %c0_i32_0 = arith.constant 0 : i32
    %c0_i32_1 = arith.constant 0 : i32
    return %arg0, %c0_i32, %c0_i32_0 : i32, i32, i32
  }
}

</mosaic_0001>

<bundles_post_ra>
// kernel: tpu_custom_call.1
= control target key start
LH: loop header
LB: loop body
LE: loop exit
PB: predicated region body
PF: predicated region fallthrough
CT: control target
= control target key end

     0   :  { %s8286_s0 = inlined_call_operand.vmem [shape: f32[8,1,24], index: 0, kind: input, shape index: {}]   ;;  %s8287_s1 = inlined_call_operand.vmem [shape: f32[8,16,8], index: 1, kind: input, shape index: {}]   ;;  %s8288_s2 = inlined_call_operand.vmem [shape: f32[8,32,4], index: 2, kind: input, shape index: {}]   ;;  %s8289_s3 = inlined_call_operand.vmem [shape: bf16[384,32], index: 3, kind: input, shape index: {}]   ;;  %s8290_s4 = inlined_call_operand.vmem [shape: f32[88,32], index: 4, kind: input, shape index: {}]   ;;  %s8291_s5 = inlined_call_operand.hbm [shape: f32[2,128,128], index: 5, kind: output, shape index: {0}]   ;;  %s8292_s6 = inlined_call_operand.vmem [shape: f32[2,64,32], index: 6, kind: output, shape index: {1}]   ;;  %s8293_s7 = inlined_call_operand.hbm [shape: f32[2,4,128], index: 7, kind: output, shape index: {2}]  }
   0x1   :  { %8363 = sst [smem:[#allocation62_spill]] %s8286_s0 }
   0x2   :  { %8364 = sst [smem:[#allocation63_spill]] %s8287_s1 }
   0x3   :  { %13 = vsyncpa [#allocation3], 0 }
   0x4   :  { %15 = vsyncpa [#allocation3 + $0x1], 0 }
   0x5   :  { %16 = vsyncpa [#allocation5], 0 }
   0x6   :  { %18 = vsyncpa [#allocation5 + $0x1], 0  ;;  %s5654_s24 = smov 0   ;;  %s5656_s25 = smov 0  }
   0x7   :  { %s5658_s26 = smov 0   ;;  %s5660_s27 = smov 0  }
   0x8 LB: > { %s5675_s28 = sadd.s32 4294967295, %s5597_s27   ;;  %s4359_s29 = sadd.s32 4294967294, %s5597_s27   ;;  %s5597_s27 = sphi %s5660_s27, %s8745_s27   ;;  %s5593_s26 = sphi %s5658_s26, %s8744_s26   ;;  %s5589_s25 = sphi %s5656_s25, %s8743_s25   ;;  %s5585_s24 = sphi %s5654_s24, %s8742_s24  }
   0x9   : > { %s5679_s30 = sadd.s32 1, %s5597_s27   ;;  %s151_s8 = sadd.s32 1, %s5593_s26 }
   0xa   : > { %s148_s9 = ssub.s32 %s5597_s27, %s5679_s30  ;;  %p161_p0 = scmp.ne.s32.totalorder %s5593_s26, %s5589_s25 }
   0xb   : > { %p149_p1 = scmp.eq.s32.totalorder %s148_s9, 0  ;;  %p162_p2 = scmp.eq.s32.totalorder %s5675_s28, 1 }
   0xc   : > { %p167_p3 = scmp.ne.s32.totalorder %s5589_s25, %s5585_s24  ;;  %p168_p4 = scmp.eq.s32.totalorder %s4359_s29, 1 }
   0xd   : > { %s5690_s10 = scalar_select %p149_p1, %s5593_s26, %s151_s8  }
   0xe   : > { %p5692_p5 = por %p162_p2, %p161_p0  ;;  %p5696_p6 = por %p168_p4, %p167_p3 }
   0xf   : > { %p4362_p7 = scmp.ge.s32.totalorder %s5597_s27, 1  ;;  %p272_p8 = scmp.lt.s32.totalorder %s5597_s27, 3 }
  0x11   : > { %p273_p9 = pnand %p4362_p7, %p272_p8 }
  0x13   : > { %276 = sbr.rel (%p273_p9) target bundleno = 3020 (0xbcc), region = 40 }
  0x18   : > { %v449_v0 = vld [vmem:[%s8289_s3 + $0x18] sm:$0xf]  ;;  %vm469_vm0 = vcmask 1043456   ;;  %s5706_s15 = sshll.u32 %s5675_s28, 2  ;;  %v5599_v2 = vmov 1   ;;  %s8367_s1 = sld [smem:[#allocation63_spill]] }
  0x19   : > { %v471_v1 = vsel %vm469_vm0, %v449_v0, 0  ;;  %p326_p10 = scmp.lt.s32.totalorder %s5706_s15, 7  ;;  %4911 = vset.pattern.permute.xlu1 %v5599_v2  ;;  %4912 = vset.pattern.permute.xlu2 %v5599_v2  ;;  %vm456_vm1 = vcmask 64512   ;;  %s8368_s0 = sld [smem:[#allocation62_spill]]  ;;  %vm8340_vm6 = vcmask 1041409   ;;  %vm8339_vm7 = vcmask 1042434  }
  0x1a   : > { %4705 = vmatpush.bf16.msra.mxu3 %v471_v1  ;;  %480 = vmatpush.bf16.msra.mxu2 %v471_v1  ;;  %vm8338_vm8 = vcmask 1043459   ;;  %s5600_s14 = smov 112   ;;  %s5603_s20 = smov 32  }
  0x1b   : > { %s327_s16 = scalar_select %p326_p10, %s5706_s15, 7  ;;  %4910 = vset.pattern.permute.xlu0 %v5599_v2 }
  0x1c   : > { %s5608_s22 = smov 64   ;;  %s7823_s23 = sand.u32 1, %s5589_s25  }
  0x1d   : > { %s4678_s17 = sshll.u32 %s327_s16, 4  ;;  %s4679_s18 = sshll.u32 %s327_s16, 5 }
  0x1e   : > { %s5716_s21 = scalar_lea.vmem %s8367_s1, %s4678_s17  ;;  %s5721_s29 = scalar_lea.vmem %s8288_s2, %s4679_s18 }
  0x1f   : > { %v443_v3 = vld [vmem:[%s5716_s21 + $0x10] sm:$0xff]  ;;  %v444_v4 = vld [vmem:[%s5716_s21 + $0x18] sm:$0xff]  ;;  %v521_v5 = vld [vmem:[%s5721_s29 + $0x8] sm:$0xff]  ;;  %s328_s13 = scalar_lea.vmem %s8368_s0, %s327_s16  ;;  %s5604_s18 = smov 126  }
  0x20   : > { %v452_v6 = vpack.c.bf16 %v444_v4, %v443_v3  ;;  %vm4778_vm2 = vcmp.lt.s32.totalorder %v521_v5, 0  ;;  %v4779_v7 = vceil.f32 %v521_v5  ;;  %v4780_v8 = vfloor.f32 %v521_v5  ;;  %v522_v9 = vld [vmem:[%s5721_s29 + $0x10] sm:$0xff]  ;;  %v525_v12 = vld [vmem:[%s5721_s29 + $0x28] sm:$0xff]  ;;  %v441_v15 = vld [vmem:[%s5716_s21] sm:$0xff]  ;;  %s4363_s8 = sshll.u32 %s7823_s23, 7  ;;  %p344_p11 = scmp.lt.s32.totalorder %s5675_s28, 1 }
  0x21   : > { %v4784_v10 = vceil.f32 %v522_v9  ;;  %v4785_v11 = vfloor.f32 %v522_v9  ;;  %vm4783_vm3 = vcmp.lt.s32.totalorder %v522_v9, 0  ;;  %v442_v16 = vld [vmem:[%s5716_s21 + $0x8] sm:$0xff]  ;;  %v523_v17 = vld [vmem:[%s5721_s29 + $0x18] sm:$0xff]  ;;  %v4799_v18 = vceil.f32 %v525_v12  ;;  %v351_v20 = vld [vmem:[%s328_s13 + $0x1] sm:$0x1]  ;;  %s7845_s9 = scalar_lea.vmem [#allocation2], %s4363_s8 }
  0x22   : > { %4389 = vmatmul.msk.bf16.vlgmr.msra.gmra.mxu3 %vm456_vm1, %v452_v6  ;;  %v5732_v13 = vsel %vm4778_vm2, %v4779_v7, %v4780_v8  ;;  %v451_v19 = vpack.c.bf16 %v442_v16, %v441_v15  ;;  %v352_v21 = vld [vmem:[%s328_s13 + $0x2] sm:$0x1]  ;;  %v4800_v23 = vfloor.f32 %v525_v12  ;;  %vm4788_vm4 = vcmp.lt.s32.totalorder %v523_v17, 0  ;;  %v350_v25 = vld [vmem:[%s328_s13] sm:$0x1]  ;;  %v446_v42 = vld [vmem:[%s5716_s21 + $0x28] sm:$0xff] }
  0x23   : > { %v4782_v14 = vcvt.f32.s32 %v5732_v13  ;;  %514 = vmatpush.bf16.msra.mxu3 %v471_v1  ;;  %v5740_v22 = vsel %vm4783_vm3, %v4784_v10, %v4785_v11  ;;  %v4789_v24 = vceil.f32 %v523_v17  ;;  %v353_v26 = vld [vmem:[%s328_s13 + $0x3] sm:$0x1]  ;;  %v4790_v27 = vfloor.f32 %v523_v17  ;;  %v526_v1 = vld [vmem:[%s5721_s29 + $0x30] sm:$0xff]  ;;  %v448_v8 = vld [vmem:[%s5716_s21 + $0x38] sm:$0xff]  ;;  %s345_s8 = scalar_select %p344_p11, %s5675_s28, 1 }
  0x24   : > { %4388 = vmatmul.msk.bf16.vlgmr.msra.gmra.mxu2 %vm456_vm1, %v451_v19  ;;  %v357_v28 = vpack.c.bf16 %v350_v25, %v350_v25  ;;  %v358_v29 = vpack.c.bf16 %v351_v20, %v351_v20  ;;  %v359_v30 = vpack.c.bf16 %v352_v21, %v352_v21  ;;  %vm4798_vm5 = vcmp.lt.s32.totalorder %v525_v12, 0  ;;  %v524_v37 = vld [vmem:[%s5721_s29 + $0x20] sm:$0xff]  ;;  %v447_v7 = vld [vmem:[%s5716_s21 + $0x30] sm:$0xff]  ;;  %v527_v10 = vld [vmem:[%s5721_s29 + $0x38] sm:$0xff]  ;;  %s4704_s17 = sshll.u32 %s5675_s28, 7 }
  0x25   : > { %666 = vperm.xlu1 %4911, %v4782_v14   ;;  %v360_v31 = vpack.c.bf16 %v353_v26, %v353_v26  ;;  %v5743_v32 = vsel %vm4788_vm4, %v4789_v24, %v4790_v27  ;;  %v4787_v33 = vcvt.f32.s32 %v5740_v22  ;;  %v4801_v38 = vsel %vm4798_vm5, %v4799_v18, %v4800_v23  ;;  %v445_v41 = vld [vmem:[%s5716_s21 + $0x20] sm:$0xff]  ;;  %v529_v17 = vld [vmem:[%s5721_s29 + $0x48] sm:$0xff]  ;;  %s5607_s21 = smov 96   ;;  %s4680_s13 = sshll.u32 %s345_s8, 6 }
  0x26   : > { %v4792_v34 = vcvt.f32.s32 %v5743_v32  ;;  %v366_v35 = vunpack.c.l.b16 %v357_v28  ;;  %v367_v36 = vunpack.c.l.b16 %v358_v29  ;;  %v368_v39 = vunpack.c.l.b16 %v359_v30  ;;  %v520_v57 = vld [vmem:[%s5721_s29] sm:$0xff]  ;;  %s7981_s16 = scalar_lea.vmem %s8292_s6, %s4680_s13  ;;  %s4197_s19 = scalar_lea.hbm %s8291_s5, %s4704_s17 }
  0x27   : > { %v369_v40 = vunpack.c.l.b16 %v360_v31  ;;  %vm4793_vm9 = vcmp.lt.s32.totalorder %v524_v37, 0  ;;  %v4802_v46 = vcvt.f32.s32 %v4801_v38  ;;  %v4794_v48 = vceil.f32 %v524_v37  ;;  %v528_v61 = vld [vmem:[%s5721_s29 + $0x40] sm:$0xff]  ;;  %v531_v38 = vld [vmem:[%s5721_s29 + $0x58] sm:$0xff] }
  0x28   : > { %672 = vperm.xlu2 %4912, %v4792_v34   ;;  %v370_v43 = vrot.slane %v367_v36, 7  ;;  %v373_v44 = vrot.slane %v368_v39, 6  ;;  %v4795_v49 = vfloor.f32 %v524_v37  ;;  %v453_v50 = vpack.c.bf16 %v446_v42, %v445_v41  ;;  %v533_v39 = vld [vmem:[%s5721_s29 + $0x68] sm:$0xff]  ;;  %v532_v42 = vld [vmem:[%s5721_s29 + $0x60] sm:$0xff] }
  0x29   : > { %v376_v45 = vrot.slane %v369_v40, 5  ;;  %v5759_v56 = vadd.s32 16, %v4802_v46  ;;  %v4774_v59 = vceil.f32 %v520_v57  ;;  %v4775_v60 = vfloor.f32 %v520_v57 }
  0x2a   : > { %v372_v47 = vsel %vm8340_vm6, %v370_v43, %v366_v35  ;;  %v4796_v53 = vsel %vm4793_vm9, %v4794_v48, %v4795_v49  ;;  %vm4773_vm10 = vcmp.lt.s32.totalorder %v520_v57, 0  ;;  %v4814_v0 = vceil.f32 %v528_v61 }
  0x2b   : > { %v375_v51 = vsel %vm8339_vm7, %v373_v44, %v372_v47  ;;  %v4797_v55 = vcvt.f32.s32 %v4796_v53  ;;  %v4776_v62 = vsel %vm4773_vm10, %v4774_v59, %v4775_v60  ;;  %v4815_v3 = vfloor.f32 %v528_v61 }
  0x2c   : > { %v378_v52 = vsel %vm8338_vm8, %v376_v45, %v375_v51  ;;  %v4777_v63 = vcvt.f32.s32 %v4776_v62  ;;  %vm4803_vm11 = vcmp.lt.s32.totalorder %v526_v1, 0  ;;  %v4804_v4 = vceil.f32 %v526_v1  ;;  %v5802_v45 = vld [vmem:[%s5721_s29 + $0x78] sm:$0xff]  ;;  %v5809_v51 = vld [vmem:[%s5721_s29 + $0x70] sm:$0xff] }
  0x2d   : > { %669 = vperm.xlu1 %4911, %v4787_v33   ;;  %v5757_v54 = vpack.c.b16 %v378_v52, %v378_v52  ;;  %v5764_v58 = vadd.s32 16, %v4797_v55  ;;  %v4805_v5 = vfloor.f32 %v526_v1  ;;  %vm4813_vm12 = vcmp.lt.s32.totalorder %v528_v61, 0 }
  0x2e   : > { %v4816_v11 = vsel %vm4813_vm12, %v4814_v0, %v4815_v3  ;;  %v8297_v12 = vmov 0   ;;  %v4809_v15 = vceil.f32 %v527_v10  ;;  %v4810_v16 = vfloor.f32 %v527_v10 }
  0x2f   : > { %502 = vrot.lane.b32.xlu0 %v5757_v54, %s5600_s14  ;;  %v4806_v6 = vsel %vm4803_vm11, %v4804_v4, %v4805_v5  ;;  %vm4808_vm13 = vcmp.lt.s32.totalorder %v527_v10, 0  ;;  %v454_v18 = vpack.c.bf16 %v448_v8, %v447_v7  ;;  %v4817_v21 = vcvt.f32.s32 %v4816_v11  ;;  %v4681_v8 = vld [vmem:[%s8289_s3] sm:$0xff] }
  0x30   : > { %675 = vperm.xlu2 %4912, %v5764_v58   ;;  %v4807_v9 = vcvt.f32.s32 %v4806_v6  ;;  %v4811_v20 = vsel %vm4808_vm13, %v4809_v15, %v4810_v16  ;;  %v4819_v24 = vceil.f32 %v529_v17  ;;  %v4820_v25 = vfloor.f32 %v529_v17  ;;  %397 = vmatpush.bf16.msra.mxu0 %v4681_v8 }
  0x31   : > { %v4812_v23 = vcvt.f32.s32 %v4811_v20  ;;  %vm4818_vm14 = vcmp.lt.s32.totalorder %v529_v17, 0  ;;  %v5779_v27 = vadd.s32 32, %v4817_v21  ;;  %v4829_v22 = vceil.f32 %v531_v38 }
  0x32   : > { %4390 = vmatmul.msk.bf16.gmra.mxu3 %vm456_vm1, %v453_v50  ;;  %v554_v19 = vadd.s32 16, %v4807_v9  ;;  %v4821_v28 = vsel %vm4818_vm14, %v4819_v24, %v4820_v25  ;;  %vm4828_vm0 = vcmp.lt.s32.totalorder %v531_v38, 0  ;;  %v4840_v41 = vfloor.f32 %v533_v39 }
  0x33   : > { %v555_v26 = vadd.s32 16, %v4812_v23  ;;  %v4822_v13 = vcvt.f32.s32 %v4821_v28  ;;  %vm4838_vm2 = vcmp.lt.s32.totalorder %v533_v39, 0  ;;  %v4834_v43 = vceil.f32 %v532_v42 }
  0x34   : > { %v4835_v44 = vfloor.f32 %v532_v42  ;;  %vm4833_vm3 = vcmp.lt.s32.totalorder %v532_v42, 0  ;;  %v4849_v47 = vceil.f32 %v5802_v45  ;;  %v4850_v48 = vfloor.f32 %v5802_v45 }
  0x35   : > { %678 = vperm.xlu1 %4911, %v5759_v56   ;;  %v5786_v30 = vadd.s32 32, %v4822_v13  ;;  %vm4848_vm4 = vcmp.lt.s32.totalorder %v5802_v45, 0  ;;  %v4845_v57 = vfloor.f32 %v5809_v51  ;;  %vm4843_vm5 = vcmp.lt.s32.totalorder %v5809_v51, 0 }
  0x36   : > { %v4851_v50 = vsel %vm4848_vm4, %v4849_v47, %v4850_v48  ;;  %v4836_v52 = vsel %vm4833_vm3, %v4834_v43, %v4835_v44  ;;  %vm386_vm9 = vcmask 130048   ;;  %v8294_v44 = vmov 0.0  }
  0x37   : > { %663 = vperm.xlu0 %4910, %v4777_v63   ;;  %v4852_v53 = vcvt.f32.s32 %v4851_v50  ;;  %4378 = vmatmul.msk.bf16.vlgmr.msra.gmra.mxu0 %vm386_vm9, %v5757_v54  ;;  %v5143_v54 = vld [vmem:[%s8290_s4 + $0x10] ss:$0 sm:$0xff]  ;;  %vm8345_vm11 = vcmask 523264  }
  0x38   : > { %4913 = vset.pattern.permute.xlu2 %v8297_v12 }
  0x39   : > { %567 = vperm.xlu2 %4913, %v4777_v63   ;;  %v563_v59 = vadd.s32 48, %v4852_v53 }
  0x3d   : > { %4914 = vset.pattern.permute.xlu1 %v8297_v12 }
  0x3e   : > { %570 = vperm.xlu1 %4914, %v4782_v14   ;;  %v530_v14 = vld [vmem:[%s5721_s29 + $0x50] sm:$0xff] }
  0x3f   : > { %681 = vperm.xlu0 %4910, %v554_v19   ;;  %v4824_v29 = vceil.f32 %v530_v14  ;;  %vm4823_vm15 = vcmp.lt.s32.totalorder %v530_v14, 0  ;;  %v4825_v31 = vfloor.f32 %v530_v14 }
  0x41   : > { %4915 = vset.pattern.permute.xlu2 %v5599_v2  ;;  %v4826_v35 = vsel %vm4823_vm15, %v4824_v29, %v4825_v31 }
  0x42   : > { %4391 = vmatmul.msk.bf16.gmra.mxu3 %vm456_vm1, %v454_v18  ;;  %684 = vperm.xlu2 %4915, %v555_v26   ;;  %v4827_v36 = vcvt.f32.s32 %v4826_v35  ;;  %v8296_v35 = vlaneseq }
  0x44   : > { %v558_v37 = vadd.s32 32, %v4827_v36 }
  0x46   : > { %4917 = vset.pattern.permute.xlu1 %v5599_v2 }
  0x47   : > { %687 = vperm.xlu1 %4917, %v5779_v27   ;;  %4916 = vset.pattern.permute.xlu0 %v8297_v12 }
  0x48   : > { %573 = vperm.xlu0 %4916, %v4787_v33   ;;  %v4830_v33 = vfloor.f32 %v531_v38 }
  0x4a   : > { %4918 = vset.pattern.permute.xlu2 %v8297_v12  ;;  %v4831_v40 = vsel %vm4828_vm0, %v4829_v22, %v4830_v33  ;;  %v5879_v22 = vand.u32 127, %v8296_v35 }
  0x4b   : > { %576 = vperm.xlu2 %4918, %v4792_v34   ;;  %v4832_v32 = vcvt.f32.s32 %v4831_v40  ;;  %v4839_v34 = vceil.f32 %v533_v39 }
  0x4c   : > { %8369 = vst [vmem:[#allocation8_spill] sm:$0xff] %v5879_v22 }
  0x4d   : > { %v559_v46 = vadd.s32 32, %v4832_v32  ;;  %v4841_v49 = vsel %vm4838_vm2, %v4839_v34, %v4840_v41 }
  0x4e   : > { %v4842_v55 = vcvt.f32.s32 %v4841_v49 }
  0x4f   : > { %690 = vperm.xlu1 %4917, %v5786_v30  }
  0x50   : > { %4919 = vset.pattern.permute.xlu0 %v5599_v2  ;;  %v561_v60 = vadd.s32 48, %v4842_v55 }
  0x51   : > { %693 = vperm.xlu0 %4919, %v558_v37  }
  0x53   : > { %579 = vperm.xlu2 %4918, %v5764_v58   ;;  %v4837_v58 = vcvt.f32.s32 %v4836_v52 }
  0x55   : > { %v560_v62 = vadd.s32 48, %v4837_v58 }
  0x57   : > { %4920 = vset.pattern.permute.xlu1 %v8297_v12 }
  0x58   : > { %582 = vperm.xlu1 %4920, %v5759_v56   ;;  %v4844_v56 = vceil.f32 %v5809_v51 }
  0x59   : > { %4922 = vset.pattern.permute.xlu0 %v8297_v12 }
  0x5a   : > { %588 = vperm.xlu0 %4922, %v555_v26   ;;  %v4846_v61 = vsel %vm4843_vm5, %v4844_v56, %v4845_v57 }
  0x5b   : > { %4921 = vset.pattern.permute.xlu2 %v5599_v2  ;;  %v4847_v63 = vcvt.f32.s32 %v4846_v61 }
  0x5c   : > { %696 = vperm.xlu2 %4921, %v559_v46  }
  0x5d   : > { %v562_v0 = vadd.s32 48, %v4847_v63 }
  0x60   : > { %585 = vperm.xlu1 %4920, %v554_v19  }
  0x62   : > { %4925 = vset.pattern.permute.xlu0 %v5599_v2 }
  0x63   : > { %708 = vperm.xlu0 %4925, %v563_v59  }
  0x64   : > { %699 = vperm.xlu2 %4921, %v560_v62  }
  0x68   : > { %4923 = vset.pattern.permute.xlu1 %v5599_v2 }
  0x69   : > { %702 = vperm.xlu1 %4923, %v561_v60  }
  0x6b   : > { %4927 = vset.pattern.permute.xlu0 %v8297_v12 }
  0x6c   : > { %609 = vperm.xlu0 %4927, %v562_v0   ;;  %4924 = vset.pattern.permute.xlu2 %v8297_v12 }
  0x6d   : > { %591 = vperm.xlu2 %4924, %v5779_v27  }
  0x71   : > { %705 = vperm.xlu1 %4923, %v562_v0  }
  0x75   : > { %594 = vperm.xlu2 %4924, %v5786_v30  }
  0x79   : > { %4926 = vset.pattern.permute.xlu1 %v8297_v12  ;;  %v4682_v12 = vld [vmem:[%s8289_s3 + $0x8] sm:$0xff] }
  0x7a   : > { %597 = vperm.xlu1 %4926, %v558_v37  }
  0x7d   : > { %600 = vperm.xlu2 %4924, %v559_v46  }
  0x82   : > { %603 = vperm.xlu1 %4926, %v560_v62   ;;  %v5822_v2 = vpop.permute.xlu2 %672 }
  0x83   : > { %vm713_vm0 = vcmp.eq.s32.totalorder %v5822_v2, %v5879_v22 }
  0x84   : > { %v5952_v61 = vsel %vm713_vm0, 1.0, %v8294_v44 }
  0x85   : > { %606 = vperm.xlu2 %4924, %v561_v60  }
  0x8a   : > { %612 = vperm.xlu1 %4926, %v563_v59   ;;  %v5824_v1 = vpop.permute.xlu2 %675 }
  0x8b   : > { %vm714_vm9 = vcmp.eq.s32.totalorder %v5824_v1, %v5879_v22 }
  0x8c   : > { %v5986_v1 = vsel %vm714_vm9, 1.0, %v8294_v44 }
  0x93   : > { %v5828_v4 = vpop.permute.xlu2 %567 }
  0x94   : > { %vm614_vm10 = vcmp.eq.s32.totalorder %v5828_v4, %v5879_v22 }
  0x95   : > { %v5908_v47 = vsel %vm614_vm10, 1.0, %v8294_v44 }
  0x97   : > { %v5826_v3 = vpop.permute.xlu1 %666 }
  0x98   : > { %vm711_vm12 = vcmp.eq.s32.totalorder %v5826_v3, %v5879_v22 }
  0x99   : > { %v5923_v50 = vsel %vm711_vm12, 1.0, %v8294_v44 }
  0x9c   : > { %v5838_v10 = vpop.permute.xlu2 %684 }
  0x9f   : > { %v5830_v5 = vpop.permute.xlu1 %669 }
  0xa0   : > { %vm712_vm14 = vcmp.eq.s32.totalorder %v5830_v5, %v5879_v22 }
  0xa1   : > { %v503_v7 = vpop.permute.xlu0 %502  ;;  %v5941_v58 = vsel %vm712_vm14, 1.0, %v8294_v44 }
  0xa2   : > { %4392 = vmatmul.msk.bf16.vlgmr.msra.gmra.mxu3 %vm456_vm1, %v503_v7 }
  0xa5   : > { %v487_v6 = vpop.f32.mrf.mxu3  ;;  %v5843_v16 = vpop.permute.xlu2 %576 }
  0xa6   : > { %v5885_v40 = vadd.f32 %v5143_v54, %v487_v6  ;;  %vm617_vm2 = vcmp.eq.s32.totalorder %v5843_v16, %v5879_v22 }
  0xa7   : > { %v5835_v9 = vpop.permute.xlu1 %678  ;;  %v482_v28 = vpop.f32.mrf.mxu2  ;;  %v5955_v63 = vsel %vm617_vm2, 1.0, %v8294_v44 }
  0xa8   : > { %v5900_v43 = vadd.f32 %v5143_v54, %v482_v28 }
  0xa9   : > { %v664_v19 = vpop.permute.xlu0 %663 }
  0xaa   : > { %vm710_vm1 = vcmp.eq.s32.totalorder %v664_v19, %v5879_v22 }
  0xab   : > { %v5903_v46 = vsel %vm710_vm1, 1.0, %v8294_v44 }
  0xad   : > { %v489_v11 = vpop.f32.mrf.mxu3  ;;  %v5847_v20 = vpop.permute.xlu2 %579 }
  0xae   : > { %v5881_v33 = vadd.f32 %v5143_v54, %v489_v11  ;;  %vm618_vm1 = vcmp.eq.s32.totalorder %v5847_v20, %v5879_v22 }
  0xaf   : > { %v484_v39 = vpop.f32.mrf.mxu2  ;;  %v5998_v11 = vsel %vm618_vm1, 1.0, %v8294_v44 }
  0xb0   : > { %v5841_v15 = vpop.permute.xlu1 %570  ;;  %v5892_v34 = vadd.f32 %v5143_v54, %v484_v39 }
  0xb1   : > { %v5851_v24 = vpop.permute.xlu0 %681  ;;  %vm615_vm13 = vcmp.eq.s32.totalorder %v5841_v15, %v5879_v22 }
  0xb2   : > { %v5928_v53 = vsel %vm615_vm13, 1.0, %v8294_v44 }
  0xb5   : > { %v492_v17 = vpop.f32.mrf.mxu3 }
  0xb6   : > { %v5853_v26 = vpop.permute.xlu2 %696  ;;  %v5874_v38 = vadd.f32 %v5143_v54, %v492_v17 }
  0xb7   : > { %vm721_vm13 = vcmp.eq.s32.totalorder %v5853_v26, %v5879_v22 }
  0xb9   : > { %v5845_v18 = vpop.permute.xlu1 %687 }
  0xba   : > { %v574_v29 = vpop.permute.xlu0 %573 }
  0xbb   : > { %vm616_vm15 = vcmp.eq.s32.totalorder %v574_v29, %v5879_v22 }
  0xbc   : > { %v5938_v57 = vsel %vm616_vm15, 1.0, %v8294_v44 }
  0xbd   : > { %v494_v21 = vpop.f32.mrf.mxu3 }
  0xbe   : > { %v5866_v31 = vpop.permute.xlu2 %699  ;;  %v5868_v36 = vadd.f32 %v5143_v54, %v494_v21  ;;  %v6026_v21 = vsel %vm721_vm13, 1.0, %v8294_v44 }
  0xbf   : > { %vm722_vm14 = vcmp.eq.s32.totalorder %v5866_v31, %v5879_v22  ;;  %8378 = vst [vmem:[#allocation17_spill] sm:$0xff] %v6026_v21 }
  0xc0   : > { %v6010_v17 = vsel %vm722_vm14, 1.0, %v8294_v44  ;;  %vm717_vm14 = vcmp.eq.s32.totalorder %v5838_v10, %v5879_v22 }
  0xc1   : > { %v5849_v23 = vpop.permute.xlu1 %690  ;;  %8376 = vst [vmem:[#allocation15_spill] sm:$0xff] %v6010_v17 }
  0xc2   : > { %vm719_vm9 = vcmp.eq.s32.totalorder %v5849_v23, %v5879_v22 }
  0xc3   : > { %v5889_v32 = vpop.permute.xlu0 %693 }
  0xc5   : > { %v497_v25 = vpop.f32.mrf.mxu3 }
  0xc6   : > { %v5862_v30 = vadd.f32 %v5143_v54, %v497_v25 }
  0xc7   : > { %v5896_v41 = vpop.permute.xlu2 %591 }
  0xc8   : > { %vm622_vm13 = vcmp.eq.s32.totalorder %v5896_v41, %v5879_v22  ;;  %v6088_v41 = vsel %vm717_vm14, 1.0, %v8294_v44 }
  0xc9   : > { %v6081_v10 = vsel %vm622_vm13, 1.0, %v8294_v44  ;;  %8388 = vst [vmem:[#allocation27_spill] sm:$0xff] %v6088_v41 }
  0xca   : > { %v5855_v27 = vpop.permute.xlu1 %582  ;;  %8387 = vst [vmem:[#allocation26_spill] sm:$0xff] %v6081_v10 }
  0xcc   : > { %v5918_v48 = vpop.permute.xlu0 %588 }
  0xcd   : > { %v499_v13 = vpop.f32.mrf.mxu3 }
  0xce   : > { %v5860_v14 = vadd.f32 %v5143_v54, %v499_v13  ;;  %v6052_v13 = vsel %vm719_vm9, 1.0, %v8294_v44 }
  0xcf   : > { %v5925_v52 = vpop.permute.xlu2 %594  ;;  %8382 = vst [vmem:[#allocation21_spill] sm:$0xff] %v6052_v13 }
  0xd0   : > { %863 = vmatpush.msra.mxu0 %v5860_v14  ;;  %976 = vmatpush.msra.mxu3 %v5860_v14  ;;  %vm623_vm1 = vcmp.eq.s32.totalorder %v5925_v52, %v5879_v22 }
  0xd1   : > { %v6055_v29 = vsel %vm623_vm1, 1.0, %v8294_v44 }
  0xd2   : > { %864 = vmatpush.msra.mxu0 %v5862_v30  ;;  %977 = vmatpush.msra.mxu3 %v5862_v30  ;;  %v5872_v37 = vpop.permute.xlu1 %585  ;;  %8383 = vst [vmem:[#allocation22_spill] sm:$0xff] %v6055_v29 }
  0xd4   : > { %865 = vmatpush.msra.mxu0 %v5868_v36  ;;  %978 = vmatpush.msra.mxu3 %v5868_v36 }
  0xd5   : > { %v709_v56 = vpop.permute.xlu0 %708 }
  0xd6   : > { %979 = vmatpush.msra.mxu3 %v5874_v38  ;;  %866 = vmatpush.msra.mxu0 %v5874_v38  ;;  %vm725_vm4 = vcmp.eq.s32.totalorder %v709_v56, %v5879_v22  ;;  %v761_v56 = vadd.f32 %v5952_v61, %v5955_v63 }
  0xd7   : > { %v601_v59 = vpop.permute.xlu2 %600  ;;  %v5976_v3 = vsel %vm725_vm4, 1.0, %v8294_v44 }
  0xd8   : > { %867 = vmatpush.msra.mxu0 %v5881_v33  ;;  %980 = vmatpush.msra.mxu3 %v5881_v33  ;;  %8371 = vst [vmem:[#allocation10_spill] sm:$0xff] %v5976_v3  ;;  %vm625_vm2 = vcmp.eq.s32.totalorder %v601_v59, %v5879_v22  ;;  %v760_v59 = vadd.f32 %v5941_v58, %v5938_v57 }
  0xd9   : > { %v6029_v25 = vsel %vm625_vm2, 1.0, %v8294_v44  ;;  %vm716_vm2 = vcmp.eq.s32.totalorder %v5851_v24, %v5879_v22 }
  0xda   : > { %868 = vmatpush.msra.mxu0 %v5885_v40  ;;  %981 = vmatpush.msra.mxu3 %v5885_v40  ;;  %8379 = vst [vmem:[#allocation18_spill] sm:$0xff] %v6029_v25  ;;  %v769_v23 = vadd.f32 %v6026_v21, %v6029_v25  ;;  %v6105_v52 = vsel %vm716_vm2, 1.0, %v8294_v44 }
  0xdb   : > { %v703_v42 = vpop.permute.xlu1 %702  ;;  %8391 = vst [vmem:[#allocation30_spill] sm:$0xff] %v6105_v52 }
  0xdc   : > { %869 = vmatpush.msra.mxu0 %v5892_v34  ;;  %982 = vmatpush.msra.mxu3 %v5892_v34  ;;  %vm723_vm10 = vcmp.eq.s32.totalorder %v703_v42, %v5879_v22 }
  0xdd   : > { %v5989_v6 = vsel %vm723_vm10, 1.0, %v8294_v44  ;;  %vm619_vm10 = vcmp.eq.s32.totalorder %v5855_v27, %v5879_v22 }
  0xde   : > { %983 = vmatpush.msra.mxu3 %v5900_v43  ;;  %870 = vmatpush.msra.mxu0 %v5900_v43  ;;  %v610_v62 = vpop.permute.xlu0 %609  ;;  %8373 = vst [vmem:[#allocation12_spill] sm:$0xff] %v5989_v6 }
  0xdf   : > { %4441 = vmatmul.msk.f32.vlgmr.msra.gmra.mxu3 %vm8345_vm11, %v5903_v46  ;;  %4425 = vmatmul.msk.f32.vlgmr.msra.gmra.mxu0 %vm8345_vm11, %v5908_v47  ;;  %v607_v0 = vpop.permute.xlu2 %606  ;;  %vm628_vm5 = vcmp.eq.s32.totalorder %v610_v62, %v5879_v22  ;;  %v758_v62 = vadd.f32 %v5903_v46, %v5908_v47 }
  0xe0   : > { %vm627_vm12 = vcmp.eq.s32.totalorder %v607_v0, %v5879_v22  ;;  %v5979_v5 = vsel %vm628_vm5, 1.0, %v8294_v44  ;;  %vm715_vm5 = vcmp.eq.s32.totalorder %v5835_v9, %v5879_v22  ;;  %v6075_v9 = vsel %vm619_vm10, 1.0, %v8294_v44 }
  0xe1   : > { %8372 = vst [vmem:[#allocation11_spill] sm:$0xff] %v5979_v5  ;;  %v5995_v8 = vsel %vm627_vm12, 1.0, %v8294_v44  ;;  %vm718_vm12 = vcmp.eq.s32.totalorder %v5845_v18, %v5879_v22  ;;  %v6061_v31 = vsel %vm715_vm5, 1.0, %v8294_v44 }
  0xe2   : > { %8375 = vst [vmem:[#allocation14_spill] sm:$0xff] %v5995_v8  ;;  %v771_v20 = vadd.f32 %v5989_v6, %v5995_v8  ;;  %v6078_v39 = vsel %vm718_vm12, 1.0, %v8294_v44 }
  0xe3   : > { %v706_v49 = vpop.permute.xlu1 %705  ;;  %8384 = vst [vmem:[#allocation23_spill] sm:$0xff] %v6061_v31  ;;  %v766_v42 = vadd.f32 %v6078_v39, %v6081_v10 }
  0xe4   : > { %vm724_vm3 = vcmp.eq.s32.totalorder %v706_v49, %v5879_v22  ;;  %8385 = vst [vmem:[#allocation24_spill] sm:$0xff] %v6075_v9 }
  0xe5   : > { %v5973_v2 = vsel %vm724_vm3, 1.0, %v8294_v44  ;;  %vm720_vm3 = vcmp.eq.s32.totalorder %v5889_v32, %v5879_v22  ;;  %8386 = vst [vmem:[#allocation25_spill] sm:$0xff] %v6078_v39  ;;  %v767_v32 = vadd.f32 %v6052_v13, %v6055_v29 }
  0xe6   : > { %8370 = vst [vmem:[#allocation9_spill] sm:$0xff] %v5973_v2  ;;  %v772_v16 = vadd.f32 %v5973_v2, %v5979_v5  ;;  %v6040_v26 = vsel %vm720_vm3, 1.0, %v8294_v44  ;;  %vm8344_vm3 = vcmask 261120  }
  0xe7   : > { %4442 = vmatmul.msk.f32.gmra.mxu3 %vm8345_vm11, %v5923_v50  ;;  %4426 = vmatmul.msk.f32.gmra.mxu0 %vm8345_vm11, %v5928_v53  ;;  %8380 = vst [vmem:[#allocation19_spill] sm:$0xff] %v6040_v26 }
  0xec   : > { %v598_v55 = vpop.permute.xlu1 %597 }
  0xed   : > { %vm624_vm4 = vcmp.eq.s32.totalorder %v598_v55, %v5879_v22  ;;  %v762_v55 = vadd.f32 %v5986_v1, %v5998_v11 }
  0xee   : > { %v6043_v28 = vsel %vm624_vm4, 1.0, %v8294_v44 }
  0xef   : > { %4443 = vmatmul.msk.f32.gmra.mxu3 %vm8345_vm11, %v5941_v58  ;;  %4427 = vmatmul.msk.f32.gmra.mxu0 %vm8345_vm11, %v5938_v57  ;;  %8381 = vst [vmem:[#allocation20_spill] sm:$0xff] %v6043_v28  ;;  %v768_v18 = vadd.f32 %v6040_v26, %v6043_v28 }
  0xf4   : > { %v604_v60 = vpop.permute.xlu1 %603 }
  0xf5   : > { %vm626_vm15 = vcmp.eq.s32.totalorder %v604_v60, %v5879_v22  ;;  %v759_v60 = vadd.f32 %v5923_v50, %v5928_v53 }
  0xf6   : > { %v6013_v19 = vsel %vm626_vm15, 1.0, %v8294_v44  ;;  %vm621_vm15 = vcmp.eq.s32.totalorder %v5918_v48, %v5879_v22 }
  0xf7   : > { %4444 = vmatmul.msk.f32.gmra.mxu3 %vm8345_vm11, %v5952_v61  ;;  %4428 = vmatmul.msk.f32.gmra.mxu0 %vm8345_vm11, %v5955_v63  ;;  %8377 = vst [vmem:[#allocation16_spill] sm:$0xff] %v6013_v19  ;;  %v770_v54 = vadd.f32 %v6010_v17, %v6013_v19  ;;  %v6091_v27 = vsel %vm621_vm15, 1.0, %v8294_v44 }
  0xf8   : > { %8389 = vst [vmem:[#allocation28_spill] sm:$0xff] %v6091_v27  ;;  %v765_v48 = vadd.f32 %v6088_v41, %v6091_v27 }
  0xfc   : > { %v613_v4 = vpop.permute.xlu1 %612 }
  0xfd   : > { %vm629_vm0 = vcmp.eq.s32.totalorder %v613_v4, %v5879_v22 }
  0xfe   : > { %v5992_v7 = vsel %vm629_vm0, 1.0, %v8294_v44  ;;  %vm620_vm0 = vcmp.eq.s32.totalorder %v5872_v37, %v5879_v22  ;;  %v763_v37 = vadd.f32 %v6061_v31, %v6075_v9 }
  0xff   : > { %8374 = vst [vmem:[#allocation13_spill] sm:$0xff] %v5992_v7  ;;  %4445 = vmatmul.msk.f32.gmra.mxu3 %vm8345_vm11, %v5986_v1  ;;  %v773_v15 = vadd.f32 %v5976_v3, %v5992_v7  ;;  %4429 = vmatmul.msk.f32.gmra.mxu0 %vm8345_vm11, %v5998_v11  ;;  %v6102_v49 = vsel %vm620_vm0, 1.0, %v8294_v44 }
 0x100   : > { %8390 = vst [vmem:[#allocation29_spill] sm:$0xff] %v6102_v49  ;;  %v764_v24 = vadd.f32 %v6105_v52, %v6102_v49 }
 0x101   : > { %4712 = vmatpush.lsf.msrb.mxu0 %v773_v15  ;;  %4748 = vmatpush.lsf.msrb.mxu3 %v773_v15  ;;  %v399_v15 = vpop.f32.mrf.mxu0 }
 0x103   : > { %4713 = vmatpush.lsf.msrb.mxu0 %v772_v16  ;;  %4749 = vmatpush.lsf.msrb.mxu3 %v772_v16 }
 0x105   : > { %4714 = vmatpush.lsf.msrb.mxu0 %v771_v20  ;;  %4750 = vmatpush.lsf.msrb.mxu3 %v771_v20 }
 0x107   : > { %4446 = vmatmul.msk.f32.gmra.mxu3 %vm8345_vm11, %v6061_v31  ;;  %4715 = vmatpush.lsf.msrb.mxu0 %v770_v54 }
 0x108   : > { %4751 = vmatpush.lsf.msrb.mxu3 %v770_v54  ;;  %4430 = vmatmul.msk.f32.gmra.mxu0 %vm8345_vm11, %v6075_v9 }
 0x109   : > { %4716 = vmatpush.lsf.msrb.mxu0 %v769_v23  ;;  %v401_v16 = vpop.f32.mrf.mxu0 }
 0x10a   : > { %4752 = vmatpush.lsf.msrb.mxu3 %v769_v23 }
 0x10b   : > { %4717 = vmatpush.lsf.msrb.mxu0 %v768_v18 }
 0x10c   : > { %4753 = vmatpush.lsf.msrb.mxu3 %v768_v18 }
 0x10d   : > { %4718 = vmatpush.lsf.msrb.mxu0 %v767_v32 }
 0x10e   : > { %4754 = vmatpush.lsf.msrb.mxu3 %v767_v32 }
 0x10f   : > { %4447 = vmatmul.msk.f32.gmra.mxu3 %vm8345_vm11, %v6105_v52  ;;  %4719 = vmatpush.lsf.msrb.mxu0 %v766_v42 }
 0x110   : > { %4755 = vmatpush.lsf.msrb.mxu3 %v766_v42  ;;  %4431 = vmatmul.msk.f32.gmra.mxu0 %vm8345_vm11, %v6102_v49 }
 0x111   : > { %4720 = vmatpush.lsf.msrb.mxu0 %v765_v48 }
 0x112   : > { %4756 = vmatpush.lsf.msrb.mxu3 %v765_v48 }
 0x113   : > { %4721 = vmatpush.lsf.msrb.mxu0 %v764_v24 }
 0x114   : > { %4757 = vmatpush.lsf.msrb.mxu3 %v764_v24 }
 0x115   : > { %4722 = vmatpush.lsf.msrb.mxu0 %v763_v37 }
 0x116   : > { %4758 = vmatpush.lsf.msrb.mxu3 %v763_v37 }
 0x117   : > { %4448 = vmatmul.msk.f32.gmra.mxu3 %vm8345_vm11, %v6088_v41  ;;  %4723 = vmatpush.lsf.msrb.mxu0 %v762_v55 }
 0x118   : > { %4759 = vmatpush.lsf.msrb.mxu3 %v762_v55  ;;  %4432 = vmatmul.msk.f32.gmra.mxu0 %vm8345_vm11, %v6091_v27 }
 0x119   : > { %4724 = vmatpush.lsf.msrb.mxu0 %v761_v56 }
 0x11a   : > { %4760 = vmatpush.lsf.msrb.mxu3 %v761_v56 }
 0x11b   : > { %4725 = vmatpush.lsf.msrb.mxu0 %v760_v59 }
 0x11c   : > { %4761 = vmatpush.lsf.msrb.mxu3 %v760_v59 }
 0x11d   : > { %4726 = vmatpush.lsf.msrb.mxu0 %v759_v60 }
 0x11e   : > { %4762 = vmatpush.lsf.msrb.mxu3 %v759_v60 }
 0x11f   : > { %4449 = vmatmul.msk.f32.gmra.mxu3 %vm8345_vm11, %v6078_v39  ;;  %4727 = vmatpush.lsf.msrb.mxu0 %v758_v62 }
 0x120   : > { %4763 = vmatpush.lsf.msrb.mxu3 %v758_v62  ;;  %4433 = vmatmul.msk.f32.gmra.mxu0 %vm8345_vm11, %v6081_v10 }
 0x125   : > { %v6137_v0 = vpop.f32.mrf.mxu3 }
 0x126   : > { %4764 = vllmr.8.mxu3  ;;  %8392 = vst [vmem:[#allocation31_spill] sm:$0xff] %v6137_v0 }
 0x127   : > { %4728 = vllmr.8.mxu0  ;;  %4450 = vmatmul.msk.f32.gmra.mxu3 %vm8345_vm11, %v6052_v13 }
 0x128   : > { %4434 = vmatmul.msk.f32.gmra.mxu0 %vm8345_vm11, %v6055_v29 }
 0x12d   : > { %v518_v4 = vpop.f32.mrf.mxu3 }
 0x12e   : > { %v5144_v4 = vld [vmem:[%s8290_s4] ss:$0 sm:$0xff] }
 0x12f   : > { %4451 = vmatmul.msk.f32.gmra.mxu3 %vm8345_vm11, %v6040_v26  ;;  %v400_v44 = vadd.f32 %v5144_v4, %v399_v15 }
 0x130   : > { %4435 = vmatmul.msk.f32.gmra.mxu0 %vm8345_vm11, %v6043_v28 }
 0x131   : > { %5154 = vtanh.f32 %v400_v44  ;;  %v4687_v44 = vld [vmem:[%s8289_s3 + $0x38] sm:$0xff] }
 0x137   : > { %4452 = vmatmul.msk.f32.gmra.mxu3 %vm8345_vm11, %v6026_v21  ;;  %v5155_v0 = vpop.eup %5154 }
 0x138   : > { %4436 = vmatmul.msk.f32.gmra.mxu0 %vm8345_vm11, %v6029_v25  ;;  %v409_v4 = vpack.c.bf16 %v5155_v0, %v5155_v0 }
 0x13f   : > { %4453 = vmatmul.msk.f32.gmra.mxu3 %vm8345_vm11, %v6010_v17 }
 0x140   : > { %4437 = vmatmul.msk.f32.gmra.mxu0 %vm8345_vm11, %v6013_v19 }
 0x147   : > { %4454 = vmatmul.msk.f32.gmra.mxu3 %vm8345_vm11, %v5989_v6 }
 0x148   : > { %4438 = vmatmul.msk.f32.gmra.mxu0 %vm8345_vm11, %v5995_v8 }
 0x14f   : > { %4455 = vmatmul.msk.f32.gmra.mxu3 %vm8345_vm11, %v5973_v2 }
 0x150   : > { %4439 = vmatmul.msk.f32.gmra.mxu0 %vm8345_vm11, %v5979_v5 }
 0x157   : > { %4456 = vmatmul.msk.f32.gmra.mxu3 %vm8345_vm11, %v5976_v3 }
 0x158   : > { %4440 = vmatmul.msk.f32.gmra.mxu0 %vm8345_vm11, %v5992_v7  ;;  %v4684_v7 = vld [vmem:[%s8289_s3 + $0x20] sm:$0xff] }
 0x15c   : > { %v6163_v20 = vpop.f32.mrf.mxu0 }
 0x162   : > { %v6165_v54 = vpop.f32.mrf.mxu3 }
 0x164   : > { %v6167_v23 = vpop.f32.mrf.mxu0 }
 0x16a   : > { %v6169_v18 = vpop.f32.mrf.mxu3 }
 0x16b   : > { %v4928_v32 = vpack.i.bf16 %v6169_v18, %v6165_v54 }
 0x16c   : > { %v6173_v42 = vpop.f32.mrf.mxu0 }
 0x16d   : > { %4929 = vrot.lane.b32.xlu2 %v4928_v32, %s5603_s20 }
 0x172   : > { %v6176_v48 = vpop.f32.mrf.mxu3 }
 0x174   : > { %v6178_v24 = vpop.f32.mrf.mxu0 }
 0x17a   : > { %v6180_v37 = vpop.f32.mrf.mxu3 }
 0x17b   : > { %v4933_v55 = vpack.i.bf16 %v6180_v37, %v6176_v48 }
 0x17c   : > { %v6184_v56 = vpop.f32.mrf.mxu0 }
 0x17d   : > { %4934 = vrot.lane.b32.xlu1 %v4933_v55, %s5603_s20  ;;  %v4683_v55 = vld [vmem:[%s8289_s3 + $0x10] sm:$0xff] }
 0x17e   : > { %433 = vmatpush.bf16.msra.mxu1 %v4683_v55 }
 0x182   : > { %v6187_v59 = vpop.f32.mrf.mxu3  ;;  %434 = vmatpush.bf16.msra.mxu1 %v4682_v12  ;;  %v4686_v12 = vld [vmem:[%s8289_s3 + $0x30] sm:$0xff] }
 0x185   : > { %v6189_v60 = vpop.f32.mrf.mxu0  ;;  %4387 = vmatmul.msk.bf16.vlgmr.msra.gmra.mxu1 %vm8344_vm3, %v409_v4 }
 0x186   : > { %1295 = vmatpush.bf16.msrb.mxu1 %v4687_v44 }
 0x18a   : > { %v6191_v62 = vpop.f32.mrf.mxu3  ;;  %1296 = vmatpush.bf16.msrb.mxu1 %v4686_v12 }
 0x18b   : > { %v4938_v16 = vpack.i.bf16 %v6191_v62, %v6187_v59 }
 0x18d   : > { %4939 = vrot.lane.b32.xlu2 %v4938_v16, %s5603_s20  ;;  %v6199_v32 = vpop.f32.mrf.mxu0 }
 0x192   : > { %v6201_v35 = vpop.f32.mrf.mxu3 }
 0x195   : > { %v6209_v22 = vpop.f32.mrf.mxu0 }
 0x196   : > { %v4983_v13 = vpack.i.bf16 %v6209_v22, %v6199_v32 }
 0x19a   : > { %v6211_v16 = vpop.f32.mrf.mxu3 }
 0x19b   : > { %v4943_v15 = vpack.i.bf16 %v6211_v16, %v6201_v35 }
 0x19d   : > { %4944 = vrot.lane.b32.xlu0 %v4943_v15, %s5603_s20  ;;  %v6216_v3 = vpop.f32.mrf.mxu0  ;;  %v4685_v15 = vld [vmem:[%s8289_s3 + $0x28] sm:$0xff] }
 0x19e   : > { %1297 = vmatpush.bf16.msrb.mxu1 %v4685_v15 }
 0x1a2   : > { %v6225_v55 = vpop.f32.mrf.mxu3  ;;  %1298 = vmatpush.bf16.msrb.mxu1 %v4684_v7  ;;  %v4968_v7 = vpack.i.bf16 %v6167_v23, %v6163_v20 }
 0x1a5   : > { %v6227_v0 = vpop.f32.mrf.mxu0 }
 0x1aa   : > { %v6235_v4 = vpop.f32.mrf.mxu3 }
 0x1ab   : > { %v4948_v44 = vpack.i.bf16 %v6235_v4, %v6225_v55 }
 0x1ad   : > { %4949 = vrot.lane.b32.xlu1 %v4948_v44, %s5603_s20  ;;  %v6240_v12 = vpop.f32.mrf.mxu0 }
 0x1b2   : > { %v6242_v2 = vpop.f32.mrf.mxu3 }
 0x1b5   : > { %v6244_v5 = vpop.f32.mrf.mxu0 }
 0x1ba   : > { %v6246_v6 = vpop.f32.mrf.mxu3 }
 0x1bb   : > { %v4953_v15 = vpack.i.bf16 %v6246_v6, %v6242_v2 }
 0x1bd   : > { %4954 = vrot.lane.b32.xlu2 %v4953_v15, %s5603_s20  ;;  %v6251_v8 = vpop.f32.mrf.mxu0 }
 0x1c2   : > { %v6253_v17 = vpop.f32.mrf.mxu3 }
 0x1c5   : > { %4969 = vrot.lane.b32.xlu2 %v4968_v7, %s5603_s20  ;;  %v6264_v15 = vpop.f32.mrf.mxu0 }
 0x1c7   : > { %v4930_v44 = vpop.permute.xlu2 %4929 }
 0x1c8   : > { %v4932_v19 = vunpack.i.h.bf16 %v4930_v44  ;;  %v4931_v21 = vunpack.i.l.bf16 %v4930_v44 }
 0x1ca   : > { %v1161_v25 = vsel %vm8344_vm3, %v6163_v20, %v4931_v21  ;;  %v1162_v26 = vsel %vm8344_vm3, %v6167_v23, %v4932_v19  ;;  %v6262_v28 = vpop.f32.mrf.mxu3  ;;  %v4998_v19 = vpack.i.bf16 %v6264_v15, %v6251_v8  ;;  %v4973_v20 = vpack.i.bf16 %v6178_v24, %v6173_v42 }
 0x1cb   : > { %v1202_v29 = vpack.c.bf16 %v1162_v26, %v1161_v25  ;;  %v4958_v7 = vpack.i.bf16 %v6262_v28, %v6253_v17  ;;  %v4988_v25 = vpack.i.bf16 %v6227_v0, %v6216_v3 }
 0x1cd   : > { %4959 = vrot.lane.b32.xlu0 %v4958_v7, %s5603_s20  ;;  %4984 = vrot.lane.b32.xlu2 %v4983_v13, %s5603_s20  ;;  %v6279_v23 = vpop.f32.mrf.mxu0  ;;  %v4978_v7 = vpack.i.bf16 %v6189_v60, %v6184_v56 }
 0x1ce   : > { %4473 = vmatmul.msk.bf16.vlgmr.msrb.gmra.mxu1 %vm8345_vm11, %v1202_v29 }
 0x1d2   : > { %v6275_v21 = vpop.f32.mrf.mxu3 }
 0x1d5   : > { %4974 = vrot.lane.b32.xlu0 %v4973_v20, %s5603_s20  ;;  %4999 = vrot.lane.b32.xlu2 %v4998_v19, %s5603_s20  ;;  %v6291_v29 = vpop.f32.mrf.mxu0  ;;  %v4993_v19 = vpack.i.bf16 %v6244_v5, %v6240_v12 }
 0x1d6   : > { %v5003_v44 = vpack.i.bf16 %v6291_v29, %v6279_v23 }
 0x1da   : > { %v6285_v26 = vpop.f32.mrf.mxu3 }
 0x1db   : > { %v4963_v13 = vpack.i.bf16 %v6285_v26, %v6275_v21 }
 0x1dd   : > { %4964 = vrot.lane.b32.xlu1 %v4963_v13, %s5603_s20  ;;  %4989 = vrot.lane.b32.xlu0 %v4988_v25, %s5603_s20 }
 0x1e5   : > { %4979 = vrot.lane.b32.xlu1 %v4978_v7, %s5603_s20  ;;  %5004 = vrot.lane.b32.xlu0 %v5003_v44, %s5603_s20 }
 0x1e7   : > { %v4940_v7 = vpop.permute.xlu2 %4939 }
 0x1e8   : > { %v4942_v27 = vunpack.i.h.bf16 %v4940_v7  ;;  %v4941_v44 = vunpack.i.l.bf16 %v4940_v7 }
 0x1ea   : > { %v1165_v52 = vsel %vm8344_vm3, %v6184_v56, %v4941_v44 }
 0x1ed   : > { %4994 = vrot.lane.b32.xlu1 %v4993_v19, %s5603_s20  ;;  %v1166_v19 = vsel %vm8344_vm3, %v6189_v60, %v4942_v27 }
 0x1ee   : > { %v1204_v49 = vpack.c.bf16 %v1166_v19, %v1165_v52 }
 0x1ef   : > { %v4935_v20 = vpop.permute.xlu1 %4934 }
 0x1f0   : > { %v4937_v13 = vunpack.i.h.bf16 %v4935_v20  ;;  %v4936_v25 = vunpack.i.l.bf16 %v4935_v20 }
 0x1f2   : > { %v1163_v39 = vsel %vm8344_vm3, %v6173_v42, %v4936_v25  ;;  %v1164_v10 = vsel %vm8344_vm3, %v6178_v24, %v4937_v13 }
 0x1f3   : > { %v1203_v41 = vpack.c.bf16 %v1164_v10, %v1163_v39 }
 0x1f5   : > { %4474 = vmatmul.msk.bf16.gmra.mxu1 %vm8345_vm11, %v1203_v41 }
 0x202   : > { %v6317_v24 = vpop.f32.mrf.mxu1 }
 0x203   : > { %8393 = vst [vmem:[#allocation32_spill] sm:$0xff] %v6317_v24 }
 0x205   : > { %4475 = vmatmul.msk.bf16.gmra.mxu1 %vm8345_vm11, %v1204_v49 }
 0x20a   : > { %v438_v7 = vpop.f32.mrf.mxu1 }
 0x20f   : > { %v4945_v20 = vpop.permute.xlu0 %4944 }
 0x210   : > { %v4947_v42 = vunpack.i.h.bf16 %v4945_v20  ;;  %v4946_v25 = vunpack.i.l.bf16 %v4945_v20 }
 0x212   : > { %v1167_v39 = vsel %vm8344_vm3, %v6199_v32, %v4946_v25  ;;  %v1168_v10 = vsel %vm8344_vm3, %v6209_v22, %v4947_v42 }
 0x213   : > { %v1205_v41 = vpack.c.bf16 %v1168_v10, %v1167_v39 }
 0x215   : > { %4476 = vmatmul.msk.bf16.gmra.mxu1 %vm8345_vm11, %v1205_v41 }
 0x217   : > { %v4955_v32 = vpop.permute.xlu2 %4954 }
 0x218   : > { %v4957_v22 = vunpack.i.h.bf16 %v4955_v32  ;;  %v4956_v44 = vunpack.i.l.bf16 %v4955_v32 }
 0x21a   : > { %v1171_v19 = vsel %vm8344_vm3, %v6240_v12, %v4956_v44  ;;  %v1172_v20 = vsel %vm8344_vm3, %v6244_v5, %v4957_v22 }
 0x21b   : > { %v1207_v42 = vpack.c.bf16 %v1172_v20, %v1171_v19 }
 0x21f   : > { %v4950_v56 = vpop.permute.xlu1 %4949  ;;  %v4970_v44 = vpop.permute.xlu2 %4969 }
 0x220   : > { %v4952_v13 = vunpack.i.h.bf16 %v4950_v56  ;;  %v4951_v27 = vunpack.i.l.bf16 %v4950_v56 }
 0x222   : > { %v1169_v49 = vsel %vm8344_vm3, %v6216_v3, %v4951_v27  ;;  %v1170_v52 = vsel %vm8344_vm3, %v6227_v0, %v4952_v13  ;;  %v4689_v3 = vld [vmem:[%s8289_s3 + $0x48] sm:$0xff]  ;;  %v4688_v0 = vld [vmem:[%s8289_s3 + $0x40] sm:$0xff]  ;;  %v6343_v13 = vld [vmem:[%s8290_s4 + $0x18] ss:$0 sm:$0xff] }
 0x223   : > { %v1206_v60 = vpack.c.bf16 %v1170_v52, %v1169_v49  ;;  %1500 = vmatpush.bf16.msrb.mxu2 %v4689_v3  ;;  %v4971_v3 = vunpack.i.l.bf16 %v4970_v44 }
 0x225   : > { %4477 = vmatmul.msk.bf16.gmra.mxu1 %vm8345_vm11, %v1206_v60 }
 0x227   : > { %1501 = vmatpush.bf16.msrb.mxu2 %v4688_v0 }
 0x235   : > { %4478 = vmatmul.msk.bf16.gmra.mxu1 %vm8345_vm11, %v1207_v42  ;;  %v4972_v42 = vunpack.i.h.bf16 %v4970_v44 }
 0x23f   : > { %v4960_v25 = vpop.permute.xlu0 %4959 }
 0x240   : > { %v4962_v39 = vunpack.i.h.bf16 %v4960_v25  ;;  %v4961_v10 = vunpack.i.l.bf16 %v4960_v25 }
 0x242   : > { %v1173_v12 = vsel %vm8344_vm3, %v6251_v8, %v4961_v10  ;;  %v1174_v5 = vsel %vm8344_vm3, %v6264_v15, %v4962_v39 }
 0x243   : > { %v1208_v41 = vpack.c.bf16 %v1174_v5, %v1173_v12 }
 0x245   : > { %4479 = vmatmul.msk.bf16.gmra.mxu1 %vm8345_vm11, %v1208_v41 }
 0x247   : > { %v4975_v39 = vpop.permute.xlu0 %4974 }
 0x248   : > { %v4977_v10 = vunpack.i.h.bf16 %v4975_v39  ;;  %v4976_v12 = vunpack.i.l.bf16 %v4975_v39 }
 0x24a   : > { %v1179_v5 = vsel %vm8344_vm3, %v6176_v48, %v4976_v12  ;;  %v1180_v41 = vsel %vm8344_vm3, %v6180_v37, %v4977_v10 }
 0x24b   : > { %v1300_v56 = vpop.f32.mrf.mxu1 }
 0x24c   : > { %v1301_v60 = vadd.f32 %v6343_v13, %v1300_v56 }
 0x24e   : > { %5156 = vtanh.f32 %v1301_v60 }
 0x24f   : > { %v4965_v27 = vpop.permute.xlu1 %4964 }
 0x250   : > { %v4967_v49 = vunpack.i.h.bf16 %v4965_v27  ;;  %v4966_v52 = vunpack.i.l.bf16 %v4965_v27  ;;  %v1211_v27 = vpack.c.bf16 %v1180_v41, %v1179_v5  ;;  %v4990_v41 = vpop.permute.xlu0 %4989 }
 0x252   : > { %v1175_v8 = vsel %vm8344_vm3, %v6279_v23, %v4966_v52  ;;  %v1176_v15 = vsel %vm8344_vm3, %v6291_v29, %v4967_v49  ;;  %v1177_v23 = vsel %vm8344_vm3, %v6165_v54, %v4971_v3  ;;  %v1178_v29 = vsel %vm8344_vm3, %v6169_v18, %v4972_v42 }
 0x253   : > { %v1302_v7 = vpop.f32.mrf.mxu1  ;;  %v1209_v32 = vpack.c.bf16 %v1176_v15, %v1175_v8  ;;  %v1210_v25 = vpack.c.bf16 %v1178_v29, %v1177_v23 }
 0x254   : > { %v1303_v22 = vadd.f32 %v6343_v13, %v1302_v7  ;;  %v5157_v19 = vpop.eup %5156 }
 0x255   : > { %4480 = vmatmul.msk.bf16.gmra.mxu1 %vm8345_vm11, %v1209_v32 }
 0x256   : > { %5158 = vtanh.f32 %v1303_v22 }
 0x257   : > { %v4980_v49 = vpop.permute.xlu1 %4979 }
 0x258   : > { %v4982_v60 = vunpack.i.h.bf16 %v4980_v49  ;;  %v4981_v8 = vunpack.i.l.bf16 %v4980_v49 }
 0x25a   : > { %v1181_v48 = vsel %vm8344_vm3, %v6187_v59, %v4981_v8  ;;  %v1182_v37 = vsel %vm8344_vm3, %v6191_v62, %v4982_v60 }
 0x25b   : > { %v1212_v22 = vpack.c.bf16 %v1182_v37, %v1181_v48  ;;  %v5008_v37 = vpack.i.bf16 %v5809_v51, %v5802_v45  ;;  %v6396_v45 = vld [vmem:[%s5721_s29 + $0x58] sm:$0xff] }
 0x25c   : > { %v5159_v20 = vpop.eup %5158 }
 0x25d   : > { %v1417_v0 = vpack.c.bf16 %v5159_v20, %v5157_v19  ;;  %v4985_v20 = vpop.permute.xlu2 %4984  ;;  %5009 = vrot.lane.b32.xlu1 %v5008_v37, %s5604_s18 }
 0x25e   : > { %v4986_v59 = vunpack.i.l.bf16 %v4985_v20 }
 0x25f   : > { %4497 = vmatmul.msk.bf16.vlgmr.msrb.gmra.mxu2 %vm8344_vm3, %v1417_v0  ;;  %v4987_v0 = vunpack.i.h.bf16 %v4985_v20  ;;  %v6404_v20 = vld [vmem:[%s5721_s29 + $0x48] sm:$0xff] }
 0x260   : > { %v1183_v23 = vsel %vm8344_vm3, %v6201_v35, %v4986_v59 }
 0x261   : > { %v1184_v62 = vsel %vm8344_vm3, %v6211_v16, %v4987_v0  ;;  %v4991_v16 = vunpack.i.l.bf16 %v4990_v41 }
 0x262   : > { %v1213_v10 = vpack.c.bf16 %v1184_v62, %v1183_v23 }
 0x263   : > { %v1185_v49 = vsel %vm8344_vm3, %v6225_v55, %v4991_v16  ;;  %v6431_v16 = vld [vmem:[%s5721_s29 + $0x18] sm:$0xff] }
 0x265   : > { %4481 = vmatmul.msk.bf16.gmra.mxu1 %vm8345_vm11, %v1210_v25 }
 0x272   : > { %v1305_v56 = vpop.f32.mrf.mxu1 }
 0x273   : > { %v1306_v54 = vadd.f32 %v6343_v13, %v1305_v56 }
 0x275   : > { %4482 = vmatmul.msk.bf16.gmra.mxu1 %vm8345_vm11, %v1211_v27  ;;  %5160 = vtanh.f32 %v1306_v54  ;;  %v4992_v54 = vunpack.i.h.bf16 %v4990_v41 }
 0x277   : > { %v1186_v35 = vsel %vm8344_vm3, %v6235_v4, %v4992_v54  ;;  %v4995_v4 = vpop.permute.xlu1 %4994  ;;  %v6428_v54 = vld [vmem:[%s5721_s29 + $0x10] sm:$0xff] }
 0x278   : > { %v1214_v8 = vpack.c.bf16 %v1186_v35, %v1185_v49  ;;  %v5038_v35 = vpack.i.bf16 %v6428_v54, %v6431_v16  ;;  %v5478_v49 = vld [vmem:[%s5721_s29 + $0x68] sm:$0xff] }
 0x27a   : > { %v1307_v18 = vpop.f32.mrf.mxu1 }
 0x27b   : > { %v1308_v52 = vadd.f32 %v6343_v13, %v1307_v18  ;;  %v5161_v15 = vpop.eup %5160 }
 0x27d   : > { %5162 = vtanh.f32 %v1308_v52 }
 0x282   : > { %v1310_v7 = vpop.f32.mrf.mxu1 }
 0x283   : > { %v5163_v32 = vpop.eup %5162  ;;  %v1311_v19 = vadd.f32 %v6343_v13, %v1310_v7 }
 0x284   : > { %v1418_v44 = vpack.c.bf16 %v5163_v32, %v5161_v15  ;;  %v4997_v32 = vunpack.i.h.bf16 %v4995_v4 }
 0x285   : > { %4483 = vmatmul.msk.bf16.gmra.mxu1 %vm8345_vm11, %v1212_v22  ;;  %5164 = vtanh.f32 %v1311_v19  ;;  %v4996_v22 = vunpack.i.l.bf16 %v4995_v4  ;;  %v6401_v19 = vld [vmem:[%s5721_s29 + $0x40] sm:$0xff] }
 0x286   : > { %4498 = vmatmul.msk.bf16.gmra.mxu2 %vm8344_vm3, %v1418_v44  ;;  %v6393_v44 = vld [vmem:[%s5721_s29 + $0x50] sm:$0xff] }
 0x287   : > { %v5018_v51 = vpack.i.bf16 %v6393_v44, %v6396_v45  ;;  %v1187_v0 = vsel %vm8344_vm3, %v6242_v2, %v4996_v22 }
 0x289   : > { %5019 = vrot.lane.b32.xlu0 %v5018_v51, %s5604_s18 }
 0x28a   : > { %v1312_v42 = vpop.f32.mrf.mxu1 }
 0x28b   : > { %v1313_v3 = vadd.f32 %v6343_v13, %v1312_v42  ;;  %v5165_v29 = vpop.eup %5164  ;;  %v5023_v42 = vpack.i.bf16 %v6401_v19, %v6404_v20 }
 0x28d   : > { %5166 = vtanh.f32 %v1313_v3  ;;  %5024 = vrot.lane.b32.xlu1 %v5023_v42, %s5604_s18  ;;  %v1188_v3 = vsel %vm8344_vm3, %v6246_v6, %v4997_v32  ;;  %v5005_v32 = vpop.permute.xlu0 %5004  ;;  %v8321_v42 = vmov 2  }
 0x28e   : > { %v5006_v51 = vunpack.i.l.bf16 %v5005_v32  ;;  %5049 = vset.pattern.permute.xlu1 %v8321_v42  ;;  %5048 = vset.pattern.permute.xlu0 %v8321_v42 }
 0x28f   : > { %5050 = vset.pattern.permute.xlu2 %v8321_v42 }
 0x292   : > { %v1315_v25 = vpop.f32.mrf.mxu1 }
 0x293   : > { %v5167_v39 = vpop.eup %5166  ;;  %v1316_v5 = vadd.f32 %v6343_v13, %v1315_v25 }
 0x294   : > { %v1419_v12 = vpack.c.bf16 %v5167_v39, %v5165_v29  ;;  %v1215_v29 = vpack.c.bf16 %v1188_v3, %v1187_v0  ;;  %v6417_v39 = vld [vmem:[%s5721_s29 + $0x28] sm:$0xff]  ;;  %v5480_v3 = vld [vmem:[%s5721_s29 + $0x30] sm:$0xff]  ;;  %v5481_v0 = vld [vmem:[%s5721_s29 + $0x38] sm:$0xff] }
 0x295   : > { %4484 = vmatmul.msk.bf16.gmra.mxu1 %vm8345_vm11, %v1213_v10  ;;  %5168 = vtanh.f32 %v1316_v5  ;;  %v6420_v10 = vld [vmem:[%s5721_s29 + $0x20] sm:$0xff]  ;;  %5039 = vrot.lane.b32.xlu1 %v5038_v35, %s5604_s18 }
 0x296   : > { %4499 = vmatmul.msk.bf16.gmra.mxu2 %vm8344_vm3, %v1419_v12  ;;  %v5033_v2 = vpack.i.bf16 %v6420_v10, %v6417_v39  ;;  %v5000_v12 = vpop.permute.xlu2 %4999 }
 0x298   : > { %5034 = vrot.lane.b32.xlu0 %v5033_v2, %s5604_s18 }
 0x29a   : > { %v1317_v56 = vpop.f32.mrf.mxu1 }
 0x29b   : > { %v1318_v27 = vadd.f32 %v6343_v13, %v1317_v56  ;;  %v5169_v18 = vpop.eup %5168  ;;  %v5002_v56 = vunpack.i.h.bf16 %v5000_v12 }
 0x29d   : > { %5170 = vtanh.f32 %v1318_v27  ;;  %v5001_v27 = vunpack.i.l.bf16 %v5000_v12 }
 0x2a2   : > { %v1320_v52 = vpop.f32.mrf.mxu1 }
 0x2a3   : > { %v5171_v60 = vpop.eup %5170  ;;  %v1321_v55 = vadd.f32 %v6343_v13, %v1320_v52 }
 0x2a4   : > { %v1420_v48 = vpack.c.bf16 %v5171_v60, %v5169_v18  ;;  %v5479_v18 = vld [vmem:[%s5721_s29 + $0x60] sm:$0xff]  ;;  %v1190_v60 = vsel %vm8344_vm3, %v6262_v28, %v5002_v56  ;;  %v5484_v56 = vld [vmem:[%s5721_s29 + $0x8] sm:$0xff] }
 0x2a5   : > { %4485 = vmatmul.msk.bf16.gmra.mxu1 %vm8345_vm11, %v1214_v8  ;;  %5172 = vtanh.f32 %v1321_v55  ;;  %v5013_v52 = vpack.i.bf16 %v5479_v18, %v5478_v49  ;;  %v1189_v8 = vsel %vm8344_vm3, %v6253_v17, %v5001_v27  ;;  %v5007_v17 = vunpack.i.h.bf16 %v5005_v32  ;;  %v5485_v27 = vld [vmem:[%s5721_s29] sm:$0xff] }
 0x2a6   : > { %4500 = vmatmul.msk.bf16.gmra.mxu2 %vm8344_vm3, %v1420_v48  ;;  %v1216_v4 = vpack.c.bf16 %v1190_v60, %v1189_v8  ;;  %v5043_v35 = vpack.i.bf16 %v5485_v27, %v5484_v56 }
 0x2a7   : > { %5014 = vrot.lane.b32.xlu2 %v5013_v52, %s5604_s18 }
 0x2aa   : > { %v1322_v15 = vpop.f32.mrf.mxu1 }
 0x2ab   : > { %v1323_v7 = vadd.f32 %v6343_v13, %v1322_v15  ;;  %v5173_v59 = vpop.eup %5172 }
 0x2ad   : > { %5174 = vtanh.f32 %v1323_v7 }
 0x2b2   : > { %v1325_v62 = vpop.f32.mrf.mxu1 }
 0x2b3   : > { %v5175_v23 = vpop.eup %5174  ;;  %v1326_v6 = vadd.f32 %v6343_v13, %v1325_v62  ;;  %v5482_v62 = vld [vmem:[%s5721_s29 + $0x70] sm:$0xff] }
 0x2b4   : > { %v1421_v25 = vpack.c.bf16 %v5175_v23, %v5173_v59  ;;  %v5028_v59 = vpack.i.bf16 %v5480_v3, %v5481_v0  ;;  %1719 = vperm.xlu1 %5049, %v5482_v62   ;;  %v5483_v23 = vld [vmem:[%s5721_s29 + $0x78] sm:$0xff] }
 0x2b5   : > { %4486 = vmatmul.msk.bf16.gmra.mxu1 %vm8345_vm11, %v1215_v29  ;;  %5176 = vtanh.f32 %v1326_v6  ;;  %1724 = vperm.xlu0 %5048, %v5483_v23   ;;  %v1192_v29 = vsel %vm8344_vm3, %v6285_v26, %v5007_v17 }
 0x2b6   : > { %4501 = vmatmul.msk.bf16.gmra.mxu2 %vm8344_vm3, %v1421_v25  ;;  %5029 = vrot.lane.b32.xlu2 %v5028_v59, %s5604_s18  ;;  %v1191_v25 = vsel %vm8344_vm3, %v6275_v21, %v5006_v51 }
 0x2ba   : > { %v1327_v5 = vpop.f32.mrf.mxu1 }
 0x2bb   : > { %v1328_v41 = vadd.f32 %v6343_v13, %v1327_v5  ;;  %v5177_v48 = vpop.eup %5176  ;;  %v1217_v5 = vpack.c.bf16 %v1192_v29, %v1191_v25 }
 0x2bc   : > { %1709 = vperm.xlu1 %5049, %v5479_v18  }
 0x2bd   : > { %5178 = vtanh.f32 %v1328_v41  ;;  %1699 = vperm.xlu0 %5048, %v6393_v44  }
 0x2be   : > { %5044 = vrot.lane.b32.xlu2 %v5043_v35, %s5604_s18 }
 0x2c2   : > { %v1330_v37 = vpop.f32.mrf.mxu1 }
 0x2c3   : > { %v5179_v55 = vpop.eup %5178  ;;  %v1331_v7 = vadd.f32 %v6343_v13, %v1330_v37 }
 0x2c4   : > { %v1422_v15 = vpack.c.bf16 %v5179_v55, %v5177_v48  ;;  %1694 = vperm.xlu1 %5049, %v6404_v20  }
 0x2c5   : > { %4487 = vmatmul.msk.bf16.gmra.mxu1 %vm8345_vm11, %v1216_v4  ;;  %5180 = vtanh.f32 %v1331_v7  ;;  %1684 = vperm.xlu0 %5048, %v5481_v0  }
 0x2c6   : > { %4502 = vmatmul.msk.bf16.gmra.mxu2 %vm8344_vm3, %v1422_v15  ;;  %1714 = vperm.xlu2 %5050, %v5478_v49  }
 0x2ca   : > { %v1332_v28 = vpop.f32.mrf.mxu1 }
 0x2cb   : > { %v1333_v22 = vadd.f32 %v6343_v13, %v1332_v28  ;;  %v5181_v2 = vpop.eup %5180 }
 0x2cc   : > { %1679 = vperm.xlu1 %5049, %v5480_v3  }
 0x2cd   : > { %5182 = vtanh.f32 %v1333_v22  ;;  %1669 = vperm.xlu0 %5048, %v6420_v10   ;;  %v8394_v10 = vmov 0  }
 0x2ce   : > { %1704 = vperm.xlu2 %5050, %v6396_v45  }
 0x2d2   : > { %v1335_v6 = vpop.f32.mrf.mxu1 }
 0x2d3   : > { %v5183_v12 = vpop.eup %5182  ;;  %v1336_v26 = vadd.f32 %v6343_v13, %v1335_v6  ;;  %v5010_v6 = vpop.permute.xlu1 %5009 }
 0x2d4   : > { %v1423_v41 = vpack.c.bf16 %v5183_v12, %v5181_v2  ;;  %1664 = vperm.xlu1 %5049, %v6431_v16  }
 0x2d5   : > { %4488 = vmatmul.msk.bf16.gmra.mxu1 %vm8345_vm11, %v1217_v5  ;;  %5184 = vtanh.f32 %v1336_v26  ;;  %1654 = vperm.xlu0 %5048, %v5484_v56   ;;  %v5012_v5 = vunpack.i.h.bf16 %v5010_v6 }
 0x2d6   : > { %4503 = vmatmul.msk.bf16.gmra.mxu2 %vm8344_vm3, %v1423_v41  ;;  %1689 = vperm.xlu2 %5050, %v6401_v19   ;;  %v5011_v41 = vunpack.i.l.bf16 %v5010_v6 }
 0x2d8   : > { %1832 = vmatpush.msra.mxu3 %v5011_v41 }
 0x2da   : > { %v1337_v21 = vpop.f32.mrf.mxu1  ;;  %1833 = vmatpush.msra.mxu3 %v5012_v5 }
 0x2db   : > { %v1338_v52 = vadd.f32 %v6343_v13, %v1337_v21  ;;  %v5185_v18 = vpop.eup %5184 }
 0x2dc   : > { %1649 = vperm.xlu1 %5049, %v5485_v27  }
 0x2dd   : > { %5186 = vtanh.f32 %v1338_v52  ;;  %5051 = vset.pattern.permute.xlu0 %v8394_v10 }
 0x2de   : > { %1674 = vperm.xlu2 %5050, %v6417_v39  }
 0x2e2   : > { %v1340_v60 = vpop.f32.mrf.mxu1  ;;  %v6476_v7 = vpop.f32.mrf.mxu2 }
 0x2e3   : > { %v5187_v8 = vpop.eup %5186  ;;  %v1341_v48 = vadd.f32 %v6343_v13, %v1340_v60 }
 0x2e4   : > { %v1424_v44 = vpack.c.bf16 %v5187_v8, %v5185_v18  ;;  %5052 = vset.pattern.permute.xlu1 %v8394_v10 }
 0x2e5   : > { %5188 = vtanh.f32 %v1341_v48 }
 0x2e6   : > { %4504 = vmatmul.msk.bf16.gmra.mxu2 %vm8344_vm3, %v1424_v44  ;;  %1659 = vperm.xlu2 %5050, %v6428_v54  }
 0x2ea   : > { %v1342_v37 = vpop.f32.mrf.mxu1  ;;  %v6483_v19 = vpop.f32.mrf.mxu2 }
 0x2eb   : > { %v1343_v55 = vadd.f32 %v6343_v13, %v1342_v37  ;;  %v5189_v49 = vpop.eup %5188 }
 0x2ed   : > { %5190 = vtanh.f32 %v1343_v55 }
 0x2ee   : > { %5053 = vset.pattern.permute.xlu2 %v8394_v10 }
 0x2f2   : > { %v1345_v20 = vpop.f32.mrf.mxu1 }
 0x2f3   : > { %v5191_v4 = vpop.eup %5190  ;;  %v1346_v45 = vadd.f32 %v6343_v13, %v1345_v20 }
 0x2f4   : > { %v1425_v15 = vpack.c.bf16 %v5191_v4, %v5189_v49 }
 0x2f5   : > { %5192 = vtanh.f32 %v1346_v45 }
 0x2f6   : > { %4505 = vmatmul.msk.bf16.gmra.mxu2 %vm8344_vm3, %v1425_v15 }
 0x2fa   : > { %v1347_v16 = vpop.f32.mrf.mxu1 }
 0x2fb   : > { %v1348_v32 = vadd.f32 %v6343_v13, %v1347_v16  ;;  %v5193_v28 = vpop.eup %5192  ;;  %v5020_v52 = vpop.permute.xlu0 %5019 }
 0x2fc   : > { %v5022_v60 = vunpack.i.h.bf16 %v5020_v52  ;;  %v5021_v8 = vunpack.i.l.bf16 %v5020_v52 }
 0x2fd   : > { %5194 = vtanh.f32 %v1348_v32 }
 0x2ff   : > { %v5025_v20 = vpop.permute.xlu1 %5024 }
 0x300   : > { %v5027_v49 = vunpack.i.h.bf16 %v5025_v20  ;;  %v5026_v4 = vunpack.i.l.bf16 %v5025_v20 }
 0x301   : > { %v5015_v35 = vpop.permute.xlu2 %5014 }
 0x302   : > { %v1350_v22 = vpop.f32.mrf.mxu1  ;;  %v5017_v26 = vunpack.i.h.bf16 %v5015_v35  ;;  %v5016_v21 = vunpack.i.l.bf16 %v5015_v35 }
 0x303   : > { %v5195_v17 = vpop.eup %5194  ;;  %v1351_v3 = vadd.f32 %v6343_v13, %v1350_v22 }
 0x304   : > { %v1426_v51 = vpack.c.bf16 %v5195_v17, %v5193_v28  ;;  %1834 = vmatpush.msra.mxu3 %v5016_v21 }
 0x305   : > { %5196 = vtanh.f32 %v1351_v3 }
 0x306   : > { %4506 = vmatmul.msk.bf16.gmra.mxu2 %vm8344_vm3, %v1426_v51  ;;  %1835 = vmatpush.msra.mxu3 %v5017_v26 }
 0x308   : > { %1836 = vmatpush.msra.mxu3 %v5021_v8 }
 0x309   : > { %v6488_v39 = vpop.f32.mrf.mxu2 }
 0x30a   : > { %v1352_v0 = vpop.f32.mrf.mxu1  ;;  %1837 = vmatpush.msra.mxu3 %v5022_v60  ;;  %v5035_v51 = vpop.permute.xlu0 %5034 }
 0x30b   : > { %v1353_v59 = vadd.f32 %v6343_v13, %v1352_v0  ;;  %v5197_v54 = vpop.eup %5196  ;;  %v5037_v3 = vunpack.i.h.bf16 %v5035_v51  ;;  %v5036_v0 = vunpack.i.l.bf16 %v5035_v51 }
 0x30c   : > { %1838 = vmatpush.msra.mxu3 %v5026_v4 }
 0x30d   : > { %5198 = vtanh.f32 %v1353_v59  ;;  %v5040_v59 = vpop.permute.xlu1 %5039 }
 0x30e   : > { %1839 = vmatpush.msra.mxu3 %v5027_v49 }
 0x310   : > { %v5030_v45 = vpop.permute.xlu2 %5029 }
 0x311   : > { %v6492_v62 = vpop.f32.mrf.mxu2  ;;  %v5032_v32 = vunpack.i.h.bf16 %v5030_v45  ;;  %v5031_v28 = vunpack.i.l.bf16 %v5030_v45 }
 0x312   : > { %v1355_v23 = vpop.f32.mrf.mxu1 }
 0x313   : > { %v5199_v29 = vpop.eup %5198  ;;  %v1356_v2 = vadd.f32 %v6343_v13, %v1355_v23  ;;  %1840 = vmatpush.msra.mxu3 %v5031_v28  ;;  %v5042_v23 = vunpack.i.h.bf16 %v5040_v59 }
 0x314   : > { %v1427_v25 = vpack.c.bf16 %v5199_v29, %v5197_v54  ;;  %v5041_v29 = vunpack.i.l.bf16 %v5040_v59 }
 0x315   : > { %5200 = vtanh.f32 %v1356_v2  ;;  %1841 = vmatpush.msra.mxu3 %v5032_v32 }
 0x316   : > { %4507 = vmatmul.msk.bf16.gmra.mxu2 %vm8344_vm3, %v1427_v25 }
 0x317   : > { %1842 = vmatpush.msra.mxu3 %v5036_v0 }
 0x318   : > { %v5045_v41 = vpop.permute.xlu2 %5044 }
 0x319   : > { %v6496_v12 = vpop.f32.mrf.mxu2  ;;  %1843 = vmatpush.msra.mxu3 %v5037_v3 }
 0x31a   : > { %v1357_v56 = vpop.f32.mrf.mxu1 }
 0x31b   : > { %v1358_v27 = vadd.f32 %v6343_v13, %v1357_v56  ;;  %v5201_v44 = vpop.eup %5200  ;;  %1844 = vmatpush.msra.mxu3 %v5041_v29  ;;  %v5047_v56 = vunpack.i.h.bf16 %v5045_v41 }
 0x31d   : > { %5202 = vtanh.f32 %v1358_v27  ;;  %v5046_v27 = vunpack.i.l.bf16 %v5045_v41  ;;  %1845 = vmatpush.msra.mxu3 %v5042_v23 }
 0x31f   : > { %1846 = vmatpush.msra.mxu3 %v5046_v27 }
 0x321   : > { %v6499_v18 = vpop.f32.mrf.mxu2  ;;  %1847 = vmatpush.msra.mxu3 %v5047_v56 }
 0x322   : > { %v1360_v48 = vpop.f32.mrf.mxu1  ;;  %4765 = vmatmul.lmr.bf16.vlgmr.msra.gmra.8.mxu3 }
 0x323   : > { %v5203_v37 = vpop.eup %5202  ;;  %v1361_v15 = vadd.f32 %v6343_v13, %v1360_v48 }
 0x324   : > { %v1428_v55 = vpack.c.bf16 %v5203_v37, %v5201_v44 }
 0x325   : > { %5204 = vtanh.f32 %v1361_v15 }
 0x326   : > { %4508 = vmatmul.msk.bf16.gmra.mxu2 %vm8344_vm3, %v1428_v55 }
 0x329   : > { %v6503_v16 = vpop.f32.mrf.mxu2 }
 0x32a   : > { %v1362_v22 = vpop.f32.mrf.mxu1  ;;  %4766 = vmatmul.lmr.bf16.gmra.8.mxu3 }
 0x32b   : > { %v1363_v17 = vadd.f32 %v6343_v13, %v1362_v22  ;;  %v5205_v25 = vpop.eup %5204 }
 0x32d   : > { %5206 = vtanh.f32 %v1363_v17 }
 0x331   : > { %v6506_v54 = vpop.f32.mrf.mxu2 }
 0x332   : > { %v1365_v2 = vpop.f32.mrf.mxu1  ;;  %4767 = vmatmul.lmr.bf16.gmra.8.mxu3 }
 0x333   : > { %v5207_v6 = vpop.eup %5206  ;;  %v1366_v35 = vadd.f32 %v6343_v13, %v1365_v2 }
 0x334   : > { %v1429_v5 = vpack.c.bf16 %v5207_v6, %v5205_v25 }
 0x335   : > { %5208 = vtanh.f32 %v1366_v35 }
 0x336   : > { %4509 = vmatmul.msk.bf16.gmra.mxu2 %vm8344_vm3, %v1429_v5 }
 0x339   : > { %v6510_v26 = vpop.f32.mrf.mxu2 }
 0x33a   : > { %v1367_v21 = vpop.f32.mrf.mxu1  ;;  %4768 = vmatmul.lmr.bf16.gmra.8.mxu3 }
 0x33b   : > { %v1368_v52 = vadd.f32 %v6343_v13, %v1367_v21  ;;  %v5209_v8 = vpop.eup %5208 }
 0x33d   : > { %5210 = vtanh.f32 %v1368_v52 }
 0x341   : > { %v6513_v60 = vpop.f32.mrf.mxu2 }
 0x342   : > { %v1370_v44 = vpop.f32.mrf.mxu1  ;;  %4769 = vmatmul.lmr.bf16.gmra.8.mxu3 }
 0x343   : > { %v5211_v48 = vpop.eup %5210  ;;  %v1371_v55 = vadd.f32 %v6343_v13, %v1370_v44 }
 0x344   : > { %v1430_v37 = vpack.c.bf16 %v5211_v48, %v5209_v8 }
 0x345   : > { %5212 = vtanh.f32 %v1371_v55 }
 0x346   : > { %4510 = vmatmul.msk.bf16.gmra.mxu2 %vm8344_vm3, %v1430_v37 }
 0x349   : > { %v6517_v20 = vpop.f32.mrf.mxu2 }
 0x34a   : > { %v1372_v49 = vpop.f32.mrf.mxu1  ;;  %4770 = vmatmul.lmr.bf16.gmra.8.mxu3 }
 0x34b   : > { %v1373_v4 = vadd.f32 %v6343_v13, %v1372_v49  ;;  %v5213_v45 = vpop.eup %5212 }
 0x34d   : > { %5214 = vtanh.f32 %v1373_v4 }
 0x351   : > { %v6520_v15 = vpop.f32.mrf.mxu2 }
 0x352   : > { %v1375_v32 = vpop.f32.mrf.mxu1  ;;  %4771 = vmatmul.lmr.bf16.gmra.8.mxu3 }
 0x353   : > { %v5215_v28 = vpop.eup %5214  ;;  %v1376_v17 = vadd.f32 %v6343_v13, %v1375_v32 }
 0x354   : > { %v1431_v22 = vpack.c.bf16 %v5215_v28, %v5213_v45 }
 0x355   : > { %5216 = vtanh.f32 %v1376_v17 }
 0x356   : > { %4511 = vmatmul.msk.bf16.gmra.mxu2 %vm8344_vm3, %v1431_v22 }
 0x359   : > { %v6524_v51 = vpop.f32.mrf.mxu2 }
 0x35a   : > { %v1377_v3 = vpop.f32.mrf.mxu1  ;;  %4772 = vmatmul.lmr.bf16.gmra.8.mxu3 }
 0x35b   : > { %v1378_v0 = vadd.f32 %v6343_v13, %v1377_v3  ;;  %v5217_v23 = vpop.eup %5216  ;;  %v6537_v13 = vld [vmem:[%s8290_s4 + $0x20] ss:$0 sm:$0xff] }
 0x35c   : > { %v1504_v5 = vadd.f32 %v6537_v13, %v6476_v7  ;;  %v1509_v8 = vadd.f32 %v6537_v13, %v6488_v39  ;;  %v1514_v4 = vadd.f32 %v6537_v13, %v6496_v12  ;;  %v1519_v3 = vadd.f32 %v6537_v13, %v6503_v16 }
 0x35d   : > { %5218 = vtanh.f32 %v1378_v0 }
 0x35e   : > { %5220 = vtanh.f32 %v1504_v5 }
 0x361   : > { %v6527_v59 = vpop.f32.mrf.mxu2 }
 0x363   : > { %v5219_v29 = vpop.eup %5218 }
 0x364   : > { %v1432_v25 = vpack.c.bf16 %v5219_v29, %v5217_v23  ;;  %v5221_v27 = vpop.eup %5220 }
 0x366   : > { %4512 = vmatmul.msk.bf16.gmra.mxu2 %vm8344_vm3, %v1432_v25 }
 0x369   : > { %v6530_v2 = vpop.f32.mrf.mxu2 }
 0x371   : > { %v6532_v6 = vpop.f32.mrf.mxu2 }
 0x379   : > { %v1543_v41 = vpop.f32.mrf.mxu2 }
 0x37a   : > { %v1544_v56 = vadd.f32 %v6537_v13, %v1543_v41  ;;  %v1524_v41 = vadd.f32 %v6537_v13, %v6510_v26 }
 0x37c   : > { %5222 = vtanh.f32 %v1544_v56 }
 0x37d   : > { %5224 = vtanh.f32 %v1509_v8 }
 0x381   : > { %v6542_v35 = vpop.f32.mrf.mxu2 }
 0x382   : > { %v5223_v21 = vpop.eup %5222 }
 0x383   : > { %v6544_v52 = vadd.f32 %v5223_v21, %v5221_v27  ;;  %v5225_v7 = vpop.eup %5224 }
 0x389   : > { %v1548_v44 = vpop.f32.mrf.mxu2 }
 0x38a   : > { %v1549_v48 = vadd.f32 %v6537_v13, %v1548_v44 }
 0x38c   : > { %5226 = vtanh.f32 %v1549_v48 }
 0x38d   : > { %5228 = vtanh.f32 %v1514_v4 }
 0x391   : > { %v6549_v37 = vpop.f32.mrf.mxu2 }
 0x392   : > { %v5227_v55 = vpop.eup %5226 }
 0x393   : > { %v6551_v49 = vadd.f32 %v5227_v55, %v5225_v7  ;;  %v5229_v39 = vpop.eup %5228 }
 0x399   : > { %v1553_v45 = vpop.f32.mrf.mxu2 }
 0x39a   : > { %v1554_v32 = vadd.f32 %v6537_v13, %v1553_v45 }
 0x39c   : > { %5230 = vtanh.f32 %v1554_v32 }
 0x39d   : > { %5232 = vtanh.f32 %v1519_v3 }
 0x3a1   : > { %v6556_v28 = vpop.f32.mrf.mxu2 }
 0x3a2   : > { %v5231_v22 = vpop.eup %5230 }
 0x3a3   : > { %v6558_v17 = vadd.f32 %v5231_v22, %v5229_v39  ;;  %v5233_v12 = vpop.eup %5232 }
 0x3a5   : > { %v1849_v16 = vpop.f32.mrf.mxu3 }
 0x3a9   : > { %v1558_v0 = vpop.f32.mrf.mxu2 }
 0x3aa   : > { %v1559_v23 = vadd.f32 %v6537_v13, %v1558_v0 }
 0x3ac   : > { %5234 = vtanh.f32 %v1559_v23  ;;  %v6574_v23 = vpop.permute.xlu1 %1719 }
 0x3ad   : > { %5236 = vtanh.f32 %v1524_v41  ;;  %v1852_v7 = vpop.f32.mrf.mxu3  ;;  %8395 = vst [vmem:[#allocation33_spill] sm:$0xff] %v6574_v23  ;;  %v1539_v41 = vadd.f32 %v6537_v13, %v6530_v2  ;;  %v1534_v2 = vadd.f32 %v6537_v13, %v6524_v51 }
 0x3b1   : > { %v6563_v29 = vpop.f32.mrf.mxu2 }
 0x3b2   : > { %v5235_v25 = vpop.eup %5234 }
 0x3b3   : > { %v6565_v5 = vadd.f32 %v5235_v25, %v5233_v12  ;;  %v5237_v21 = vpop.eup %5236  ;;  %v1536_v25 = vadd.f32 %v6537_v13, %v6527_v59  ;;  %v6587_v59 = vpop.permute.xlu0 %1724 }
 0x3b4   : > { %8397 = vst [vmem:[#allocation35_spill] sm:$0xff] %v6587_v59 }
 0x3b5   : > { %v6572_v4 = vpop.f32.mrf.mxu3 }
 0x3b9   : > { %v1563_v56 = vpop.f32.mrf.mxu2 }
 0x3ba   : > { %v1564_v27 = vadd.f32 %v6537_v13, %v1563_v56 }
 0x3bc   : > { %5238 = vtanh.f32 %v1564_v27 }
 0x3bd   : > { %v1858_v32 = vpop.f32.mrf.mxu3  ;;  %5240 = vtanh.f32 %v1536_v25 }
 0x3be   : > { %v1859_v56 = vadd.f32 1e-06, %v1858_v32  ;;  %5242 = vtanh.f32 %v1539_v41 }
 0x3c1   : > { %v1565_v8 = vpop.f32.mrf.mxu2 }
 0x3c2   : > { %v5239_v44 = vpop.eup %5238 }
 0x3c3   : > { %v6570_v48 = vadd.f32 %v5239_v44, %v5237_v21  ;;  %v1541_v44 = vadd.f32 %v6537_v13, %v6532_v6  ;;  %v6591_v6 = vpop.permute.xlu1 %1709  ;;  %v5241_v25 = vpop.eup %5240 }
 0x3c4   : > { %8398 = vst [vmem:[#allocation36_spill] sm:$0xff] %v6591_v6 }
 0x3c5   : > { %v1861_v22 = vpop.f32.mrf.mxu3 }
 0x3c9   : > { %v1568_v55 = vpop.f32.mrf.mxu2 }
 0x3ca   : > { %v1569_v41 = vadd.f32 %v6537_v13, %v1568_v55 }
 0x3cd   : > { %v1864_v3 = vpop.f32.mrf.mxu3 }
 0x3ce   : > { %v1865_v0 = vadd.f32 1e-06, %v1864_v3  ;;  %v6583_v3 = vpop.permute.xlu2 %1714 }
 0x3cf   : > { %8396 = vst [vmem:[#allocation34_spill] sm:$0xff] %v6583_v3 }
 0x3d0   : > { %1900 = vperm.xlu1 %5052, %v1865_v0  }
 0x3d1   : > { %v1570_v45 = vpop.f32.mrf.mxu2 }
 0x3d5   : > { %v1867_v21 = vpop.f32.mrf.mxu3 }
 0x3d6   : > { %v1868_v42 = vadd.f32 1e-06, %v1867_v21  ;;  %v1529_v21 = vadd.f32 %v6537_v13, %v6517_v20 }
 0x3d8   : > { %1890 = vperm.xlu1 %5052, %v1859_v56   ;;  %1905 = vperm.xlu0 %5051, %v1868_v42   ;;  %v1850_v42 = vadd.f32 1e-06, %v1849_v16  ;;  %v1853_v56 = vadd.f32 1e-06, %v1852_v7  ;;  %v6603_v16 = vpop.permute.xlu2 %1704 }
 0x3d9   : > { %v1573_v39 = vpop.f32.mrf.mxu2  ;;  %8399 = vst [vmem:[#allocation37_spill] sm:$0xff] %v6603_v16 }
 0x3da   : > { %v1574_v24 = vadd.f32 %v6537_v13, %v1573_v39  ;;  %v1531_v39 = vadd.f32 %v6537_v13, %v6520_v15  ;;  %v1526_v15 = vadd.f32 %v6537_v13, %v6513_v60  ;;  %v1521_v60 = vadd.f32 %v6537_v13, %v6506_v54 }
 0x3db   : > { %v1516_v54 = vadd.f32 %v6537_v13, %v6499_v18 }
 0x3dd   : > { %v1870_v51 = vpop.f32.mrf.mxu3 }
 0x3e0   : > { %1875 = vperm.xlu1 %5052, %v1850_v42   ;;  %1880 = vperm.xlu0 %5051, %v1853_v56  }
 0x3e1   : > { %v1575_v26 = vpop.f32.mrf.mxu2 }
 0x3e2   : > { %v1576_v0 = vadd.f32 %v6537_v13, %v1575_v26 }
 0x3e9   : > { %v1578_v12 = vpop.f32.mrf.mxu2 }
 0x3ea   : > { %v1579_v27 = vadd.f32 %v6537_v13, %v1578_v12  ;;  %v1571_v12 = vadd.f32 %v6537_v13, %v1570_v45  ;;  %v1871_v45 = vadd.f32 1e-06, %v1870_v51 }
 0x3ec   : > { %5244 = vtanh.f32 %v1579_v27  ;;  %v5243_v27 = vpop.eup %5242  ;;  %1910 = vperm.xlu2 %5053, %v1871_v45  }
 0x3ed   : > { %5246 = vtanh.f32 %v1541_v44 }
 0x3ee   : > { %5248 = vtanh.f32 %v1576_v0  ;;  %v1566_v0 = vadd.f32 %v6537_v13, %v1565_v8  ;;  %v1561_v8 = vadd.f32 %v6537_v13, %v6563_v29  ;;  %v1556_v29 = vadd.f32 %v6537_v13, %v6556_v28 }
 0x3ef   : > { %5250 = vtanh.f32 %v1574_v24  ;;  %v1551_v28 = vadd.f32 %v6537_v13, %v6549_v37 }
 0x3f1   : > { %v1580_v32 = vpop.f32.mrf.mxu2 }
 0x3f2   : > { %v1581_v26 = vadd.f32 %v6537_v13, %v1580_v32  ;;  %v5245_v44 = vpop.eup %5244 }
 0x3f3   : > { %v5247_v32 = vpop.eup %5246  ;;  %v1629_v20 = vadd.f32 %v5245_v44, %v5243_v27 }
 0x3f4   : > { %5252 = vtanh.f32 %v1581_v26  ;;  %v5249_v24 = vpop.eup %5248  ;;  %v1862_v26 = vadd.f32 1e-06, %v1861_v22 }
 0x3f5   : > { %5254 = vtanh.f32 %v1534_v2  ;;  %v5251_v7 = vpop.eup %5250  ;;  %v6605_v2 = vpop.permute.xlu0 %1699  ;;  %v1628_v42 = vadd.f32 %v5249_v24, %v5241_v25 }
 0x3f6   : > { %5256 = vtanh.f32 %v1571_v12  ;;  %8400 = vst [vmem:[#allocation38_spill] sm:$0xff] %v6605_v2  ;;  %1895 = vperm.xlu2 %5053, %v1862_v26  }
 0x3f7   : > { %5258 = vtanh.f32 %v1531_v39  ;;  %v1644_v25 = vmul.f32 0.5, %v1628_v42 }
 0x3f8   : > { %5260 = vtanh.f32 %v1569_v41  ;;  %v6611_v41 = vpop.permute.xlu1 %1694 }
 0x3f9   : > { %5262 = vtanh.f32 %v1529_v21  ;;  %8401 = vst [vmem:[#allocation39_spill] sm:$0xff] %v6611_v41  ;;  %v1645_v21 = vmul.f32 0.5, %v1629_v20  ;;  %v1740_v26 = vmul.f32 %v6583_v3, %v1644_v25  ;;  %v1639_v25 = vmul.f32 0.5, %v6570_v48 }
 0x3fa   : > { %v5253_v55 = vpop.eup %5252  ;;  %5264 = vtanh.f32 %v1566_v0 }
 0x3fb   : > { %v5255_v12 = vpop.eup %5254  ;;  %v1630_v39 = vadd.f32 %v5253_v55, %v5247_v32  ;;  %5266 = vtanh.f32 %v1526_v15  ;;  %v1741_v15 = vmul.f32 %v6574_v23, %v1645_v21 }
 0x3fc   : > { %v5257_v51 = vpop.eup %5256  ;;  %v1627_v45 = vadd.f32 %v5255_v12, %v5251_v7  ;;  %5268 = vtanh.f32 %v1561_v8  ;;  %v6619_v12 = vpop.permute.xlu2 %1689  ;;  %v1856_v8 = vadd.f32 1e-06, %v6572_v4  ;;  %v1546_v4 = vadd.f32 %v6537_v13, %v6542_v35 }
 0x3fd   : > { %v5259_v56 = vpop.eup %5258  ;;  %v1646_v27 = vmul.f32 0.5, %v1630_v39  ;;  %5270 = vtanh.f32 %v1521_v60  ;;  %8402 = vst [vmem:[#allocation40_spill] sm:$0xff] %v6619_v12  ;;  %v6627_v60 = vpop.permute.xlu0 %1684 }
 0x3fe   : > { %v5261_v44 = vpop.eup %5260  ;;  %v1626_v32 = vadd.f32 %v5259_v56, %v5257_v51  ;;  %v1643_v7 = vmul.f32 0.5, %v1627_v45  ;;  %5272 = vtanh.f32 %v1556_v29  ;;  %v1511_v51 = vadd.f32 %v6537_v13, %v6492_v62  ;;  %8403 = vst [vmem:[#allocation41_spill] sm:$0xff] %v6627_v60  ;;  %1885 = vperm.xlu2 %5053, %v1856_v8  }
 0x3ff   : > { %v5263_v0 = vpop.eup %5262  ;;  %v1742_v22 = vmul.f32 %v6587_v59, %v1646_v27  ;;  %5274 = vtanh.f32 %v1516_v54 }
 0x400   : > { %v5265_v24 = vpop.eup %5264  ;;  %v1625_v20 = vadd.f32 %v5263_v0, %v5261_v44  ;;  %v1642_v39 = vmul.f32 0.5, %v1626_v32  ;;  %v1739_v56 = vmul.f32 %v6591_v6, %v1643_v7  ;;  %v6630_v21 = vpop.permute.xlu1 %1679  ;;  %5276 = vtanh.f32 %v1551_v28 }
 0x401   : > { %1743 = vmatpush.msra.mxu0 %v1742_v22  ;;  %v5267_v55 = vpop.eup %5266  ;;  %8404 = vst [vmem:[#allocation42_spill] sm:$0xff] %v6630_v21  ;;  %v1506_v0 = vadd.f32 %v6537_v13, %v6483_v19  ;;  %5278 = vtanh.f32 %v1511_v51  ;;  %v1735_v19 = vmul.f32 %v6619_v12, %v1639_v25  ;;  %v1637_v13 = vmul.f32 0.5, %v6565_v5 }
 0x402   : > { %v1624_v18 = vadd.f32 %v5267_v55, %v5265_v24  ;;  %v5269_v42 = vpop.eup %5268  ;;  %v1641_v27 = vmul.f32 0.5, %v1625_v20  ;;  %v1738_v45 = vmul.f32 %v6603_v16, %v1642_v39  ;;  %5280 = vtanh.f32 %v1546_v4 }
 0x403   : > { %1744 = vmatpush.msra.mxu0 %v1741_v15  ;;  %v5271_v37 = vpop.eup %5270  ;;  %5282 = vtanh.f32 %v1506_v0 }
 0x404   : > { %v1640_v44 = vmul.f32 0.5, %v1624_v18  ;;  %v1622_v29 = vadd.f32 %v5271_v37, %v5269_v42  ;;  %v5273_v62 = vpop.eup %5272  ;;  %v1737_v22 = vmul.f32 %v6605_v2, %v1641_v27  ;;  %v6640_v7 = vpop.permute.xlu2 %1674  ;;  %v1733_v18 = vmul.f32 %v6630_v21, %v1637_v13 }
 0x405   : > { %1745 = vmatpush.msra.mxu0 %v1740_v26  ;;  %v5275_v32 = vpop.eup %5274  ;;  %8405 = vst [vmem:[#allocation43_spill] sm:$0xff] %v6640_v7  ;;  %v6644_v55 = vpop.permute.xlu0 %1669  ;;  %v1635_v42 = vmul.f32 0.5, %v6558_v17  ;;  %v1633_v37 = vmul.f32 0.5, %v6551_v49  ;;  %v1631_v17 = vmul.f32 0.5, %v6544_v52 }
 0x406   : > { %v1736_v35 = vmul.f32 %v6611_v41, %v1640_v44  ;;  %v1638_v24 = vmul.f32 0.5, %v1622_v29  ;;  %v1620_v54 = vadd.f32 %v5275_v32, %v5273_v62  ;;  %v5277_v15 = vpop.eup %5276  ;;  %8406 = vst [vmem:[#allocation44_spill] sm:$0xff] %v6644_v55 }
 0x407   : > { %1746 = vmatpush.msra.mxu0 %v1739_v56  ;;  %v5279_v20 = vpop.eup %5278  ;;  %v1731_v4 = vmul.f32 %v6644_v55, %v1635_v42 }
 0x408   : > { %v1734_v48 = vmul.f32 %v6627_v60, %v1638_v24  ;;  %v1636_v28 = vmul.f32 0.5, %v1620_v54  ;;  %v1618_v8 = vadd.f32 %v5279_v20, %v5277_v15  ;;  %v5281_v26 = vpop.eup %5280  ;;  %v6647_v39 = vpop.permute.xlu1 %1664 }
 0x409   : > { %1747 = vmatpush.msra.mxu0 %v1738_v45  ;;  %8407 = vst [vmem:[#allocation45_spill] sm:$0xff] %v6647_v39  ;;  %v5283_v51 = vpop.eup %5282 }
 0x40a   : > { %v1616_v56 = vadd.f32 %v5283_v51, %v5281_v26  ;;  %v1732_v5 = vmul.f32 %v6640_v7, %v1636_v28  ;;  %v1634_v27 = vmul.f32 0.5, %v1618_v8 }
 0x40b   : > { %1748 = vmatpush.msra.mxu0 %v1737_v22 }
 0x40c   : > { %v6654_v45 = vpop.permute.xlu2 %1659  ;;  %v1632_v44 = vmul.f32 0.5, %v1616_v56  ;;  %v1730_v29 = vmul.f32 %v6647_v39, %v1634_v27 }
 0x40d   : > { %1749 = vmatpush.msra.mxu0 %v1736_v35  ;;  %8408 = vst [vmem:[#allocation46_spill] sm:$0xff] %v6654_v45  ;;  %v6657_v62 = vpop.permute.xlu0 %1654  ;;  %v1729_v0 = vmul.f32 %v6654_v45, %v1633_v37 }
 0x40e   : > { %8409 = vst [vmem:[#allocation47_spill] sm:$0xff] %v6657_v62  ;;  %v1728_v49 = vmul.f32 %v6657_v62, %v1632_v44 }
 0x40f   : > { %1750 = vmatpush.msra.mxu0 %v1735_v19 }
 0x410   : > { %v6661_v22 = vpop.permute.xlu1 %1649 }
 0x411   : > { %1751 = vmatpush.msra.mxu0 %v1734_v48  ;;  %8410 = vst [vmem:[#allocation48_spill] sm:$0xff] %v6661_v22  ;;  %v1727_v25 = vmul.f32 %v6661_v22, %v1631_v17 }
 0x413   : > { %1752 = vmatpush.msra.mxu0 %v1733_v18 }
 0x415   : > { %1753 = vmatpush.msra.mxu0 %v1732_v5 }
 0x417   : > { %1754 = vmatpush.msra.mxu0 %v1731_v4 }
 0x419   : > { %1755 = vmatpush.msra.mxu0 %v1730_v29 }
 0x41b   : > { %1756 = vmatpush.msra.mxu0 %v1729_v0 }
 0x41d   : > { %1757 = vmatpush.msra.mxu0 %v1728_v49 }
 0x41f   : > { %1758 = vmatpush.msra.mxu0 %v1727_v25 }
 0x420   : > { %4729 = vmatmul.lmr.bf16.vlgmr.msra.gmra.8.mxu0 }
 0x428   : > { %4730 = vmatmul.lmr.bf16.gmra.8.mxu0 }
 0x430   : > { %4731 = vmatmul.lmr.bf16.gmra.8.mxu0 }
 0x438   : > { %4732 = vmatmul.lmr.bf16.gmra.8.mxu0 }
 0x440   : > { %4733 = vmatmul.lmr.bf16.gmra.8.mxu0 }
 0x442   : > { %v6669_v35 = vpop.permute.xlu1 %1900 }
 0x443   : > { %vm1993_vm13 = vweird.f32 %v6669_v35 }
 0x446   : > { %v6667_v32 = vpop.permute.xlu2 %1910 }
 0x447   : > { %5284 = vrcp.f32 %v6667_v32  ;;  %vm2023_vm9 = vweird.f32 %v6667_v32 }
 0x448   : > { %4734 = vmatmul.lmr.bf16.gmra.8.mxu0  ;;  %5286 = vrcp.f32 %v6669_v35 }
 0x44a   : > { %v6675_v15 = vpop.permute.xlu1 %1890  ;;  %v6679_v13 = vpop.permute.xlu0 %1905 }
 0x44b   : > { %vm2008_vm10 = vweird.f32 %v6679_v13  ;;  %vm1963_vm7 = vweird.f32 %v6675_v15  ;;  %v1969_v9 = vand.u32 2147483648, %v6675_v15 }
 0x44d   : > { %v6695_v26 = vpop.eup %5284 }
 0x44e   : > { %v6698_v18 = vpop.eup %5286  ;;  %v2019_v29 = vmul.f32 %v6695_v26, %v6667_v32  ;;  %vm2024_vm1 = vweird.f32 %v6695_v26 }
 0x44f   : > { %v1989_v17 = vmul.f32 %v6698_v18, %v6669_v35  ;;  %vm1994_vm14 = vweird.f32 %v6698_v18  ;;  %vm6763_vm15 = vmor %vm2023_vm9, %vm2024_vm1 }
 0x450   : > { %4735 = vmatmul.lmr.bf16.gmra.8.mxu0  ;;  %v6673_v54 = vpop.permute.xlu2 %1895  ;;  %v2020_v6 = vsub.f32 1.0, %v2019_v29 }
 0x451   : > { %v1990_v16 = vsub.f32 1.0, %v1989_v17  ;;  %vm1978_vm0 = vweird.f32 %v6673_v54 }
 0x452   : > { %v6689_v28 = vpop.permute.xlu1 %1875  ;;  %v6692_v8 = vpop.permute.xlu0 %1880 }
 0x453   : > { %v1991_v45 = vmul.f32 %v6698_v18, %v1990_v16  ;;  %v2014_v16 = vand.u32 2147483648, %v6679_v13  ;;  %vm1918_vm9 = vweird.f32 %v6689_v28  ;;  %vm1933_vm11 = vweird.f32 %v6692_v8 }
 0x455   : > { %v2015_v22 = vor.u32 1.1754944e-38, %v2014_v16 }
 0x458   : > { %4736 = vmatmul.lmr.bf16.gmra.8.mxu0  ;;  %v6681_v20 = vpop.permute.xlu2 %1885 }
 0x459   : > { %5288 = vrcp.f32 %v6681_v20  ;;  %v1954_v7 = vand.u32 2147483648, %v6681_v20  ;;  %vm1948_vm4 = vweird.f32 %v6681_v20 }
 0x45a   : > { %5290 = vrcp.f32 %v6673_v54 }
 0x45b   : > { %5292 = vrcp.f32 %v6675_v15 }
 0x45c   : > { %5294 = vrcp.f32 %v6679_v13 }
 0x45d   : > { %5296 = vrcp.f32 %v6689_v28 }
 0x45e   : > { %5298 = vrcp.f32 %v6692_v8 }
 0x45f   : > { %v6701_v42 = vpop.eup %5288 }
 0x460   : > { %v6703_v51 = vpop.eup %5290  ;;  %v1944_v37 = vmul.f32 %v6701_v42, %v6681_v20  ;;  %vm1949_vm5 = vweird.f32 %v6701_v42 }
 0x461   : > { %v6707_v5 = vpop.eup %5292  ;;  %v1974_v0 = vmul.f32 %v6703_v51, %v6673_v54  ;;  %vm1979_vm8 = vweird.f32 %v6703_v51 }
 0x462   : > { %v6709_v27 = vpop.eup %5294  ;;  %v1959_v49 = vmul.f32 %v6707_v5, %v6675_v15  ;;  %v1945_v59 = vsub.f32 1.0, %v1944_v37  ;;  %v2021_v37 = vmul.f32 %v6695_v26, %v2020_v6  ;;  %vm1964_vm6 = vweird.f32 %v6707_v5 }
 0x463   : > { %v6713_v4 = vpop.eup %5296  ;;  %v2004_v25 = vmul.f32 %v6709_v27, %v6679_v13  ;;  %v1975_v41 = vsub.f32 1.0, %v1974_v0  ;;  %vm2009_vm12 = vweird.f32 %v6709_v27  ;;  %v1999_v0 = vand.u32 2147483648, %v6669_v35 }
 0x464   : > { %v6715_v44 = vpop.eup %5298  ;;  %v1914_v23 = vmul.f32 %v6713_v4, %v6689_v28  ;;  %v1960_v12 = vsub.f32 1.0, %v1959_v49  ;;  %v1946_v21 = vmul.f32 %v6701_v42, %v1945_v59  ;;  %vm6776_vm2 = vmor %vm2008_vm10, %vm2009_vm12  ;;  %vm1919_vm1 = vweird.f32 %v6713_v4 }
 0x465   : > { %v1929_v3 = vmul.f32 %v6715_v44, %v6692_v8  ;;  %v2005_v60 = vsub.f32 1.0, %v2004_v25  ;;  %v1976_v62 = vmul.f32 %v6703_v51, %v1975_v41  ;;  %v2029_v41 = vand.u32 2147483648, %v6667_v32  ;;  %vm6792_vm10 = vmor %vm1993_vm13, %vm1994_vm14 }
 0x466   : > { %v1915_v55 = vsub.f32 1.0, %v1914_v23  ;;  %v1961_v29 = vmul.f32 %v6707_v5, %v1960_v12  ;;  %v6742_v49 = vadd.f32 %v6701_v42, %v1946_v21  ;;  %v6746_v23 = vor.u32 1.1754944e-38, %v1954_v7  ;;  %vm6809_vm13 = vmor %vm1978_vm0, %vm1979_vm8 }
 0x467   : > { %v1930_v39 = vsub.f32 1.0, %v1929_v3  ;;  %v2006_v17 = vmul.f32 %v6709_v27, %v2005_v60  ;;  %v2012_v60 = vand.u32 2147483647, %v6679_v13  ;;  %v2022_v21 = vadd.f32 %v6695_v26, %v2021_v37  ;;  %vm6823_vm8 = vmor %vm1963_vm7, %vm1964_vm6 }
 0x468   : > { %v6751_v3 = vmul.f32 %v6713_v4, %v1915_v55  ;;  %v2027_v55 = vand.u32 2147483647, %v6667_v32  ;;  %v1984_v25 = vand.u32 2147483648, %v6673_v54  ;;  %v1992_v32 = vadd.f32 %v6698_v18, %v1991_v45  ;;  %vm6835_vm0 = vmor %vm1948_vm4, %vm1949_vm5 }
 0x469   : > { %v1931_v59 = vmul.f32 %v6715_v44, %v1930_v39  ;;  %v2007_v12 = vadd.f32 %v6709_v27, %v2006_v17  ;;  %v1977_v39 = vadd.f32 %v6703_v51, %v1976_v62  ;;  %v1982_v62 = vand.u32 2147483647, %v6673_v54  ;;  %v8484_v54 = vld [vmem:[#allocation15_spill] sm:$0xff] }
 0x46a   : > { %v1997_v17 = vand.u32 2147483647, %v6669_v35  ;;  %v2030_v10 = vor.u32 1.1754944e-38, %v2029_v41  ;;  %vm2013_vm12 = vcmp.eq.f32.partialorder %v2012_v60, 8.507059e+37  ;;  %v2026_v31 = vsel %vm6763_vm15, %v6695_v26, %v2022_v21 }
 0x46b   : > { %v2011_v45 = vsel %vm6776_vm2, %v6709_v27, %v2007_v12  ;;  %vm2028_vm3 = vcmp.eq.f32.partialorder %v2027_v55, 8.507059e+37  ;;  %v1939_v35 = vand.u32 2147483648, %v6692_v8  ;;  %v2000_v27 = vor.u32 1.1754944e-38, %v1999_v0 }
 0x46c   : > { %v1962_v41 = vadd.f32 %v6707_v5, %v1961_v29  ;;  %v1967_v26 = vand.u32 2147483647, %v6675_v15  ;;  %v1996_v12 = vsel %vm6792_vm10, %v6698_v18, %v1992_v32  ;;  %vm1998_vm14 = vcmp.eq.f32.partialorder %v1997_v17, 8.507059e+37  ;;  %v8490_v18 = vld [vmem:[#allocation11_spill] sm:$0xff] }
 0x46d   : > { %vm1934_vm15 = vweird.f32 %v6715_v44  ;;  %v1985_v0 = vor.u32 1.1754944e-38, %v1984_v25  ;;  %v6827_v60 = vsel %vm2013_vm12, %v2015_v22, %v2011_v45  ;;  %v6829_v21 = vsel %vm2028_vm3, %v2030_v10, %v2026_v31 }
 0x46e   : > { %8421 = vst [vmem:[#allocation49_spill] sm:$0xff] %v6827_v60  ;;  %v1981_v15 = vsel %vm6809_vm13, %v6703_v51, %v1977_v39  ;;  %vm1983_vm6 = vcmp.eq.f32.partialorder %v1982_v62, 8.507059e+37  ;;  %v1932_v31 = vadd.f32 %v6715_v44, %v1931_v59  ;;  %v1937_v10 = vand.u32 2147483647, %v6692_v8  ;;  %vm6865_vm3 = vmor %vm1933_vm11, %vm1934_vm15 }
 0x46f   : > { %8422 = vst [vmem:[#allocation50_spill] sm:$0xff] %v6829_v21  ;;  %v1970_v55 = vor.u32 1.1754944e-38, %v1969_v9  ;;  %v6846_v25 = vsel %vm1998_vm14, %v2000_v27, %v1996_v12  ;;  %v1966_v37 = vsel %vm6823_vm8, %v6707_v5, %v1962_v41  ;;  %vm6851_vm7 = vcmp.eq.f32.partialorder %v1967_v26, 8.507059e+37  ;;  %vm6895_vm11 = vmor %vm1918_vm9, %vm1919_vm1  ;;  %v8479_v27 = vld [vmem:[#allocation18_spill] sm:$0xff]  ;;  %v8481_v41 = vld [vmem:[#allocation17_spill] sm:$0xff] }
 0x470   : > { %8425 = vst [vmem:[#allocation51_spill] sm:$0xff] %v6846_v25  ;;  %v1924_v59 = vand.u32 2147483648, %v6689_v28  ;;  %v1951_v5 = vsel %vm6835_vm0, %v6701_v42, %v6742_v49  ;;  %v6879_v39 = vsel %vm1983_vm6, %v1985_v0, %v1981_v15  ;;  %v1917_v8 = vadd.f32 %v6713_v4, %v6751_v3  ;;  %v4696_v26 = vld [vmem:[%s8289_s3 + $0x80] sm:$0xff]  ;;  %v8483_v12 = vld [vmem:[#allocation16_spill] sm:$0xff]  ;;  %v8486_v0 = vld [vmem:[#allocation14_spill] sm:$0xff] }
 0x471   : > { %8434 = vst [vmem:[#allocation53_spill] sm:$0xff] %v6879_v39  ;;  %v1922_v62 = vand.u32 2147483647, %v6689_v28  ;;  %v1940_v42 = vor.u32 1.1754944e-38, %v1939_v35  ;;  %v6901_v49 = vsel %vm6851_vm7, %v1970_v55, %v1966_v37  ;;  %vm1938_vm5 = vcmp.eq.f32.partialorder %v1937_v10, 8.507059e+37  ;;  %v8492_v15 = vld [vmem:[#allocation9_spill] sm:$0xff] }
 0x472   : > { %8438 = vst [vmem:[#allocation55_spill] sm:$0xff] %v6901_v49  ;;  %v1925_v28 = vor.u32 1.1754944e-38, %v1924_v59  ;;  %vm8445_vm9 = vcmask 523264   ;;  %v8498_v10 = vld [vmem:[#allocation31_spill] sm:$0xff] }
 0x473   : > { %vm1923_vm2 = vcmp.eq.f32.partialorder %v1922_v62, 8.507059e+37  ;;  %vm8446_vm1 = vmmov %vm8445_vm9  ;;  %v4692_v9 = vld [vmem:[%s8289_s3 + $0x60] sm:$0xff] }
 0x474   : > { %vm8447_vm10 = vmmov %vm8446_vm1 }
 0x475   : > { %vm8448_vm12 = vmmov %vm8446_vm1 }
 0x476   : > { %vm8449_vm13 = vmmov %vm8446_vm1 }
 0x477   : > { %vm8450_vm14 = vmmov %vm8446_vm1 }
 0x478   : > { %vm8451_vm15 = vmmov %vm8446_vm1 }
 0x479   : > { %vm8452_vm8 = vmmov %vm8446_vm1 }
 0x47a   : > { %vm8453_vm0 = vmmov %vm8446_vm1 }
 0x47b   : > { %vm8454_vm6 = vmmov %vm8453_vm0 }
 0x47c   : > { %vm8456_vm7 = vmmov %vm8453_vm0 }
 0x49d   : > { %v6665_v52 = vpop.f32.mrf.mxu0 }
 0x4a5   : > { %v6671_v24 = vpop.f32.mrf.mxu0 }
 0x4ad   : > { %v6677_v19 = vpop.f32.mrf.mxu0 }
 0x4b5   : > { %v6685_v48 = vpop.f32.mrf.mxu0 }
 0x4bd   : > { %v6705_v56 = vpop.f32.mrf.mxu0 }
 0x4be   : > { %v1987_v17 = vmul.f32 %v6879_v39, %v6705_v56  ;;  %v1972_v56 = vmul.f32 %v6901_v49, %v6685_v48  ;;  %v5499_v39 = vld [vmem:[%s5721_s29 + $0x10] sm:$0xff] }
 0x4c0   : > { %v6933_v16 = vadd.f32 %v1972_v56, %v5881_v33 }
 0x4c2   : > { %8442 = vst [vmem:[#allocation59_spill] sm:$0xff] %v6933_v16 }
 0x4c5   : > { %v6731_v2 = vpop.f32.mrf.mxu0 }
 0x4c6   : > { %v2002_v51 = vmul.f32 %v6846_v25, %v6731_v2  ;;  %v8431_v2 = vand.u32 2147483647, %v6681_v20 }
 0x4c8   : > { %vm6875_vm4 = vcmp.eq.f32.partialorder %v8431_v2, 8.507059e+37  ;;  %v6909_v3 = vadd.f32 %v2002_v51, %v5868_v36  ;;  %v6924_v36 = vadd.f32 %v1987_v17, %v5874_v38 }
 0x4c9   : > { %v6916_v45 = vsel %vm6875_vm4, %v6746_v23, %v1951_v5  ;;  %vm8460_vm4 = vmmov %vm8453_vm0 }
 0x4ca   : > { %8439 = vst [vmem:[#allocation56_spill] sm:$0xff] %v6909_v3  ;;  %v1957_v48 = vmul.f32 %v6916_v45, %v6677_v19 }
 0x4cb   : > { %8440 = vst [vmem:[#allocation57_spill] sm:$0xff] %v6916_v45 }
 0x4cc   : > { %8441 = vst [vmem:[#allocation58_spill] sm:$0xff] %v6924_v36 }
 0x4cd   : > { %v1778_v6 = vpop.f32.mrf.mxu0 }
 0x4ce   : > { %v2017_v7 = vmul.f32 %v6827_v60, %v1778_v6 }
 0x4d0   : > { %v6887_v13 = vadd.f32 %v2017_v7, %v5862_v30  ;;  %v1936_v30 = vsel %vm6865_vm3, %v6715_v44, %v1932_v31  ;;  %v1921_v44 = vsel %vm6895_vm11, %v6713_v4, %v1917_v8  ;;  %v6942_v4 = vadd.f32 %v1957_v48, %v5885_v40  ;;  %v8455_v40 = vld [vmem:[#allocation24_spill] sm:$0xff]  ;;  %vm8458_vm3 = vmmov %vm8453_vm0  ;;  %v8494_v7 = vld [vmem:[#allocation13_spill] sm:$0xff] }
 0x4d1   : > { %v6928_v35 = vsel %vm1938_vm5, %v1940_v42, %v1936_v30  ;;  %v6937_v19 = vsel %vm1923_vm2, %v1925_v28, %v1921_v44  ;;  %vm8462_vm11 = vmmov %vm8453_vm0  ;;  %v5486_v31 = vld [vmem:[%s8290_s4 + $0x10] ss:$0 sm:$0xff] }
 0x4d2   : > { %8435 = vst [vmem:[#allocation54_spill] sm:$0xff] %v6887_v13  ;;  %v1942_v23 = vmul.f32 %v6928_v35, %v6671_v24  ;;  %v1927_v38 = vmul.f32 %v6937_v19, %v6665_v52  ;;  %vm8464_vm5 = vmmov %vm8453_vm0  ;;  %v4697_v52 = vld [vmem:[%s8289_s3 + $0x88] sm:$0xff]  ;;  %v7035_v55 = vadd.f32 %v5486_v31, %v8498_v10 }
 0x4d3   : > { %8443 = vst [vmem:[#allocation60_spill] sm:$0xff] %v6942_v4  ;;  %vm8466_vm2 = vmmov %vm8453_vm0 }
 0x4d4   : > { %v6947_v24 = vadd.f32 %v1942_v23, %v5892_v34  ;;  %v6952_v33 = vadd.f32 %v1927_v38, %v5900_v43  ;;  %v8457_v34 = vld [vmem:[#allocation23_spill] sm:$0xff]  ;;  %v8459_v43 = vld [vmem:[#allocation29_spill] sm:$0xff]  ;;  %v3241_v32 = vpack.c.bf16 %v7035_v55, %v7035_v55 }
 0x4d5   : > { %v1781_v29 = vpop.f32.mrf.mxu0 }
 0x4d6   : > { %v2032_v22 = vmul.f32 %v6829_v21, %v1781_v29  ;;  %8444 = vst [vmem:[#allocation61_spill] sm:$0xff] %v6947_v24  ;;  %v8488_v29 = vld [vmem:[#allocation12_spill] sm:$0xff] }
 0x4d8   : > { %v6858_v6 = vadd.f32 %v2032_v22, %v5860_v14  ;;  %v8496_v22 = vld [vmem:[#allocation10_spill] sm:$0xff] }
 0x4da   : > { %8428 = vst [vmem:[#allocation52_spill] sm:$0xff] %v6858_v6  ;;  %2049 = vmatpush.msra.mxu0 %v6858_v6  ;;  %2114 = vmatpush.msra.mxu3 %v6858_v6 }
 0x4dc   : > { %2050 = vmatpush.msra.mxu0 %v6887_v13  ;;  %2115 = vmatpush.msra.mxu3 %v6887_v13 }
 0x4de   : > { %2051 = vmatpush.msra.mxu0 %v6909_v3  ;;  %2116 = vmatpush.msra.mxu3 %v6909_v3 }
 0x4e0   : > { %2052 = vmatpush.msra.mxu0 %v6924_v36  ;;  %2117 = vmatpush.msra.mxu3 %v6924_v36 }
 0x4e2   : > { %2053 = vmatpush.msra.mxu0 %v6933_v16  ;;  %2118 = vmatpush.msra.mxu3 %v6933_v16 }
 0x4e4   : > { %2054 = vmatpush.msra.mxu0 %v6942_v4  ;;  %2119 = vmatpush.msra.mxu3 %v6942_v4  ;;  %v5500_v4 = vld [vmem:[%s5721_s29 + $0x50] sm:$0xff] }
 0x4e6   : > { %2055 = vmatpush.msra.mxu0 %v6947_v24  ;;  %2120 = vmatpush.msra.mxu3 %v6947_v24 }
 0x4e8   : > { %2056 = vmatpush.msra.mxu0 %v6952_v33  ;;  %2121 = vmatpush.msra.mxu3 %v6952_v33 }
 0x4e9   : > { %4513 = vmatmul.msk.f32.vlgmr.msra.gmra.mxu0 %vm8445_vm9, %v5908_v47  ;;  %4529 = vmatmul.msk.f32.vlgmr.msra.gmra.mxu3 %vm8446_vm1, %v5903_v46  ;;  %v8461_v46 = vld [vmem:[#allocation30_spill] sm:$0xff]  ;;  %v8463_v47 = vld [vmem:[#allocation28_spill] sm:$0xff]  ;;  %vm8468_vm9 = vmmov %vm8453_vm0 }
 0x4ea   : > { %vm8470_vm1 = vmmov %vm8453_vm0  ;;  %3264 = vmatpush.bf16.msra.mxu3 %v4697_v52 }
 0x4ee   : > { %3265 = vmatpush.bf16.msra.mxu3 %v4696_v26 }
 0x4f1   : > { %4514 = vmatmul.msk.f32.gmra.mxu0 %vm8447_vm10, %v5928_v53  ;;  %4530 = vmatmul.msk.f32.gmra.mxu3 %vm8448_vm12, %v5923_v50  ;;  %v8465_v50 = vld [vmem:[#allocation27_spill] sm:$0xff]  ;;  %v8467_v53 = vld [vmem:[#allocation26_spill] sm:$0xff]  ;;  %vm8472_vm10 = vmmov %vm8453_vm0 }
 0x4f2   : > { %vm8474_vm12 = vmmov %vm8453_vm0 }
 0x4f9   : > { %4515 = vmatmul.msk.f32.gmra.mxu0 %vm8449_vm13, %v5938_v57  ;;  %4531 = vmatmul.msk.f32.gmra.mxu3 %vm8450_vm14, %v5941_v58  ;;  %v8469_v57 = vld [vmem:[#allocation25_spill] sm:$0xff]  ;;  %v4693_v58 = vld [vmem:[%s8289_s3 + $0x68] sm:$0xff]  ;;  %vm8476_vm13 = vmmov %vm8453_vm0 }
 0x4fa   : > { %2433 = vmatpush.bf16.msra.mxu1 %v4693_v58  ;;  %vm8478_vm14 = vmmov %vm8453_vm0 }
 0x4fe   : > { %2434 = vmatpush.bf16.msra.mxu1 %v4692_v9 }
 0x501   : > { %4516 = vmatmul.msk.f32.gmra.mxu0 %vm8451_vm15, %v5955_v63  ;;  %4532 = vmatmul.msk.f32.gmra.mxu3 %vm8452_vm8, %v5952_v61  ;;  %v8471_v61 = vld [vmem:[#allocation22_spill] sm:$0xff]  ;;  %v8473_v63 = vld [vmem:[#allocation21_spill] sm:$0xff]  ;;  %vm8480_vm15 = vmmov %vm8453_vm0 }
 0x502   : > { %vm8482_vm8 = vmmov %vm8453_vm0 }
 0x509   : > { %4517 = vmatmul.msk.f32.gmra.mxu0 %vm8453_vm0, %v5998_v11  ;;  %4533 = vmatmul.msk.f32.gmra.mxu3 %vm8454_vm6, %v5986_v1  ;;  %v8475_v1 = vld [vmem:[#allocation20_spill] sm:$0xff]  ;;  %v8477_v11 = vld [vmem:[#allocation19_spill] sm:$0xff]  ;;  %vm8485_vm6 = vmmov %vm8453_vm0 }
 0x511   : > { %4518 = vmatmul.msk.f32.gmra.mxu0 %vm8456_vm7, %v8455_v40  ;;  %4534 = vmatmul.msk.f32.gmra.mxu3 %vm8458_vm3, %v8457_v34  ;;  %vm8487_vm7 = vmmov %vm8453_vm0 }
 0x512   : > { %vm8489_vm3 = vmmov %vm8453_vm0 }
 0x519   : > { %4519 = vmatmul.msk.f32.gmra.mxu0 %vm8460_vm4, %v8459_v43  ;;  %4535 = vmatmul.msk.f32.gmra.mxu3 %vm8462_vm11, %v8461_v46  ;;  %vm8491_vm4 = vmmov %vm8453_vm0 }
 0x51a   : > { %vm8493_vm11 = vmmov %vm8453_vm0 }
 0x521   : > { %4520 = vmatmul.msk.f32.gmra.mxu0 %vm8464_vm5, %v8463_v47  ;;  %4536 = vmatmul.msk.f32.gmra.mxu3 %vm8466_vm2, %v8465_v50  ;;  %vm8495_vm5 = vmmov %vm8453_vm0  ;;  %v4691_v50 = vld [vmem:[%s8289_s3 + $0x58] sm:$0xff] }
 0x522   : > { %vm8497_vm2 = vmmov %vm8453_vm0  ;;  %2435 = vmatpush.bf16.msra.mxu1 %v4691_v50 }
 0x529   : > { %4521 = vmatmul.msk.f32.gmra.mxu0 %vm8468_vm9, %v8467_v53  ;;  %4537 = vmatmul.msk.f32.gmra.mxu3 %vm8470_vm1, %v8469_v57  ;;  %vm8499_vm9 = vcmask 261120   ;;  %v4690_v53 = vld [vmem:[%s8289_s3 + $0x50] sm:$0xff] }
 0x52a   : > { %2436 = vmatpush.bf16.msra.mxu1 %v4690_v53  ;;  %vm8500_vm1 = vmmov %vm8499_vm9  ;;  %v5489_v53 = vld [vmem:[%s5721_s29 + $0x30] sm:$0xff] }
 0x531   : > { %4522 = vmatmul.msk.f32.gmra.mxu0 %vm8472_vm10, %v8471_v61  ;;  %4538 = vmatmul.msk.f32.gmra.mxu3 %vm8474_vm12, %v8473_v63  ;;  %vm8501_vm10 = vmmov %vm8500_vm1  ;;  %vm2858_vm12 = vcmask 23568  }
 0x532   : > { %v2862_v16 = vsel %vm2858_vm12, %v5499_v39, 0.0  ;;  %v2888_v45 = vsel %vm2858_vm12, %v5500_v4, 0.0  ;;  %v5502_v39 = vld [vmem:[%s5721_s29 + $0x58] sm:$0xff] }
 0x539   : > { %4523 = vmatmul.msk.f32.gmra.mxu0 %vm8476_vm13, %v8475_v1  ;;  %4539 = vmatmul.msk.f32.gmra.mxu3 %vm8478_vm14, %v8477_v11  ;;  %v4695_v1 = vld [vmem:[%s8289_s3 + $0x78] sm:$0xff]  ;;  %vm8502_vm13 = vmmov %vm8453_vm0 }
 0x53a   : > { %2638 = vmatpush.bf16.msra.mxu2 %v4695_v1 }
 0x541   : > { %4524 = vmatmul.msk.f32.gmra.mxu0 %vm8480_vm15, %v8479_v27  ;;  %4540 = vmatmul.msk.f32.gmra.mxu3 %vm8482_vm8, %v8481_v41  ;;  %v8347_v41 = vmov 3  }
 0x542   : > { %5135 = vset.pattern.permute.xlu1 %v8347_v41  ;;  %5136 = vset.pattern.permute.xlu2 %v8347_v41 }
 0x543   : > { %5134 = vset.pattern.permute.xlu0 %v8347_v41  ;;  %v7186_v41 = vld [vmem:[%s5721_s29] sm:$0xff] }
 0x544   : > { %v2859_v6 = vsel %vm2858_vm12, %v7186_v41, 0.0 }
 0x549   : > { %4525 = vmatmul.msk.f32.gmra.mxu0 %vm8453_vm0, %v8483_v12  ;;  %4541 = vmatmul.msk.f32.gmra.mxu3 %vm8485_vm6, %v8484_v54  ;;  %vm3502_vm6 = vcmp.gt.f32.partialorder %v7186_v41, 0.5 }
 0x551   : > { %4526 = vmatmul.msk.f32.gmra.mxu0 %vm8487_vm7, %v8486_v0  ;;  %4542 = vmatmul.msk.f32.gmra.mxu3 %vm8489_vm3, %v8488_v29  ;;  %vm8505_vm3 = vmmov %vm8500_vm1 }
 0x559   : > { %4527 = vmatmul.msk.f32.gmra.mxu0 %vm8491_vm4, %v8490_v18  ;;  %4543 = vmatmul.msk.f32.gmra.mxu3 %vm8493_vm11, %v8492_v15  ;;  %vm8506_vm4 = vmmov %vm8500_vm1 }
 0x55a   : > { %vm8507_vm11 = vmmov %vm8497_vm2 }
 0x561   : > { %4528 = vmatmul.msk.f32.gmra.mxu0 %vm8495_vm5, %v8494_v7  ;;  %4544 = vmatmul.msk.f32.gmra.mxu3 %vm8497_vm2, %v8496_v22 }
 0x566   : > { %v2058_v37 = vpop.f32.mrf.mxu0 }
 0x569   : > { %4609 = vmatmul.msk.bf16.vlgmr.msra.gmra.mxu3 %vm8499_vm9, %v3241_v32  ;;  %vm2911_vm9 = vcmask 31768  }
 0x56c   : > { %v7040_v51 = vpop.f32.mrf.mxu3 }
 0x56e   : > { %v2061_v59 = vpop.f32.mrf.mxu0 }
 0x56f   : > { %v5094_v54 = vpack.i.bf16 %v2061_v59, %v2058_v37 }
 0x574   : > { %v7045_v5 = vpop.f32.mrf.mxu3 }
 0x575   : > { %v5054_v2 = vpack.i.bf16 %v7045_v5, %v7040_v51 }
 0x576   : > { %v7049_v14 = vpop.f32.mrf.mxu0 }
 0x577   : > { %5055 = vrot.lane.b32.xlu2 %v5054_v2, %s5603_s20  ;;  %v7141_v2 = vld [vmem:[%s5721_s29 + $0x28] sm:$0xff] }
 0x578   : > { %vm3505_vm15 = vcmp.gt.f32.partialorder %v7141_v2, 0.5 }
 0x57c   : > { %v7052_v8 = vpop.f32.mrf.mxu3 }
 0x57e   : > { %v7054_v62 = vpop.f32.mrf.mxu0 }
 0x57f   : > { %v5099_v50 = vpack.i.bf16 %v7054_v62, %v7049_v14 }
 0x584   : > { %v7056_v17 = vpop.f32.mrf.mxu3 }
 0x585   : > { %v5059_v20 = vpack.i.bf16 %v7056_v17, %v7052_v8 }
 0x586   : > { %v7060_v42 = vpop.f32.mrf.mxu0 }
 0x587   : > { %5060 = vrot.lane.b32.xlu0 %v5059_v20, %s5603_s20  ;;  %v2873_v20 = vsel %vm2858_vm12, %v7141_v2, 0.0 }
 0x58c   : > { %v7063_v30 = vpop.f32.mrf.mxu3 }
 0x58e   : > { %v7065_v56 = vpop.f32.mrf.mxu0 }
 0x58f   : > { %v5104_v21 = vpack.i.bf16 %v7065_v56, %v7060_v42 }
 0x594   : > { %v7067_v28 = vpop.f32.mrf.mxu3 }
 0x595   : > { %v5064_v44 = vpack.i.bf16 %v7067_v28, %v7063_v30 }
 0x596   : > { %v7071_v48 = vpop.f32.mrf.mxu0 }
 0x597   : > { %5065 = vrot.lane.b32.xlu1 %v5064_v44, %s5603_s20 }
 0x59c   : > { %v7074_v23 = vpop.f32.mrf.mxu3 }
 0x59e   : > { %v7076_v38 = vpop.f32.mrf.mxu0 }
 0x59f   : > { %v5109_v32 = vpack.i.bf16 %v7076_v38, %v7071_v48 }
 0x5a4   : > { %v7078_v40 = vpop.f32.mrf.mxu3 }
 0x5a5   : > { %v5069_v34 = vpack.i.bf16 %v7078_v40, %v7074_v23 }
 0x5a6   : > { %v7082_v43 = vpop.f32.mrf.mxu0 }
 0x5a7   : > { %5070 = vrot.lane.b32.xlu2 %v5069_v34, %s5603_s20 }
 0x5ac   : > { %v7085_v46 = vpop.f32.mrf.mxu3 }
 0x5ae   : > { %v7087_v47 = vpop.f32.mrf.mxu0 }
 0x5b4   : > { %v7095_v57 = vpop.f32.mrf.mxu3 }
 0x5b5   : > { %v5074_v58 = vpack.i.bf16 %v7095_v57, %v7085_v46 }
 0x5b6   : > { %v7100_v61 = vpop.f32.mrf.mxu0 }
 0x5b7   : > { %5075 = vrot.lane.b32.xlu0 %v5074_v58, %s5603_s20  ;;  %v2875_v58 = vsel %vm2858_vm12, %v5489_v53, 0.0 }
 0x5bc   : > { %v7102_v63 = vpop.f32.mrf.mxu3 }
 0x5be   : > { %v7107_v11 = vpop.f32.mrf.mxu0 }
 0x5c4   : > { %v7109_v52 = vpop.f32.mrf.mxu3 }
 0x5c5   : > { %v5079_v27 = vpack.i.bf16 %v7109_v52, %v7102_v63 }
 0x5c6   : > { %v7117_v26 = vpop.f32.mrf.mxu0 }
 0x5c7   : > { %5080 = vrot.lane.b32.xlu1 %v5079_v27, %s5603_s20 }
 0x5cc   : > { %v7119_v12 = vpop.f32.mrf.mxu3 }
 0x5ce   : > { %v7130_v9 = vpop.f32.mrf.mxu0 }
 0x5cf   : > { %5095 = vrot.lane.b32.xlu1 %v5094_v54, %s5603_s20  ;;  %v5124_v1 = vpack.i.bf16 %v7130_v9, %v7117_v26 }
 0x5d1   : > { %v5056_v0 = vpop.permute.xlu2 %5055 }
 0x5d2   : > { %v5058_v29 = vunpack.i.h.bf16 %v5056_v0  ;;  %v5057_v18 = vunpack.i.l.bf16 %v5056_v0  ;;  %v5490_v0 = vld [vmem:[%s5721_s29 + $0x38] sm:$0xff] }
 0x5d4   : > { %v2299_v15 = vsel %vm8500_vm1, %v2058_v37, %v5057_v18  ;;  %v2300_v7 = vsel %vm8501_vm10, %v2061_v59, %v5058_v29  ;;  %v7124_v22 = vpop.f32.mrf.mxu3  ;;  %v7136_v37 = vld [vmem:[%s5721_s29 + $0x20] sm:$0xff]  ;;  %v2877_v29 = vsel %vm2858_vm12, %v5490_v0, 0.0  ;;  %v7160_v18 = vld [vmem:[%s5721_s29 + $0x8] sm:$0xff]  ;;  %vm8509_vm10 = vmmov %vm8500_vm1 }
 0x5d5   : > { %v2340_v31 = vpack.c.bf16 %v2300_v7, %v2299_v15  ;;  %v5084_v10 = vpack.i.bf16 %v7124_v22, %v7119_v12  ;;  %v2872_v59 = vsel %vm2858_vm12, %v7136_v37, 0.0  ;;  %vm3503_vm14 = vcmp.gt.f32.partialorder %v7160_v18, 0.5  ;;  %v7164_v15 = vld [vmem:[%s5721_s29 + $0x60] sm:$0xff] }
 0x5d6   : > { %v2874_v34 = vadd.f32 %v2873_v20, %v2872_v59  ;;  %v7154_v27 = vpop.f32.mrf.mxu0  ;;  %v2898_v7 = vsel %vm2858_vm12, %v7164_v15, 0.0  ;;  %v5114_v20 = vpack.i.bf16 %v7087_v47, %v7082_v43  ;;  %vm3504_vm8 = vcmp.gt.f32.partialorder %v7136_v37, 0.5 }
 0x5d7   : > { %5085 = vrot.lane.b32.xlu2 %v5084_v10, %s5603_s20  ;;  %4561 = vmatmul.msk.bf16.vlgmr.msra.gmra.mxu1 %vm8502_vm13, %v2340_v31  ;;  %v7169_v31 = vld [vmem:[%s5721_s29 + $0x68] sm:$0xff]  ;;  %vm3508_vm0 = vcmp.gt.f32.partialorder %v7164_v15, 0.5  ;;  %vm8512_vm13 = vmmov %vm8500_vm1 }
 0x5d8   : > { %5110 = vrot.lane.b32.xlu1 %v5109_v32, %s5603_s20  ;;  %v2876_v54 = vadd.f32 %v2875_v58, %v2874_v34  ;;  %v2899_v10 = vsel %vm2858_vm12, %v7169_v31, 0.0  ;;  %vm3509_vm2 = vcmp.gt.f32.partialorder %v7169_v31, 0.5 }
 0x5d9   : > { %v2900_v58 = vadd.f32 %v2899_v10, %v2898_v7  ;;  %v2860_v7 = vsel %vm2858_vm12, %v7160_v18, 0.0 }
 0x5da   : > { %v2878_v59 = vadd.f32 %v2877_v29, %v2876_v54 }
 0x5dc   : > { %v7145_v44 = vpop.f32.mrf.mxu3  ;;  %v2879_v54 = vrot.slane %v2878_v59, 4 }
 0x5de   : > { %v7192_v10 = vpop.f32.mrf.mxu0  ;;  %v2880_v3 = vadd.f32 %v2879_v54, %v2878_v59 }
 0x5df   : > { %5100 = vrot.lane.b32.xlu2 %v5099_v50, %s5603_s20  ;;  %v8503_v50 = vmov 0   ;;  %v5129_v25 = vpack.i.bf16 %v7192_v10, %v7154_v27 }
 0x5e0   : > { %5125 = vrot.lane.b32.xlu1 %v5124_v1, %s5603_s20  ;;  %v3511_v53 = vsel %vm3503_vm14, 1, %v8503_v50  ;;  %v5494_v1 = vld [vmem:[%s5721_s29 + $0x70] sm:$0xff]  ;;  %v3513_v60 = vsel %vm3505_vm15, 1, %v8503_v50  ;;  %v2881_v59 = vrot.slane %v2880_v3, 2  ;;  %vm8513_vm14 = vmmov %vm8500_vm1 }
 0x5e1   : > { %v2901_v0 = vsel %vm2858_vm12, %v5494_v1, 0.0  ;;  %v5496_v1 = vld [vmem:[%s5721_s29 + $0x78] sm:$0xff]  ;;  %vm8514_vm15 = vmmov %vm8507_vm11 }
 0x5e2   : > { %v2902_v29 = vadd.f32 %v2901_v0, %v2900_v58  ;;  %v7202_v58 = vld [vmem:[%s5721_s29 + $0x48] sm:$0xff] }
 0x5e3   : > { %v2886_v0 = vsel %vm2858_vm12, %v7202_v58, 0.0  ;;  %vm3507_vm5 = vcmp.gt.f32.partialorder %v7202_v58, 0.5 }
 0x5e4   : > { %v7173_v32 = vpop.f32.mrf.mxu3 }
 0x5e5   : > { %v5089_v34 = vpack.i.bf16 %v7173_v32, %v7145_v44 }
 0x5e7   : > { %5090 = vrot.lane.b32.xlu0 %v5089_v34, %s5603_s20  ;;  %5115 = vrot.lane.b32.xlu2 %v5114_v20, %s5603_s20  ;;  %v2903_v20 = vsel %vm2858_vm12, %v5496_v1, 0.0  ;;  %v7197_v34 = vld [vmem:[%s5721_s29 + $0x40] sm:$0xff]  ;;  %v2861_v1 = vadd.f32 %v2860_v7, %v2859_v6  ;;  %v5501_v7 = vld [vmem:[%s5721_s29 + $0x18] sm:$0xff]  ;;  %s4216_s29 = scalar_lea.hbm %s8293_s7, %s5706_s15  ;;  %s4186_s15 = scalar_lea.sflag [#allocation5], %s7823_s23 }
 0x5e8   : > { %3522 = vperm.xlu1 %5135, %v3511_v53   ;;  %v2885_v53 = vsel %vm2858_vm12, %v7197_v34, 0.0  ;;  %v2904_v36 = vadd.f32 %v2903_v20, %v2902_v29  ;;  %v2864_v29 = vsel %vm2858_vm12, %v5501_v7, 0.0  ;;  %vm3506_vm7 = vcmp.gt.f32.partialorder %v7197_v34, 0.5 }
 0x5e9   : > { %v2887_v49 = vadd.f32 %v2886_v0, %v2885_v53  ;;  %v2863_v6 = vadd.f32 %v2862_v16, %v2861_v1  ;;  %v2890_v53 = vsel %vm2858_vm12, %v5502_v39, 0.0  ;;  %v3516_v16 = vsel %vm3508_vm0, 1, %v8503_v50  ;;  %vm8510_vm12 = vmmov %vm8507_vm11 }
 0x5ea   : > { %v2905_v54 = vrot.slane %v2904_v36, 4  ;;  %v2882_v0 = vadd.f32 %v2881_v59, %v2880_v3  ;;  %v3514_v59 = vsel %vm3506_vm7, 1, %v8503_v50  ;;  %vm8516_vm0 = vmmov %vm8500_vm1 }
 0x5eb   : > { %v2889_v20 = vadd.f32 %v2888_v45, %v2887_v49  ;;  %vm8518_vm7 = vmmov %vm8516_vm0 }
 0x5ec   : > { %v7208_v13 = vpop.f32.mrf.mxu3  ;;  %v2906_v1 = vadd.f32 %v2905_v54, %v2904_v36  ;;  %v2883_v7 = vrot.slane %v2882_v0, 1 }
 0x5ed   : > { %8504 = vst [vmem:[#allocation24_spill] sm:$0xff] %v7208_v13  ;;  %v2891_v13 = vadd.f32 %v2890_v53, %v2889_v20 }
 0x5ee   : > { %v2907_v39 = vrot.slane %v2906_v1, 2  ;;  %v2884_v53 = vadd.f32 %v2883_v7, %v2882_v0 }
 0x5ef   : > { %5105 = vrot.lane.b32.xlu0 %v5104_v21, %s5603_s20  ;;  %5130 = vrot.lane.b32.xlu2 %v5129_v25, %s5603_s20  ;;  %v5119_v21 = vpack.i.bf16 %v7107_v11, %v7100_v61  ;;  %v2865_v25 = vadd.f32 %v2864_v29, %v2863_v6  ;;  %v3510_v29 = vsel %vm3502_vm6, 1, %v8503_v50  ;;  %vm8517_vm6 = vmmov %vm8507_vm11 }
 0x5f0   : > { %3528 = vperm.xlu1 %5135, %v3513_v60   ;;  %v3512_v60 = vsel %vm3504_vm8, 1, %v8503_v50  ;;  %vm8515_vm8 = vmmov %vm8500_vm1 }
 0x5f1   : > { %v2866_v49 = vrot.slane %v2865_v25, 4 }
 0x5f3   : > { %v2867_v54 = vadd.f32 %v2866_v49, %v2865_v25  ;;  %v3517_v25 = vsel %vm3509_vm2, 1, %v8503_v50 }
 0x5f4   : > { %v3269_v4 = vpop.f32.mrf.mxu3 }
 0x5f5   : > { %v2892_v4 = vrot.slane %v2891_v13, 4 }
 0x5f7   : > { %5120 = vrot.lane.b32.xlu0 %v5119_v21, %s5603_s20  ;;  %3525 = vperm.xlu2 %5136, %v3512_v60   ;;  %v2908_v21 = vadd.f32 %v2907_v39, %v2906_v1  ;;  %v2893_v60 = vadd.f32 %v2892_v4, %v2891_v13 }
 0x5f8   : > { %3537 = vperm.xlu1 %5135, %v3516_v16   ;;  %v8508_v16 = vmov 2  }
 0x5f9   : > { %v5061_v45 = vpop.permute.xlu0 %5060 }
 0x5fa   : > { %v5063_v24 = vunpack.i.h.bf16 %v5061_v45  ;;  %v5062_v6 = vunpack.i.l.bf16 %v5061_v45  ;;  %v2868_v45 = vrot.slane %v2867_v54, 2 }
 0x5fc   : > { %v2301_v3 = vsel %vm8505_vm3, %v7049_v14, %v5062_v6  ;;  %v2302_v36 = vsel %vm8506_vm4, %v7054_v62, %v5063_v24  ;;  %v2909_v14 = vrot.slane %v2908_v21, 1  ;;  %v2894_v6 = vrot.slane %v2893_v60, 2  ;;  %vm8519_vm3 = vmmov %vm8516_vm0 }
 0x5fd   : > { %v2341_v20 = vpack.c.bf16 %v2302_v36, %v2301_v3  ;;  %v3515_v24 = vsel %vm3507_vm5, 1, %v8503_v50  ;;  %v2869_v62 = vadd.f32 %v2868_v45, %v2867_v54  ;;  %v2922_v3 = vsel %vm2911_vm9, %v7141_v2, 0.0  ;;  %vm8520_vm4 = vmmov %vm8517_vm6 }
 0x5fe   : > { %v2910_v13 = vadd.f32 %v2909_v14, %v2908_v21  ;;  %v2895_v0 = vadd.f32 %v2894_v6, %v2893_v60  ;;  %v2930_v50 = vsel %vm2911_vm9, %v7197_v34, 0.0  ;;  %v2931_v36 = vsel %vm2911_vm9, %v7202_v58, 0.0  ;;  %vm8522_vm5 = vmmov %vm8516_vm0 }
 0x5ff   : > { %4562 = vmatmul.msk.bf16.gmra.mxu1 %vm8507_vm11, %v2341_v20  ;;  %3519 = vperm.xlu0 %5134, %v3510_v29   ;;  %v2870_v1 = vrot.slane %v2869_v62, 1  ;;  %v2921_v29 = vsel %vm2911_vm9, %v7136_v37, 0.0  ;;  %v2932_v45 = vadd.f32 %v2931_v36, %v2930_v50  ;;  %v8511_v14 = vmov 3   ;;  %vm8521_vm11 = vmmov %vm8516_vm0 }
 0x600   : > { %5138 = vset.pattern.permute.xlu1 %v8508_v16  ;;  %3531 = vperm.xlu2 %5136, %v3514_v59   ;;  %v2896_v7 = vrot.slane %v2895_v0, 1  ;;  %v2923_v60 = vadd.f32 %v2922_v3, %v2921_v29  ;;  %v2939_v29 = vsel %vm2911_vm9, %v7164_v15, 0.0  ;;  %v2940_v3 = vsel %vm2911_vm9, %v7169_v31, 0.0  ;;  %vm8523_vm2 = vmmov %vm8520_vm4 }
 0x601   : > { %3007 = vperm.xlu1 %5138, %v2884_v53   ;;  %v2871_v20 = vadd.f32 %v2870_v1, %v2869_v62  ;;  %v2913_v62 = vsel %vm2911_vm9, %v7160_v18, 0.0 }
 0x602   : > { %v2897_v21 = vadd.f32 %v2896_v7, %v2895_v0  ;;  %v2924_v6 = vrot.slane %v2923_v60, 4 }
 0x607   : > { %3534 = vperm.xlu0 %5134, %v3515_v24   ;;  %v2912_v24 = vsel %vm2911_vm9, %v7186_v41, 0.0  ;;  %vm8524_vm9 = vmmov %vm8516_vm0 }
 0x608   : > { %3540 = vperm.xlu2 %5136, %v3517_v25   ;;  %v2925_v25 = vadd.f32 %v2924_v6, %v2923_v60 }
 0x609   : > { %3017 = vperm.xlu1 %5138, %v2910_v13   ;;  %v5066_v49 = vpop.permute.xlu1 %5065 }
 0x60a   : > { %v5068_v39 = vunpack.i.h.bf16 %v5066_v49  ;;  %v5067_v4 = vunpack.i.l.bf16 %v5066_v49 }
 0x60c   : > { %v2303_v59 = vsel %vm8500_vm1, %v7060_v42, %v5067_v4  ;;  %v2304_v54 = vsel %vm8509_vm10, %v7065_v56, %v5068_v39  ;;  %v2933_v42 = vrot.slane %v2932_v45, 4  ;;  %v5071_v56 = vpop.permute.xlu2 %5070  ;;  %vm8525_vm1 = vmmov %vm8516_vm0 }
 0x60d   : > { %v2342_v53 = vpack.c.bf16 %v2304_v54, %v2303_v59  ;;  %v5073_v13 = vunpack.i.h.bf16 %v5071_v56  ;;  %v5072_v0 = vunpack.i.l.bf16 %v5071_v56  ;;  %vm8526_vm10 = vmmov %vm8523_vm2 }
 0x60e   : > { %v2934_v1 = vadd.f32 %v2933_v42, %v2932_v45 }
 0x60f   : > { %4563 = vmatmul.msk.bf16.gmra.mxu1 %vm8510_vm12, %v2342_v53  ;;  %5137 = vset.pattern.permute.xlu0 %v8508_v16  ;;  %v2305_v49 = vsel %vm8512_vm13, %v7071_v48, %v5072_v0  ;;  %v2306_v7 = vsel %vm8513_vm14, %v7076_v38, %v5073_v13  ;;  %v2941_v48 = vadd.f32 %v2940_v3, %v2939_v29  ;;  %v7289_v13 = vperm.slane %v7035_v55, 0  ;;  %vm8527_vm12 = vmmov %vm8516_vm0 }
 0x610   : > { %5139 = vset.pattern.permute.xlu2 %v8508_v16  ;;  %3002 = vperm.xlu0 %5137, %v2871_v20   ;;  %v2914_v16 = vadd.f32 %v2913_v62, %v2912_v24  ;;  %v2935_v39 = vrot.slane %v2934_v1, 2  ;;  %vm8528_vm13 = vmmov %vm8516_vm0 }
 0x611   : > { %5142 = vset.pattern.permute.xlu1 %v8511_v14  ;;  %3012 = vperm.xlu2 %5139, %v2897_v21   ;;  %v2942_v54 = vrot.slane %v2941_v48, 4  ;;  %vm8529_vm14 = vmmov %vm8516_vm0 }
 0x612   : > { %3089 = vperm.xlu1 %5142, %v7136_v37   ;;  %v2926_v37 = vrot.slane %v2925_v25, 2  ;;  %v2915_v4 = vrot.slane %v2914_v16, 4  ;;  %v2936_v36 = vadd.f32 %v2935_v39, %v2934_v1 }
 0x613   : > { %v2943_v60 = vadd.f32 %v2942_v54, %v2941_v48 }
 0x614   : > { %v2927_v50 = vadd.f32 %v2926_v37, %v2925_v25  ;;  %v2916_v59 = vadd.f32 %v2915_v4, %v2914_v16 }
 0x615   : > { %v2944_v42 = vrot.slane %v2943_v60, 2 }
 0x616   : > { %v2928_v38 = vrot.slane %v2927_v50, 1 }
 0x617   : > { %v2945_v25 = vadd.f32 %v2944_v42, %v2943_v60 }
 0x618   : > { %5141 = vset.pattern.permute.xlu0 %v8511_v14  ;;  %v2929_v20 = vadd.f32 %v2928_v38, %v2927_v50  ;;  %v4694_v50 = vld [vmem:[%s8289_s3 + $0x70] sm:$0xff]  ;;  %v7324_v38 = vld [vmem:[%s8290_s4 + $0x28] ss:$0 sm:$0xff] }
 0x619   : > { %5140 = vset.pattern.permute.xlu2 %v8511_v14  ;;  %3085 = vperm.xlu0 %5141, %v7160_v18   ;;  %v2343_v18 = vpack.c.bf16 %v2306_v7, %v2305_v49  ;;  %v3921_v7 = vrot.slane %v7035_v55, 2 }
 0x61a   : > { %3097 = vperm.xlu1 %5142, %v7197_v34   ;;  %3081 = vperm.xlu2 %5140, %v7186_v41   ;;  %v2937_v41 = vrot.slane %v2936_v36, 1  ;;  %v2917_v34 = vrot.slane %v2916_v59, 2 }
 0x61b   : > { %v7309_v3 = vperm.slane %v3921_v7, 0  ;;  %2639 = vmatpush.bf16.msra.mxu2 %v4694_v50 }
 0x61c   : > { %v2938_v53 = vadd.f32 %v2937_v41, %v2936_v36  ;;  %v2918_v21 = vadd.f32 %v2917_v34, %v2916_v59 }
 0x61f   : > { %4564 = vmatmul.msk.bf16.gmra.mxu1 %vm8514_vm15, %v2343_v18  ;;  %vm8530_vm15 = vmmov %vm8523_vm2 }
 0x621   : > { %3105 = vperm.xlu0 %5141, %v7164_v15   ;;  %v2919_v15 = vrot.slane %v2918_v21, 1 }
 0x622   : > { %3109 = vperm.xlu1 %5142, %v7169_v31   ;;  %3093 = vperm.xlu2 %5140, %v7141_v2   ;;  %v3920_v31 = vrot.slane %v7035_v55, 1 }
 0x623   : > { %v2920_v62 = vadd.f32 %v2919_v15, %v2918_v21 }
 0x624   : > { %v7292_v0 = vperm.slane %v3920_v31, 0 }
 0x629   : > { %v5076_v45 = vpop.permute.xlu0 %5075  ;;  %3163 = vperm.xlu0 %5141, %v2929_v20  }
 0x62a   : > { %v5078_v14 = vunpack.i.h.bf16 %v5076_v45  ;;  %v5077_v6 = vunpack.i.l.bf16 %v5076_v45  ;;  %3168 = vperm.xlu1 %5142, %v2938_v53   ;;  %3101 = vperm.xlu2 %5140, %v7202_v58  }
 0x62c   : > { %v2307_v2 = vsel %vm8515_vm8, %v7082_v43, %v5077_v6  ;;  %v2308_v56 = vsel %vm8516_vm0, %v7087_v47, %v5078_v14  ;;  %v2946_v43 = vrot.slane %v2945_v25, 1  ;;  %v3922_v47 = vrot.slane %v7035_v55, 3  ;;  %vm8531_vm8 = vmmov %vm8516_vm0 }
 0x62d   : > { %v2344_v24 = vpack.c.bf16 %v2308_v56, %v2307_v2 }
 0x62e   : > { %v2947_v58 = vadd.f32 %v2946_v43, %v2945_v25  ;;  %v7299_v1 = vperm.slane %v3922_v47, 0 }
 0x62f   : > { %4565 = vmatmul.msk.bf16.gmra.mxu1 %vm8517_vm6, %v2344_v24  ;;  %vm8532_vm6 = vmmov %vm8523_vm2 }
 0x631   : > { %3963 = vrot.lane.b32.xlu0 %v7289_v13, %s5603_s20  ;;  %v5086_v18 = vpop.permute.xlu2 %5085 }
 0x632   : > { %3965 = vrot.lane.b32.xlu1 %v7292_v0, %s5603_s20  ;;  %3158 = vperm.xlu2 %5140, %v2920_v62   ;;  %v5088_v55 = vunpack.i.h.bf16 %v5086_v18  ;;  %v5087_v36 = vunpack.i.l.bf16 %v5086_v18 }
 0x639   : > { %v5081_v16 = vpop.permute.xlu1 %5080  ;;  %3969 = vrot.lane.b32.xlu0 %v7299_v1, %s5603_s20  ;;  %v5101_v56 = vpop.permute.xlu2 %5100 }
 0x63a   : > { %v5083_v37 = vunpack.i.h.bf16 %v5081_v16  ;;  %v5082_v49 = vunpack.i.l.bf16 %v5081_v16  ;;  %3173 = vperm.xlu2 %5140, %v2947_v58   ;;  %v5103_v24 = vunpack.i.h.bf16 %v5101_v56  ;;  %v5102_v62 = vunpack.i.l.bf16 %v5101_v56 }
 0x63c   : > { %v2309_v39 = vsel %vm8518_vm7, %v7100_v61, %v5082_v49  ;;  %v2310_v4 = vsel %vm8519_vm3, %v7107_v11, %v5083_v37  ;;  %v2311_v61 = vsel %vm8521_vm11, %v7117_v26, %v5087_v36  ;;  %v2312_v11 = vsel %vm8522_vm5, %v7130_v9, %v5088_v55  ;;  %vm8533_vm7 = vmmov %vm8516_vm0 }
 0x63d   : > { %v2345_v29 = vpack.c.bf16 %v2310_v4, %v2309_v39  ;;  %v2346_v59 = vpack.c.bf16 %v2312_v11, %v2311_v61  ;;  %v2318_v25 = vsel %vm8531_vm8, %v7056_v17, %v5103_v24  ;;  %v2317_v43 = vsel %vm8516_vm0, %v7052_v8, %v5102_v62  ;;  %vm8534_vm3 = vmmov %vm8516_vm0 }
 0x63e   : > { %v2349_v58 = vpack.c.bf16 %v2318_v25, %v2317_v43  ;;  %vm8536_vm11 = vmmov %vm8516_vm0 }
 0x63f   : > { %4566 = vmatmul.msk.bf16.gmra.mxu1 %vm8520_vm4, %v2345_v29  ;;  %vm8535_vm4 = vmmov %vm8523_vm2 }
 0x640   : > { %vm8537_vm5 = vmmov %vm8516_vm0 }
 0x641   : > { %v5096_v45 = vpop.permute.xlu1 %5095  ;;  %vm8546_vm8 = vmmov %vm8516_vm0 }
 0x642   : > { %3967 = vrot.lane.b32.xlu2 %v7309_v3, %s5603_s20  ;;  %v5098_v15 = vunpack.i.h.bf16 %v5096_v45  ;;  %v5097_v42 = vunpack.i.l.bf16 %v5096_v45 }
 0x64a   : > { %v5111_v55 = vpop.permute.xlu1 %5110 }
 0x64b   : > { %v5113_v11 = vunpack.i.h.bf16 %v5111_v55 }
 0x64f   : > { %4567 = vmatmul.msk.bf16.gmra.mxu1 %vm8523_vm2, %v2346_v59  ;;  %v5112_v59 = vunpack.i.l.bf16 %v5111_v55  ;;  %vm8538_vm2 = vmmov %vm8516_vm0 }
 0x654   : > { %v2438_v48 = vpop.f32.mrf.mxu1 }
 0x655   : > { %v2439_v34 = vadd.f32 %v7324_v38, %v2438_v48  ;;  %v2321_v48 = vsel %vm8538_vm2, %v7074_v23, %v5112_v59 }
 0x657   : > { %5300 = vtanh.f32 %v2439_v34 }
 0x659   : > { %v5091_v41 = vpop.permute.xlu0 %5090 }
 0x65a   : > { %v5093_v54 = vunpack.i.h.bf16 %v5091_v41  ;;  %v5092_v20 = vunpack.i.l.bf16 %v5091_v41 }
 0x65c   : > { %v2313_v26 = vsel %vm8524_vm9, %v7154_v27, %v5092_v20  ;;  %v2314_v9 = vsel %vm8525_vm1, %v7192_v10, %v5093_v54  ;;  %v2440_v53 = vpop.f32.mrf.mxu1  ;;  %v2316_v27 = vsel %vm8528_vm13, %v7045_v5, %v5098_v15  ;;  %v2315_v10 = vsel %vm8529_vm14, %v7040_v51, %v5097_v42  ;;  %vm8539_vm9 = vmmov %vm8535_vm4 }
 0x65d   : > { %v2347_v21 = vpack.c.bf16 %v2314_v9, %v2313_v26  ;;  %v2441_v60 = vadd.f32 %v7324_v38, %v2440_v53  ;;  %v5301_v14 = vpop.eup %5300  ;;  %v2348_v2 = vpack.c.bf16 %v2316_v27, %v2315_v10  ;;  %vm8540_vm1 = vmmov %vm8516_vm0  ;;  %v5116_v9 = vpop.permute.xlu2 %5115 }
 0x65e   : > { %v5117_v45 = vunpack.i.l.bf16 %v5116_v9  ;;  %vm8543_vm13 = vmmov %vm8535_vm4 }
 0x65f   : > { %5302 = vtanh.f32 %v2441_v60  ;;  %4568 = vmatmul.msk.bf16.gmra.mxu1 %vm8526_vm10, %v2347_v21  ;;  %v5118_v60 = vunpack.i.h.bf16 %v5116_v9  ;;  %vm8541_vm10 = vmmov %vm8516_vm0 }
 0x660   : > { %vm8544_vm14 = vmmov %vm8516_vm0 }
 0x661   : > { %v5106_v5 = vpop.permute.xlu0 %5105  ;;  %v2324_v23 = vsel %vm8541_vm10, %v7095_v57, %v5118_v60  ;;  %vm8554_vm2 = vmmov %vm8540_vm1 }
 0x662   : > { %v5108_v37 = vunpack.i.h.bf16 %v5106_v5  ;;  %v5107_v49 = vunpack.i.l.bf16 %v5106_v5  ;;  %vm8556_vm10 = vmmov %vm8540_vm1 }
 0x664   : > { %v2320_v17 = vsel %vm8533_vm7, %v7067_v28, %v5108_v37  ;;  %v2319_v8 = vsel %vm8534_vm3, %v7063_v30, %v5107_v49  ;;  %v2322_v30 = vsel %vm8537_vm5, %v7078_v40, %v5113_v11  ;;  %vm8549_vm7 = vmmov %vm8540_vm1 }
 0x665   : > { %v5303_v6 = vpop.eup %5302  ;;  %v2350_v4 = vpack.c.bf16 %v2320_v17, %v2319_v8  ;;  %v2351_v41 = vpack.c.bf16 %v2322_v30, %v2321_v48  ;;  %vm8550_vm3 = vmmov %vm8540_vm1  ;;  %v5131_v55 = vpop.permute.xlu2 %5130 }
 0x666   : > { %v2555_v31 = vpack.c.bf16 %v5303_v6, %v5301_v14  ;;  %v5133_v11 = vunpack.i.h.bf16 %v5131_v55  ;;  %v5132_v59 = vunpack.i.l.bf16 %v5131_v55  ;;  %vm8553_vm5 = vmmov %vm8540_vm1 }
 0x668   : > { %4585 = vmatmul.msk.bf16.vlgmr.msra.gmra.mxu2 %vm8527_vm12, %v2555_v31  ;;  %vm8542_vm12 = vmmov %vm8516_vm0 }
 0x669   : > { %v2323_v14 = vsel %vm8542_vm12, %v7085_v46, %v5117_v45  ;;  %v5121_v10 = vpop.permute.xlu0 %5120  ;;  %vm8557_vm12 = vmmov %vm8540_vm1 }
 0x66a   : > { %v2352_v15 = vpack.c.bf16 %v2324_v23, %v2323_v14  ;;  %v5123_v24 = vunpack.i.h.bf16 %v5121_v10  ;;  %v5122_v62 = vunpack.i.l.bf16 %v5121_v10 }
 0x66c   : > { %v2325_v25 = vsel %vm8546_vm8, %v7102_v63, %v5122_v62  ;;  %vm8561_vm8 = vmmov %vm8540_vm1 }
 0x66f   : > { %4569 = vmatmul.msk.bf16.gmra.mxu1 %vm8530_vm15, %v2348_v2  ;;  %vm8545_vm15 = vmmov %vm8516_vm0 }
 0x670   : > { %v2326_v46 = vsel %vm8545_vm15, %v7109_v52, %v5123_v24  ;;  %vm8547_vm0 = vmmov %vm8535_vm4 }
 0x671   : > { %vm8560_vm15 = vmmov %vm8540_vm1 }
 0x67c   : > { %v2443_v47 = vpop.f32.mrf.mxu1 }
 0x67d   : > { %v2444_v16 = vadd.f32 %v7324_v38, %v2443_v47  ;;  %v2353_v47 = vpack.c.bf16 %v2326_v46, %v2325_v25 }
 0x67f   : > { %4570 = vmatmul.msk.bf16.gmra.mxu1 %vm8532_vm6, %v2349_v58  ;;  %5304 = vtanh.f32 %v2444_v16  ;;  %vm8548_vm6 = vmmov %vm8540_vm1 }
 0x684   : > { %v2445_v51 = vpop.f32.mrf.mxu1 }
 0x685   : > { %v2446_v7 = vadd.f32 %v7324_v38, %v2445_v51  ;;  %v5305_v39 = vpop.eup %5304  ;;  %v5126_v51 = vpop.permute.xlu1 %5125 }
 0x686   : > { %v5127_v17 = vunpack.i.l.bf16 %v5126_v51 }
 0x687   : > { %5306 = vtanh.f32 %v2446_v7  ;;  %v5128_v7 = vunpack.i.h.bf16 %v5126_v51 }
 0x688   : > { %v2327_v8 = vsel %vm8550_vm3, %v7119_v12, %v5127_v17  ;;  %v2330_v12 = vsel %vm8553_vm5, %v7173_v32, %v5133_v11 }
 0x689   : > { %v2328_v63 = vsel %vm8549_vm7, %v7124_v22, %v5128_v7 }
 0x68c   : > { %v2448_v29 = vpop.f32.mrf.mxu1 }
 0x68d   : > { %v5307_v18 = vpop.eup %5306  ;;  %v2449_v36 = vadd.f32 %v7324_v38, %v2448_v29 }
 0x68e   : > { %v2556_v50 = vpack.c.bf16 %v5307_v18, %v5305_v39 }
 0x68f   : > { %4571 = vmatmul.msk.bf16.gmra.mxu1 %vm8535_vm4, %v2350_v4  ;;  %v2354_v4 = vpack.c.bf16 %v2328_v63, %v2327_v8  ;;  %vm8551_vm4 = vmmov %vm8547_vm0 }
 0x690   : > { %4586 = vmatmul.msk.bf16.gmra.mxu2 %vm8536_vm11, %v2556_v50  ;;  %vm8552_vm11 = vmmov %vm8540_vm1 }
 0x694   : > { %v2450_v61 = vpop.f32.mrf.mxu1 }
 0x695   : > { %v2451_v28 = vadd.f32 %v7324_v38, %v2450_v61 }
 0x697   : > { %5308 = vtanh.f32 %v2451_v28  ;;  %v2329_v28 = vsel %vm8554_vm2, %v7145_v44, %v5132_v59 }
 0x698   : > { %5310 = vtanh.f32 %v2449_v36  ;;  %v2355_v48 = vpack.c.bf16 %v2330_v12, %v2329_v28 }
 0x69c   : > { %v2453_v34 = vpop.f32.mrf.mxu1 }
 0x69d   : > { %v5309_v54 = vpop.eup %5308  ;;  %v2454_v53 = vadd.f32 %v7324_v38, %v2453_v34 }
 0x69e   : > { %v5311_v20 = vpop.eup %5310 }
 0x69f   : > { %4572 = vmatmul.msk.bf16.gmra.mxu1 %vm8539_vm9, %v2351_v41  ;;  %v2557_v26 = vpack.c.bf16 %v5309_v54, %v5311_v20  ;;  %5312 = vtanh.f32 %v2454_v53  ;;  %vm8555_vm9 = vmmov %vm8547_vm0 }
 0x6a1   : > { %4587 = vmatmul.msk.bf16.gmra.mxu2 %vm8540_vm1, %v2557_v26 }
 0x6a4   : > { %v2455_v21 = vpop.f32.mrf.mxu1 }
 0x6a5   : > { %v2456_v40 = vadd.f32 %v7324_v38, %v2455_v21  ;;  %v5313_v6 = vpop.eup %5312 }
 0x6a7   : > { %5314 = vtanh.f32 %v2456_v40 }
 0x6ac   : > { %v2458_v42 = vpop.f32.mrf.mxu1 }
 0x6ad   : > { %v5315_v31 = vpop.eup %5314  ;;  %v2459_v2 = vadd.f32 %v7324_v38, %v2458_v42 }
 0x6ae   : > { %v2558_v27 = vpack.c.bf16 %v5315_v31, %v5313_v6 }
 0x6af   : > { %4573 = vmatmul.msk.bf16.gmra.mxu1 %vm8543_vm13, %v2352_v15  ;;  %5316 = vtanh.f32 %v2459_v2  ;;  %vm8558_vm13 = vmmov %vm8540_vm1 }
 0x6b1   : > { %4588 = vmatmul.msk.bf16.gmra.mxu2 %vm8544_vm14, %v2558_v27  ;;  %vm8559_vm14 = vmmov %vm8540_vm1 }
 0x6b4   : > { %v2460_v56 = vpop.f32.mrf.mxu1 }
 0x6b5   : > { %v2461_v57 = vadd.f32 %v7324_v38, %v2460_v56  ;;  %v5317_v43 = vpop.eup %5316 }
 0x6b7   : > { %5318 = vtanh.f32 %v2461_v57 }
 0x6bc   : > { %v2463_v58 = vpop.f32.mrf.mxu1 }
 0x6bd   : > { %v5319_v5 = vpop.eup %5318  ;;  %v2464_v37 = vadd.f32 %v7324_v38, %v2463_v58 }
 0x6be   : > { %v2559_v16 = vpack.c.bf16 %v5319_v5, %v5317_v43 }
 0x6bf   : > { %4574 = vmatmul.msk.bf16.gmra.mxu1 %vm8547_vm0, %v2353_v47  ;;  %5320 = vtanh.f32 %v2464_v37  ;;  %vm8562_vm0 = vmmov %vm8540_vm1 }
 0x6c0   : > { %vm8564_vm7 = vmmov %vm8562_vm0 }
 0x6c1   : > { %4589 = vmatmul.msk.bf16.gmra.mxu2 %vm8548_vm6, %v2559_v16  ;;  %vm8563_vm6 = vmmov %vm8562_vm0 }
 0x6c2   : > { %vm8583_vm3 = vmmov %vm8562_vm0 }
 0x6c3   : > { %vm8587_vm5 = vmmov %vm8562_vm0 }
 0x6c4   : > { %v2465_v49 = vpop.f32.mrf.mxu1  ;;  %vm8588_vm2 = vmmov %vm8562_vm0 }
 0x6c5   : > { %v2466_v52 = vadd.f32 %v7324_v38, %v2465_v49  ;;  %v5321_v39 = vpop.eup %5320 }
 0x6c7   : > { %5322 = vtanh.f32 %v2466_v52 }
 0x6cc   : > { %v2468_v29 = vpop.f32.mrf.mxu1 }
 0x6cd   : > { %v5323_v18 = vpop.eup %5322  ;;  %v2469_v36 = vadd.f32 %v7324_v38, %v2468_v29 }
 0x6ce   : > { %v2560_v50 = vpack.c.bf16 %v5323_v18, %v5321_v39 }
 0x6cf   : > { %4575 = vmatmul.msk.bf16.gmra.mxu1 %vm8551_vm4, %v2354_v4  ;;  %5324 = vtanh.f32 %v2469_v36  ;;  %vm8585_vm4 = vmmov %vm8562_vm0 }
 0x6d1   : > { %4590 = vmatmul.msk.bf16.gmra.mxu2 %vm8552_vm11, %v2560_v50  ;;  %vm8586_vm11 = vmmov %vm8562_vm0 }
 0x6d4   : > { %v2470_v61 = vpop.f32.mrf.mxu1 }
 0x6d5   : > { %v2471_v22 = vadd.f32 %v7324_v38, %v2470_v61  ;;  %v5325_v30 = vpop.eup %5324 }
 0x6d7   : > { %5326 = vtanh.f32 %v2471_v22 }
 0x6dc   : > { %v2473_v41 = vpop.f32.mrf.mxu1 }
 0x6dd   : > { %v5327_v34 = vpop.eup %5326  ;;  %v2474_v20 = vadd.f32 %v7324_v38, %v2473_v41 }
 0x6de   : > { %v2561_v54 = vpack.c.bf16 %v5327_v34, %v5325_v30 }
 0x6df   : > { %4576 = vmatmul.msk.bf16.gmra.mxu1 %vm8555_vm9, %v2355_v48  ;;  %5328 = vtanh.f32 %v2474_v20  ;;  %vm8589_vm9 = vmmov %vm8562_vm0 }
 0x6e1   : > { %4591 = vmatmul.msk.bf16.gmra.mxu2 %vm8540_vm1, %v2561_v54  ;;  %vm8590_vm1 = vmmov %vm8562_vm0 }
 0x6e4   : > { %v2475_v26 = vpop.f32.mrf.mxu1 }
 0x6e5   : > { %v2476_v9 = vadd.f32 %v7324_v38, %v2475_v26  ;;  %v5329_v32 = vpop.eup %5328 }
 0x6e7   : > { %5330 = vtanh.f32 %v2476_v9 }
 0x6eb   : > { %v7397_v42 = vpop.f32.mrf.mxu2 }
 0x6ec   : > { %v2478_v53 = vpop.f32.mrf.mxu1 }
 0x6ed   : > { %v5331_v21 = vpop.eup %5330  ;;  %v2479_v60 = vadd.f32 %v7324_v38, %v2478_v53 }
 0x6ee   : > { %v2562_v44 = vpack.c.bf16 %v5331_v21, %v5329_v32 }
 0x6ef   : > { %5332 = vtanh.f32 %v2479_v60 }
 0x6f1   : > { %4592 = vmatmul.msk.bf16.gmra.mxu2 %vm8556_vm10, %v2562_v44  ;;  %vm8592_vm10 = vmmov %vm8562_vm0 }
 0x6f3   : > { %v7402_v2 = vpop.f32.mrf.mxu2 }
 0x6f4   : > { %v2480_v45 = vpop.f32.mrf.mxu1 }
 0x6f5   : > { %v2481_v40 = vadd.f32 %v7324_v38, %v2480_v45  ;;  %v5333_v23 = vpop.eup %5332 }
 0x6f7   : > { %5334 = vtanh.f32 %v2481_v40 }
 0x6fc   : > { %v2483_v14 = vpop.f32.mrf.mxu1 }
 0x6fd   : > { %v5335_v6 = vpop.eup %5334  ;;  %v2484_v31 = vadd.f32 %v7324_v38, %v2483_v14 }
 0x6fe   : > { %v2563_v15 = vpack.c.bf16 %v5335_v6, %v5333_v23 }
 0x6ff   : > { %5336 = vtanh.f32 %v2484_v31 }
 0x701   : > { %4593 = vmatmul.msk.bf16.gmra.mxu2 %vm8557_vm12, %v2563_v15  ;;  %vm8593_vm12 = vmmov %vm8562_vm0 }
 0x704   : > { %v2485_v27 = vpop.f32.mrf.mxu1 }
 0x705   : > { %v2486_v10 = vadd.f32 %v7324_v38, %v2485_v27  ;;  %v5337_v56 = vpop.eup %5336 }
 0x707   : > { %5338 = vtanh.f32 %v2486_v10 }
 0x70c   : > { %v2488_v24 = vpop.f32.mrf.mxu1 }
 0x70d   : > { %v5339_v62 = vpop.eup %5338  ;;  %v2489_v46 = vadd.f32 %v7324_v38, %v2488_v24 }
 0x70e   : > { %v2564_v57 = vpack.c.bf16 %v5339_v62, %v5337_v56 }
 0x70f   : > { %5340 = vtanh.f32 %v2489_v46 }
 0x711   : > { %4594 = vmatmul.msk.bf16.gmra.mxu2 %vm8558_vm13, %v2564_v57  ;;  %vm8594_vm13 = vmmov %vm8562_vm0 }
 0x713   : > { %v7406_v25 = vpop.f32.mrf.mxu2 }
 0x714   : > { %v2490_v43 = vpop.f32.mrf.mxu1 }
 0x715   : > { %v2491_v47 = vadd.f32 %v7324_v38, %v2490_v43  ;;  %v5341_v5 = vpop.eup %5340  ;;  %v7454_v43 = vld [vmem:[%s8290_s4 + $0x30] ss:$0 sm:$0xff] }
 0x717   : > { %5342 = vtanh.f32 %v2491_v47  ;;  %v7456_v47 = vpop.permute.xlu2 %3525 }
 0x718   : > { %8565 = vst [vmem:[#allocation23_spill] sm:$0xff] %v7456_v47 }
 0x71b   : > { %v7409_v58 = vpop.f32.mrf.mxu2 }
 0x71c   : > { %v2493_v16 = vpop.f32.mrf.mxu1 }
 0x71d   : > { %v5343_v51 = vpop.eup %5342  ;;  %v2494_v49 = vadd.f32 %v7324_v38, %v2493_v16 }
 0x71e   : > { %v2565_v37 = vpack.c.bf16 %v5343_v51, %v5341_v5  ;;  %v2644_v51 = vadd.f32 %v7454_v43, %v7402_v2 }
 0x71f   : > { %5344 = vtanh.f32 %v2494_v49 }
 0x721   : > { %4595 = vmatmul.msk.bf16.gmra.mxu2 %vm8559_vm14, %v2565_v37  ;;  %v7463_v37 = vpop.permute.xlu2 %3531  ;;  %vm8595_vm14 = vmmov %vm8562_vm0 }
 0x722   : > { %8566 = vst [vmem:[#allocation29_spill] sm:$0xff] %v7463_v37 }
 0x724   : > { %v7413_v7 = vpop.f32.mrf.mxu2  ;;  %v2495_v17 = vpop.f32.mrf.mxu1 }
 0x725   : > { %v2496_v52 = vadd.f32 %v7324_v38, %v2495_v17  ;;  %v5345_v39 = vpop.eup %5344 }
 0x727   : > { %5346 = vtanh.f32 %v2496_v52 }
 0x72c   : > { %v7416_v63 = vpop.f32.mrf.mxu2  ;;  %v2498_v8 = vpop.f32.mrf.mxu1 }
 0x72d   : > { %v5347_v4 = vpop.eup %5346  ;;  %v2499_v18 = vadd.f32 %v7324_v38, %v2498_v8 }
 0x72e   : > { %v2566_v29 = vpack.c.bf16 %v5347_v4, %v5345_v39 }
 0x72f   : > { %5348 = vtanh.f32 %v2499_v18 }
 0x731   : > { %4596 = vmatmul.msk.bf16.gmra.mxu2 %vm8560_vm15, %v2566_v29  ;;  %v8567_v29 = vld [vmem:[#allocation48_spill] sm:$0xff]  ;;  %vm8597_vm15 = vmmov %vm8562_vm0 }
 0x734   : > { %v7420_v50 = vpop.f32.mrf.mxu2  ;;  %v2500_v55 = vpop.f32.mrf.mxu1 }
 0x735   : > { %v2501_v36 = vadd.f32 %v7324_v38, %v2500_v55  ;;  %v5349_v59 = vpop.eup %5348 }
 0x737   : > { %5350 = vtanh.f32 %v2501_v36 }
 0x73c   : > { %v7423_v61 = vpop.f32.mrf.mxu2  ;;  %v2503_v11 = vpop.f32.mrf.mxu1 }
 0x73d   : > { %v5351_v22 = vpop.eup %5350  ;;  %v2504_v28 = vadd.f32 %v7324_v38, %v2503_v11 }
 0x73e   : > { %v2567_v12 = vpack.c.bf16 %v5351_v22, %v5349_v59  ;;  %v7475_v22 = vpop.permute.xlu2 %3540 }
 0x73f   : > { %5352 = vtanh.f32 %v2504_v28  ;;  %8568 = vst [vmem:[#allocation30_spill] sm:$0xff] %v7475_v22 }
 0x741   : > { %4597 = vmatmul.msk.bf16.gmra.mxu2 %vm8561_vm8, %v2567_v12  ;;  %vm8598_vm8 = vmmov %vm8562_vm0 }
 0x744   : > { %v7427_v30 = vpop.f32.mrf.mxu2  ;;  %v2505_v48 = vpop.f32.mrf.mxu1 }
 0x745   : > { %v2506_v41 = vadd.f32 %v7324_v38, %v2505_v48  ;;  %v5353_v20 = vpop.eup %5352  ;;  %v2649_v48 = vadd.f32 %v7454_v43, %v7409_v58 }
 0x746   : > { %v7492_v58 = vpop.permute.xlu2 %3012 }
 0x747   : > { %5354 = vtanh.f32 %v2506_v41  ;;  %v8569_v41 = vld [vmem:[#allocation47_spill] sm:$0xff] }
 0x74c   : > { %v7430_v34 = vpop.f32.mrf.mxu2  ;;  %v2508_v54 = vpop.f32.mrf.mxu1 }
 0x74d   : > { %v5355_v26 = vpop.eup %5354  ;;  %v2509_v32 = vadd.f32 %v7324_v38, %v2508_v54 }
 0x74e   : > { %v2568_v9 = vpack.c.bf16 %v5355_v26, %v5353_v20 }
 0x74f   : > { %5356 = vtanh.f32 %v2509_v32 }
 0x751   : > { %4598 = vmatmul.msk.bf16.gmra.mxu2 %vm8562_vm0, %v2568_v9  ;;  %vm3055_vm0 = vweird.f32 %v7492_v58 }
 0x754   : > { %v7434_v53 = vpop.f32.mrf.mxu2  ;;  %v2510_v21 = vpop.f32.mrf.mxu1 }
 0x755   : > { %v2511_v44 = vadd.f32 %v7324_v38, %v2510_v21  ;;  %v5357_v40 = vpop.eup %5356 }
 0x757   : > { %5358 = vtanh.f32 %v2511_v44 }
 0x75c   : > { %v7437_v60 = vpop.f32.mrf.mxu2  ;;  %v2513_v45 = vpop.f32.mrf.mxu1 }
 0x75d   : > { %v5359_v23 = vpop.eup %5358  ;;  %v2514_v6 = vadd.f32 %v7324_v38, %v2513_v45 }
 0x75e   : > { %v2569_v14 = vpack.c.bf16 %v5359_v23, %v5357_v40  ;;  %v2652_v23 = vadd.f32 %v7454_v43, %v7413_v7 }
 0x75f   : > { %5360 = vtanh.f32 %v2514_v6 }
 0x761   : > { %4599 = vmatmul.msk.bf16.gmra.mxu2 %vm8563_vm6, %v2569_v14  ;;  %v8570_v14 = vld [vmem:[#allocation46_spill] sm:$0xff] }
 0x764   : > { %v7441_v15 = vpop.f32.mrf.mxu2  ;;  %v2515_v31 = vpop.f32.mrf.mxu1 }
 0x765   : > { %v2516_v27 = vadd.f32 %v7324_v38, %v2515_v31  ;;  %v5361_v56 = vpop.eup %5360  ;;  %v2642_v38 = vadd.f32 %v7454_v43, %v7397_v42  ;;  %v2647_v42 = vadd.f32 %v7454_v43, %v7406_v25 }
 0x767   : > { %5362 = vtanh.f32 %v2516_v27 }
 0x768   : > { %5364 = vtanh.f32 %v2642_v38 }
 0x76c   : > { %v7444_v10 = vpop.f32.mrf.mxu2 }
 0x76d   : > { %v5363_v24 = vpop.eup %5362 }
 0x76e   : > { %v2570_v62 = vpack.c.bf16 %v5363_v24, %v5361_v56  ;;  %v5365_v49 = vpop.eup %5364 }
 0x771   : > { %4600 = vmatmul.msk.bf16.gmra.mxu2 %vm8564_vm7, %v2570_v62 }
 0x774   : > { %v7447_v57 = vpop.f32.mrf.mxu2 }
 0x77c   : > { %v7449_v46 = vpop.f32.mrf.mxu2 }
 0x784   : > { %v2681_v5 = vpop.f32.mrf.mxu2 }
 0x785   : > { %v2682_v16 = vadd.f32 %v7454_v43, %v2681_v5  ;;  %v7504_v5 = vpop.permute.xlu1 %3522 }
 0x786   : > { %8571 = vst [vmem:[#allocation28_spill] sm:$0xff] %v7504_v5 }
 0x787   : > { %5366 = vtanh.f32 %v2682_v16 }
 0x788   : > { %5368 = vtanh.f32 %v2644_v51  ;;  %v7508_v51 = vpop.permute.xlu2 %3081 }
 0x78c   : > { %v2683_v17 = vpop.f32.mrf.mxu2 }
 0x78d   : > { %v5367_v52 = vpop.eup %5366  ;;  %v2684_v8 = vadd.f32 %v7454_v43, %v2683_v17  ;;  %v8572_v17 = vld [vmem:[#allocation45_spill] sm:$0xff] }
 0x78e   : > { %v2753_v39 = vadd.f32 %v5367_v52, %v5365_v49  ;;  %v5369_v55 = vpop.eup %5368  ;;  %v2654_v49 = vadd.f32 %v7454_v43, %v7416_v63  ;;  %v7524_v63 = vpop.permute.xlu1 %3528 }
 0x78f   : > { %5370 = vtanh.f32 %v2684_v8  ;;  %8574 = vst [vmem:[#allocation26_spill] sm:$0xff] %v7524_v63 }
 0x790   : > { %v2769_v4 = vmul.f32 0.5, %v2753_v39  ;;  %5372 = vtanh.f32 %v2647_v42 }
 0x792   : > { %v7469_v18 = vmul.f32 %v2769_v4, %v8567_v29 }
 0x794   : > { %v2686_v36 = vpop.f32.mrf.mxu2  ;;  %v3947_v2 = vsub.f32 %v7469_v18, %v7289_v13  ;;  %v3931_v11 = vmul.f32 %v7289_v13, %v7469_v18 }
 0x795   : > { %v5371_v59 = vpop.eup %5370  ;;  %v2687_v12 = vadd.f32 %v7454_v43, %v2686_v36 }
 0x796   : > { %v2754_v28 = vadd.f32 %v5371_v59, %v5369_v55  ;;  %4055 = vrot.lane.b32.xlu2 %v3947_v2, %s5607_s21  ;;  %3991 = vrot.lane.b32.xlu1 %v3931_v11, %s5608_s22  ;;  %v5373_v20 = vpop.eup %5372  ;;  %v7519_v55 = vpop.permute.xlu0 %3519  ;;  %v2657_v59 = vadd.f32 %v7454_v43, %v7420_v50 }
 0x797   : > { %5374 = vtanh.f32 %v2687_v12  ;;  %8573 = vst [vmem:[#allocation27_spill] sm:$0xff] %v7519_v55  ;;  %v8575_v12 = vld [vmem:[#allocation44_spill] sm:$0xff] }
 0x798   : > { %v2770_v25 = vmul.f32 0.5, %v2754_v28  ;;  %5376 = vtanh.f32 %v2649_v48  ;;  %v7531_v28 = vpop.permute.xlu2 %3093 }
 0x79a   : > { %v7483_v54 = vmul.f32 %v2770_v25, %v8569_v41 }
 0x79c   : > { %v2688_v26 = vpop.f32.mrf.mxu2  ;;  %v3948_v9 = vsub.f32 %v7483_v54, %v7289_v13  ;;  %v3932_v32 = vmul.f32 %v7289_v13, %v7483_v54 }
 0x79d   : > { %v5375_v21 = vpop.eup %5374  ;;  %v2689_v44 = vadd.f32 %v7454_v43, %v2688_v26 }
 0x79e   : > { %v2755_v45 = vadd.f32 %v5375_v21, %v5373_v20  ;;  %4057 = vrot.lane.b32.xlu0 %v3948_v9, %s5607_s21  ;;  %3993 = vrot.lane.b32.xlu2 %v3932_v32, %s5608_s22  ;;  %v5377_v31 = vpop.eup %5376  ;;  %v7540_v50 = vpop.permute.xlu0 %3534 }
 0x79f   : > { %5378 = vtanh.f32 %v2689_v44  ;;  %8576 = vst [vmem:[#allocation25_spill] sm:$0xff] %v7540_v50  ;;  %v7542_v44 = vpop.permute.xlu1 %3537 }
 0x7a0   : > { %v2771_v40 = vmul.f32 0.5, %v2755_v45  ;;  %5380 = vtanh.f32 %v2652_v23  ;;  %8577 = vst [vmem:[#allocation22_spill] sm:$0xff] %v7542_v44  ;;  %v2659_v45 = vadd.f32 %v7454_v43, %v7423_v61 }
 0x7a2   : > { %v7497_v6 = vmul.f32 %v2771_v40, %v8570_v14  ;;  %v8578_v40 = vld [vmem:[#allocation43_spill] sm:$0xff] }
 0x7a4   : > { %v2691_v27 = vpop.f32.mrf.mxu2  ;;  %v3933_v56 = vmul.f32 %v7289_v13, %v7497_v6  ;;  %v3949_v24 = vsub.f32 %v7497_v6, %v7289_v13 }
 0x7a5   : > { %v5379_v62 = vpop.eup %5378  ;;  %v2692_v38 = vadd.f32 %v7454_v43, %v2691_v27 }
 0x7a6   : > { %v2756_v16 = vadd.f32 %v5379_v62, %v5377_v31  ;;  %3995 = vrot.lane.b32.xlu0 %v3933_v56, %s5608_s22  ;;  %4059 = vrot.lane.b32.xlu1 %v3949_v24, %s5607_s21  ;;  %v5381_v8 = vpop.eup %5380  ;;  %v7553_v62 = vpop.permute.xlu2 %3101 }
 0x7a7   : > { %5382 = vtanh.f32 %v2692_v38 }
 0x7a8   : > { %v2772_v7 = vmul.f32 0.5, %v2756_v16  ;;  %5384 = vtanh.f32 %v2654_v49  ;;  %v2662_v49 = vadd.f32 %v7454_v43, %v7427_v30 }
 0x7aa   : > { %v7513_v52 = vmul.f32 %v2772_v7, %v8572_v17  ;;  %v7558_v7 = vpop.permute.xlu0 %3002  ;;  %v8579_v17 = vld [vmem:[#allocation42_spill] sm:$0xff] }
 0x7ac   : > { %v2693_v39 = vpop.f32.mrf.mxu2  ;;  %v3950_v4 = vsub.f32 %v7513_v52, %v7289_v13  ;;  %v3934_v42 = vmul.f32 %v7289_v13, %v7513_v52 }
 0x7ad   : > { %v5383_v29 = vpop.eup %5382  ;;  %v2694_v36 = vadd.f32 %v7454_v43, %v2693_v39 }
 0x7ae   : > { %v2757_v2 = vadd.f32 %v5383_v29, %v5381_v8  ;;  %4061 = vrot.lane.b32.xlu2 %v3950_v4, %s5607_s21  ;;  %3997 = vrot.lane.b32.xlu1 %v3934_v42, %s5608_s22  ;;  %v5385_v25 = vpop.eup %5384  ;;  %v7565_v4 = vpop.permute.xlu1 %3007 }
 0x7af   : > { %5386 = vtanh.f32 %v2694_v36  ;;  %v7574_v30 = vpop.permute.xlu2 %3158  ;;  %vm3040_vm7 = vweird.f32 %v7565_v4 }
 0x7b0   : > { %v2773_v11 = vmul.f32 0.5, %v2757_v2  ;;  %5388 = vtanh.f32 %v2657_v59 }
 0x7b2   : > { %v7529_v13 = vmul.f32 %v2773_v11, %v8575_v12 }
 0x7b4   : > { %v2696_v48 = vpop.f32.mrf.mxu2  ;;  %v3951_v41 = vsub.f32 %v7529_v13, %v7292_v0  ;;  %v3935_v20 = vmul.f32 %v7292_v0, %v7529_v13 }
 0x7b5   : > { %v5387_v26 = vpop.eup %5386  ;;  %v2697_v9 = vadd.f32 %v7454_v43, %v2696_v48  ;;  %v8580_v48 = vld [vmem:[#allocation41_spill] sm:$0xff] }
 0x7b6   : > { %v2758_v32 = vadd.f32 %v5387_v26, %v5385_v25  ;;  %4063 = vrot.lane.b32.xlu0 %v3951_v41, %s5607_s21  ;;  %3999 = vrot.lane.b32.xlu2 %v3935_v20, %s5608_s22  ;;  %v5389_v14 = vpop.eup %5388  ;;  %v2664_v25 = vadd.f32 %v7454_v43, %v7430_v34  ;;  %v7581_v20 = vpop.permute.xlu0 %3085 }
 0x7b7   : > { %5390 = vtanh.f32 %v2697_v9 }
 0x7b8   : > { %v2774_v21 = vmul.f32 0.5, %v2758_v32  ;;  %5392 = vtanh.f32 %v2659_v45 }
 0x7ba   : > { %v7547_v23 = vmul.f32 %v2774_v21, %v8578_v40 }
 0x7bc   : > { %v2698_v31 = vpop.f32.mrf.mxu2  ;;  %v3936_v27 = vmul.f32 %v7292_v0, %v7547_v23  ;;  %v3952_v56 = vsub.f32 %v7547_v23, %v7292_v0 }
 0x7bd   : > { %v5391_v24 = vpop.eup %5390  ;;  %v2699_v38 = vadd.f32 %v7454_v43, %v2698_v31 }
 0x7be   : > { %v2759_v16 = vadd.f32 %v5391_v24, %v5389_v14  ;;  %4001 = vrot.lane.b32.xlu0 %v3936_v27, %s5608_s22  ;;  %4065 = vrot.lane.b32.xlu1 %v3952_v56, %s5607_s21  ;;  %v5393_v39 = vpop.eup %5392  ;;  %v7588_v14 = vpop.permute.xlu1 %3017  ;;  %v2667_v56 = vadd.f32 %v7454_v43, %v7434_v53  ;;  %v8582_v24 = vld [vmem:[#allocation40_spill] sm:$0xff] }
 0x7bf   : > { %5394 = vtanh.f32 %v2699_v38  ;;  %v7592_v27 = vpop.permute.xlu2 %3173 }
 0x7c0   : > { %v2775_v61 = vmul.f32 0.5, %v2759_v16  ;;  %5396 = vtanh.f32 %v2662_v49  ;;  %8581 = vst [vmem:[#allocation21_spill] sm:$0xff] %v7592_v27  ;;  %v2962_v16 = vsel %vm8583_vm3, %v7547_v23, 0.0 }
 0x7c2   : > { %v7563_v8 = vmul.f32 %v2775_v61, %v8579_v17 }
 0x7c4   : > { %v2701_v42 = vpop.f32.mrf.mxu2  ;;  %v3953_v29 = vsub.f32 %v7563_v8, %v7292_v0  ;;  %v3937_v36 = vmul.f32 %v7292_v0, %v7563_v8 }
 0x7c5   : > { %v5395_v2 = vpop.eup %5394  ;;  %v2702_v11 = vadd.f32 %v7454_v43, %v2701_v42  ;;  %v7606_v42 = vpop.permute.xlu0 %3105 }
 0x7c6   : > { %v2760_v59 = vadd.f32 %v5395_v2, %v5393_v39  ;;  %4067 = vrot.lane.b32.xlu2 %v3953_v29, %s5607_s21  ;;  %4003 = vrot.lane.b32.xlu1 %v3937_v36, %s5608_s22  ;;  %v5397_v26 = vpop.eup %5396  ;;  %8584 = vst [vmem:[#allocation20_spill] sm:$0xff] %v7606_v42  ;;  %v2949_v29 = vsel %vm8585_vm4, %v7483_v54, 0.0  ;;  %v2961_v36 = vsel %vm8586_vm11, %v7529_v13, 0.0  ;;  %v2964_v2 = vsel %vm8587_vm5, %v7563_v8, 0.0  ;;  %vm8601_vm11 = vmmov %vm8590_vm1 }
 0x7c7   : > { %5398 = vtanh.f32 %v2702_v11  ;;  %vm3025_vm4 = vweird.f32 %v7558_v7  ;;  %vm8602_vm5 = vmmov %vm8590_vm1  ;;  %v3031_v42 = vand.u32 2147483648, %v7558_v7 }
 0x7c8   : > { %v2776_v12 = vmul.f32 0.5, %v2760_v59  ;;  %5400 = vtanh.f32 %v2664_v25  ;;  %v2963_v59 = vadd.f32 %v2962_v16, %v2961_v36  ;;  %v2948_v25 = vsel %vm8588_vm2, %v7469_v18, 0.0 }
 0x7ca   : > { %v7579_v41 = vmul.f32 %v2776_v12, %v8580_v48  ;;  %v7617_v12 = vpop.permute.xlu1 %3089  ;;  %v2951_v48 = vsel %vm8589_vm9, %v7497_v6, 0.0 }
 0x7cc   : > { %v2703_v9 = vpop.f32.mrf.mxu2  ;;  %v3954_v32 = vsub.f32 %v7579_v41, %v7292_v0  ;;  %v3938_v21 = vmul.f32 %v7292_v0, %v7579_v41 }
 0x7cd   : > { %v5399_v45 = vpop.eup %5398  ;;  %v2704_v40 = vadd.f32 %v7454_v43, %v2703_v9  ;;  %v2966_v9 = vsel %vm8590_vm1, %v7579_v41, 0.0 }
 0x7ce   : > { %v2761_v34 = vadd.f32 %v5399_v45, %v5397_v26  ;;  %4069 = vrot.lane.b32.xlu0 %v3954_v32, %s5607_s21  ;;  %4005 = vrot.lane.b32.xlu2 %v3938_v21, %s5608_s22  ;;  %v5401_v38 = vpop.eup %5400  ;;  %v2950_v32 = vadd.f32 %v2949_v29, %v2948_v25  ;;  %v2965_v21 = vadd.f32 %v2964_v2, %v2963_v59  ;;  %v7654_v25 = vpop.permute.xlu0 %3163 }
 0x7cf   : > { %5402 = vtanh.f32 %v2704_v40  ;;  %v2669_v40 = vadd.f32 %v7454_v43, %v7437_v60 }
 0x7d0   : > { %v2777_v31 = vmul.f32 0.5, %v2761_v34  ;;  %5404 = vrcp.f32 %v7565_v4  ;;  %v8591_v34 = vld [vmem:[#allocation39_spill] sm:$0xff]  ;;  %v2952_v16 = vadd.f32 %v2951_v48, %v2950_v32 }
 0x7d1   : > { %5406 = vtanh.f32 %v2667_v56  ;;  %v2953_v56 = vsel %vm8592_vm10, %v7513_v52, 0.0 }
 0x7d2   : > { %v7597_v0 = vmul.f32 %v2777_v31, %v8582_v24  ;;  %v2954_v36 = vadd.f32 %v2953_v56, %v2952_v16  ;;  %v2672_v56 = vadd.f32 %v7454_v43, %v7441_v15  ;;  %v8596_v16 = vld [vmem:[#allocation38_spill] sm:$0xff] }
 0x7d4   : > { %v2706_v61 = vpop.f32.mrf.mxu2  ;;  %v3939_v49 = vmul.f32 %v7309_v3, %v7597_v0  ;;  %v3955_v17 = vsub.f32 %v7597_v0, %v7309_v3 }
 0x7d5   : > { %v5403_v39 = vpop.eup %5402  ;;  %v2707_v53 = vadd.f32 %v7454_v43, %v2706_v61  ;;  %v2967_v61 = vadd.f32 %v2966_v9, %v2965_v21  ;;  %v2955_v21 = vrot.slane %v2954_v36, 4 }
 0x7d6   : > { %v2762_v11 = vadd.f32 %v5403_v39, %v5401_v38  ;;  %4007 = vrot.lane.b32.xlu0 %v3939_v49, %s5608_s22  ;;  %4071 = vrot.lane.b32.xlu1 %v3955_v17, %s5607_s21  ;;  %v7626_v45 = vpop.eup %5404  ;;  %v7636_v38 = vpop.permute.xlu2 %3967 }
 0x7d7   : > { %5408 = vtanh.f32 %v2707_v53  ;;  %v5407_v24 = vpop.eup %5406  ;;  %v3036_v59 = vmul.f32 %v7626_v45, %v7565_v4  ;;  %v2968_v48 = vrot.slane %v2967_v61, 4  ;;  %vm3041_vm3 = vweird.f32 %v7626_v45 }
 0x7d8   : > { %v2778_v26 = vmul.f32 0.5, %v2762_v11  ;;  %5410 = vrcp.f32 %v7492_v58  ;;  %vm7726_vm9 = vmor %vm3040_vm7, %vm3041_vm3  ;;  %vm8620_vm3 = vcmask 1042434  }
 0x7d9   : > { %5412 = vrcp.f32 %v7558_v7 }
 0x7da   : > { %v7632_v31 = vmul.f32 %v2778_v26, %v8591_v34  ;;  %5414 = vtanh.f32 %v2669_v40  ;;  %v7662_v34 = vpop.permute.xlu1 %3097 }
 0x7dc   : > { %v2708_v49 = vpop.f32.mrf.mxu2  ;;  %v3956_v17 = vsub.f32 %v7632_v31, %v7309_v3  ;;  %v3940_v39 = vmul.f32 %v7309_v3, %v7632_v31  ;;  %v7645_v60 = vsel %vm8593_vm12, %v7632_v31, %v7636_v38  ;;  %v2975_v9 = vsel %vm8594_vm13, %v7632_v31, 0.0 }
 0x7dd   : > { %v5409_v53 = vpop.eup %5408  ;;  %v2709_v29 = vadd.f32 %v7454_v43, %v2708_v49 }
 0x7de   : > { %v2763_v2 = vadd.f32 %v5409_v53, %v5407_v24  ;;  %4073 = vrot.lane.b32.xlu2 %v3956_v17, %s5607_s21  ;;  %4009 = vrot.lane.b32.xlu1 %v3940_v39, %s5608_s22  ;;  %v7650_v11 = vpop.eup %5410  ;;  %v2974_v24 = vsel %vm8595_vm14, %v7597_v0, 0.0  ;;  %v3037_v17 = vsub.f32 1.0, %v3036_v59  ;;  %v2969_v53 = vadd.f32 %v2968_v48, %v2967_v61 }
 0x7df   : > { %5416 = vtanh.f32 %v2709_v29  ;;  %v7656_v26 = vpop.eup %5412  ;;  %v3051_v40 = vmul.f32 %v7650_v11, %v7492_v58  ;;  %v2976_v29 = vadd.f32 %v2975_v9, %v2974_v24  ;;  %v2956_v48 = vadd.f32 %v2955_v21, %v2954_v36 }
 0x7e0   : > { %v2779_v32 = vmul.f32 0.5, %v2763_v2  ;;  %v3021_v39 = vmul.f32 %v7656_v26, %v7558_v7  ;;  %v5415_v2 = vpop.eup %5414  ;;  %5418 = vtanh.f32 %v2672_v56  ;;  %v3038_v37 = vmul.f32 %v7626_v45, %v3037_v17 }
 0x7e1   : > { %v3052_v24 = vsub.f32 1.0, %v3051_v40  ;;  %v2970_v47 = vrot.slane %v2969_v53, 2  ;;  %vm3056_vm6 = vweird.f32 %v7650_v11  ;;  %v3046_v21 = vand.u32 2147483648, %v7565_v4  ;;  %v7695_v40 = vpop.permute.xlu0 %3963 }
 0x7e2   : > { %v7669_v49 = vmul.f32 %v2779_v32, %v8596_v16  ;;  %v3022_v63 = vsub.f32 1.0, %v3021_v39  ;;  %v2957_v56 = vrot.slane %v2956_v48, 2  ;;  %v2674_v39 = vadd.f32 %v7454_v43, %v7444_v10  ;;  %v7707_v5 = vpop.permute.xlu1 %3109  ;;  %vm7759_vm13 = vmor %vm3055_vm0, %vm3056_vm6 }
 0x7e3   : > { %v3053_v17 = vmul.f32 %v7650_v11, %v3052_v24  ;;  %8600 = vst [vmem:[#allocation19_spill] sm:$0xff] %v7707_v5  ;;  %vm3026_vm2 = vweird.f32 %v7656_v26  ;;  %v3029_v5 = vand.u32 2147483647, %v7558_v7  ;;  %vm8617_vm0 = vmmov %vm8602_vm5 }
 0x7e4   : > { %v2711_v22 = vpop.f32.mrf.mxu2  ;;  %v3957_v44 = vsub.f32 %v7669_v49, %v7309_v3  ;;  %v3941_v15 = vmul.f32 %v7309_v3, %v7669_v49  ;;  %v2977_v50 = vsel %vm8597_vm15, %v7669_v49, 0.0  ;;  %v7682_v59 = vsel %vm8598_vm8, %v7669_v49, %v7636_v38  ;;  %vm7747_vm12 = vmor %vm3025_vm4, %vm3026_vm2 }
 0x7e5   : > { %v5417_v32 = vpop.eup %5416  ;;  %v2712_v61 = vadd.f32 %v7454_v43, %v2711_v22  ;;  %v2978_v9 = vadd.f32 %v2977_v50, %v2976_v29  ;;  %v3059_v22 = vand.u32 2147483647, %v7492_v58  ;;  %v3061_v50 = vand.u32 2147483648, %v7492_v58  ;;  %v8599_v29 = vld [vmem:[#allocation37_spill] sm:$0xff]  ;;  %vm8614_vm15 = vmmov %vm8602_vm5 }
 0x7e6   : > { %v2764_v16 = vadd.f32 %v5417_v32, %v5415_v2  ;;  %4075 = vrot.lane.b32.xlu0 %v3957_v44, %s5607_s21  ;;  %4011 = vrot.lane.b32.xlu2 %v3941_v15, %s5608_s22  ;;  %v3044_v44 = vand.u32 2147483647, %v7565_v4  ;;  %v3039_v15 = vadd.f32 %v7626_v45, %v3038_v37  ;;  %v3023_v32 = vmul.f32 %v7656_v26, %v3022_v63  ;;  %vm8618_vm6 = vmmov %vm8617_vm0 }
 0x7e7   : > { %5420 = vtanh.f32 %v2712_v61  ;;  %v2971_v61 = vadd.f32 %v2970_v47, %v2969_v53  ;;  %v2958_v53 = vadd.f32 %v2957_v56, %v2956_v48  ;;  %vm7735_vm1 = vcmp.eq.f32.partialorder %v3059_v22, 8.507059e+37  ;;  %vm8619_vm7 = vmmov %vm8617_vm0 }
 0x7e8   : > { %v2780_v36 = vmul.f32 0.5, %v2764_v16  ;;  %v5419_v16 = vpop.eup %5418  ;;  %5422 = vtanh.f32 %v2674_v39  ;;  %vm7739_vm10 = vcmp.eq.f32.partialorder %v3044_v44, 8.507059e+37  ;;  %v3043_v22 = vsel %vm7726_vm9, %v7626_v45, %v3039_v15  ;;  %vm8622_vm4 = vmmov %vm8617_vm0 }
 0x7e9   : > { %v2972_v48 = vrot.slane %v2971_v61, 1  ;;  %v2959_v44 = vrot.slane %v2958_v53, 1  ;;  %v3062_v7 = vor.u32 1.1754944e-38, %v3061_v50  ;;  %vm3030_vm14 = vcmp.eq.f32.partialorder %v3029_v5, 8.507059e+37  ;;  %v7771_v15 = vpop.permute.xlu0 %3969  ;;  %vm8624_vm2 = vmmov %vm8617_vm0 }
 0x7ea   : > { %v7702_v2 = vmul.f32 %v2780_v36, %v8599_v29  ;;  %vm8616_vm8 = vcmask 1041409   ;;  %vm8625_vm9 = vcmask 523264  }
 0x7eb   : > { %v2973_v58 = vadd.f32 %v2972_v48, %v2971_v61  ;;  %v2960_v48 = vadd.f32 %v2959_v44, %v2958_v53  ;;  %v2679_v53 = vadd.f32 %v7454_v43, %v7449_v46  ;;  %v8615_v44 = vld [vmem:[#allocation34_spill] sm:$0xff] }
 0x7ec   : > { %v2713_v55 = vpop.f32.mrf.mxu2  ;;  %v3942_v24 = vmul.f32 %v7309_v3, %v7702_v2  ;;  %v3958_v10 = vsub.f32 %v7702_v2, %v7309_v3  ;;  %v2979_v36 = vsel %vm8601_vm11, %v7702_v2, 0.0  ;;  %v7718_v37 = vsel %vm8602_vm5, %v7702_v2, %v7636_v38  ;;  %vm8623_vm11 = vmmov %vm8617_vm0 }
 0x7ed   : > { %v5421_v63 = vpop.eup %5420  ;;  %v2714_v47 = vadd.f32 %v7454_v43, %v2713_v55  ;;  %v2980_v29 = vadd.f32 %v2979_v36, %v2978_v9  ;;  %v3024_v55 = vadd.f32 %v7656_v26, %v3023_v32  ;;  %v3047_v36 = vor.u32 1.1754944e-38, %v3046_v21 }
 0x7ee   : > { %v2765_v27 = vadd.f32 %v5421_v63, %v5419_v16  ;;  %4013 = vrot.lane.b32.xlu0 %v3942_v24, %s5608_s22  ;;  %4077 = vrot.lane.b32.xlu1 %v3958_v10, %s5607_s21  ;;  %v3054_v16 = vadd.f32 %v7650_v11, %v3053_v17  ;;  %v3032_v10 = vor.u32 1.1754944e-38, %v3031_v42  ;;  %v8613_v17 = vld [vmem:[#allocation36_spill] sm:$0xff]  ;;  %vm3916_vm5 = vcmask 785408  }
 0x7ef   : > { %5424 = vtanh.f32 %v2714_v47  ;;  %v2981_v9 = vrot.slane %v2980_v29, 4  ;;  %v3028_v45 = vsel %vm7747_vm12, %v7656_v26, %v3024_v55  ;;  %v3048_v50 = vsel %vm7739_vm10, %v3047_v36, %v3043_v22  ;;  %v7788_v36 = vpop.permute.xlu1 %3168  ;;  %vm8628_vm10 = vmmov %vm8617_vm0 }
 0x7f0   : > { %v2781_v32 = vmul.f32 0.5, %v2765_v27  ;;  %v2677_v27 = vadd.f32 %v7454_v43, %v7447_v57  ;;  %v3058_v61 = vsel %vm7759_vm13, %v7650_v11, %v3054_v16  ;;  %v3033_v56 = vsel %vm3030_vm14, %v3032_v10, %v3028_v45  ;;  %vm8629_vm14 = vmmov %vm8617_vm0 }
 0x7f1   : > { %v2982_v24 = vadd.f32 %v2981_v9, %v2980_v29  ;;  %v5423_v29 = vpop.eup %5422  ;;  %v3049_v22 = vmul.f32 %v3048_v50, %v2973_v58  ;;  %v3063_v11 = vsel %vm7735_vm1, %v3062_v7, %v3058_v61  ;;  %v3034_v21 = vmul.f32 %v3033_v56, %v2960_v48  ;;  %v8621_v48 = vld [vmem:[#allocation33_spill] sm:$0xff]  ;;  %vm8627_vm1 = vmmov %vm8617_vm0 }
 0x7f2   : > { %v7766_v63 = vmul.f32 %v2781_v32, %v8613_v17  ;;  %5426 = vtanh.f32 %v2677_v27  ;;  %vm3070_vm12 = vweird.f32 %v7588_v14 }
 0x7f3   : > { %v2983_v47 = vrot.slane %v2982_v24, 2  ;;  %v3904_v27 = vsel %vm8616_vm8, %v3049_v22, %v3034_v21 }
 0x7f4   : > { %v2716_v42 = vpop.f32.mrf.mxu2  ;;  %v3959_v57 = vsub.f32 %v7766_v63, %v7299_v1  ;;  %v3943_v3 = vmul.f32 %v7299_v1, %v7766_v63  ;;  %v7782_v26 = vsel %vm8614_vm15, %v7766_v63, %v7771_v15  ;;  %v2987_v4 = vsel %vm8617_vm0, %v7766_v63, 0.0  ;;  %vm8630_vm15 = vmmov %vm8625_vm9 }
 0x7f5   : > { %v5425_v5 = vpop.eup %5424  ;;  %v2717_v55 = vadd.f32 %v7454_v43, %v2716_v42  ;;  %v2984_v9 = vadd.f32 %v2983_v47, %v2982_v24 }
 0x7f6   : > { %v2766_v39 = vadd.f32 %v5425_v5, %v5423_v29  ;;  %4079 = vrot.lane.b32.xlu2 %v3959_v57, %s5607_s21  ;;  %4015 = vrot.lane.b32.xlu1 %v3943_v3, %s5608_s22 }
 0x7f7   : > { %5428 = vtanh.f32 %v2717_v55  ;;  %v2985_v32 = vrot.slane %v2984_v9, 1  ;;  %v7817_v5 = vpop.permute.xlu1 %3965 }
 0x7f8   : > { %v2782_v17 = vmul.f32 0.5, %v2766_v39  ;;  %5430 = vrcp.f32 %v7588_v14  ;;  %v5427_v45 = vpop.eup %5426 }
 0x7f9   : > { %v2986_v16 = vadd.f32 %v2985_v32, %v2984_v9  ;;  %5432 = vtanh.f32 %v2679_v53 }
 0x7fa   : > { %v7797_v24 = vmul.f32 %v2782_v17, %v8615_v44  ;;  %v4103_v44 = vsel %vm8624_vm2, %v7469_v18, %v7695_v40  ;;  %vm8638_vm2 = vmmov %vm8627_vm1 }
 0x7fb   : > { %v3064_v10 = vmul.f32 %v3063_v11, %v2986_v16 }
 0x7fc   : > { %v2718_v47 = vpop.f32.mrf.mxu2  ;;  %v3944_v58 = vmul.f32 %v7299_v1, %v7797_v24  ;;  %v2988_v46 = vsel %vm8618_vm6, %v7797_v24, 0.0  ;;  %v7810_v7 = vsel %vm8619_vm7, %v7797_v24, %v7771_v15  ;;  %vm8633_vm6 = vmmov %vm8627_vm1 }
 0x7fd   : > { %v5429_v29 = vpop.eup %5428  ;;  %v2719_v50 = vadd.f32 %v7454_v43, %v2718_v47  ;;  %v2989_v42 = vadd.f32 %v2988_v46, %v2987_v4  ;;  %v7814_v57 = vsel %vm8620_vm3, %v3064_v10, %v3904_v27  ;;  %v4056_v43 = vpop.permute.xlu2 %4055  ;;  %v8626_v47 = vld [vmem:[#allocation35_spill] sm:$0xff]  ;;  %vm8634_vm7 = vmmov %vm8625_vm9  ;;  %vm8635_vm3 = vcmask 1043459  }
 0x7fe   : > { %v2767_v3 = vadd.f32 %v5429_v29, %v5427_v45  ;;  %4017 = vrot.lane.b32.xlu2 %v3944_v58, %s5608_s22  ;;  %v5431_v55 = vpop.eup %5430 }
 0x7ff   : > { %5434 = vtanh.f32 %v2719_v50  ;;  %v5433_v56 = vpop.eup %5432  ;;  %v3066_v11 = vmul.f32 %v5431_v55, %v7588_v14  ;;  %vm3071_vm13 = vweird.f32 %v5431_v55 }
 0x800   : > { %v2783_v61 = vmul.f32 0.5, %v2767_v3  ;;  %vm7869_vm8 = vmor %vm3070_vm12, %vm3071_vm13  ;;  %5436 = vrcp.f32 %v7574_v30 }
 0x801   : > { %v3067_v27 = vsub.f32 1.0, %v3066_v11  ;;  %vm8641_vm12 = vmmov %vm8627_vm1  ;;  %5438 = vrcp.f32 %v7654_v25 }
 0x802   : > { %v7820_v9 = vmul.f32 %v2783_v61, %v8621_v48  ;;  %v4104_v48 = vsel %vm8629_vm14, %v7483_v54, %v7695_v40  ;;  %vm8642_vm13 = vmmov %vm8634_vm7  ;;  %5440 = vrcp.f32 %v7788_v36 }
 0x803   : > { %vm8643_vm14 = vmmov %vm8627_vm1 }
 0x804   : > { %v3945_v39 = vmul.f32 %v7299_v1, %v7820_v9  ;;  %v2990_v32 = vsel %vm8622_vm4, %v7820_v9, 0.0  ;;  %v7832_v22 = vsel %vm8623_vm11, %v7820_v9, %v7771_v15  ;;  %vm8636_vm4 = vmmov %vm8627_vm1 }
 0x805   : > { %v5435_v17 = vpop.eup %5434  ;;  %v2991_v16 = vadd.f32 %v2990_v32, %v2989_v42  ;;  %v3068_v42 = vmul.f32 %v5431_v55, %v3067_v27  ;;  %v3994_v3 = vpop.permute.xlu2 %3993  ;;  %vm8637_vm11 = vmmov %vm8634_vm7 }
 0x806   : > { %v2768_v21 = vadd.f32 %v5435_v17, %v5433_v56  ;;  %4019 = vrot.lane.b32.xlu0 %v3945_v39, %s5608_s22  ;;  %v3076_v56 = vand.u32 2147483648, %v7588_v14  ;;  %v3074_v17 = vand.u32 2147483647, %v7588_v14 }
 0x807   : > { %v3069_v32 = vadd.f32 %v5431_v55, %v3068_v42 }
 0x808   : > { %v2784_v53 = vmul.f32 0.5, %v2768_v21  ;;  %v3992_v10 = vpop.permute.xlu1 %3991  ;;  %vm3075_vm0 = vcmp.eq.f32.partialorder %v3074_v17, 8.507059e+37  ;;  %v4110_v21 = vsel %vm8643_vm14, %v7579_v41, %v7817_v5  ;;  %vm8658_vm14 = vmmov %vm8627_vm1 }
 0x809   : > { %v4119_v45 = vsel %vm8625_vm9, %v4103_v44, %v3992_v10  ;;  %v3077_v44 = vor.u32 1.1754944e-38, %v3076_v56  ;;  %v3073_v14 = vsel %vm7869_vm8, %v5431_v55, %v3069_v32  ;;  %vm8639_vm9 = vmmov %vm8634_vm7 }
 0x80a   : > { %v7842_v58 = vmul.f32 %v2784_v53, %v8626_v47  ;;  %v4135_v4 = vsel %vm3916_vm5, %v4119_v45, %v4056_v43  ;;  %v4105_v45 = vsel %vm8633_vm6, %v7497_v6, %v7695_v40  ;;  %vm8645_vm8 = vmmov %vm8627_vm1 }
 0x80b   : > { %4151 = vst [vmem:[%s7845_s9] sm:$0xff] %v4135_v4 }
 0x80c   : > { %2801 = vmatpush.msra.mxu0 %v7842_v58  ;;  %v3946_v46 = vmul.f32 %v7299_v1, %v7842_v58  ;;  %v2992_v29 = vsel %vm8627_vm1, %v7842_v58, 0.0  ;;  %v7856_v50 = vsel %vm8628_vm10, %v7842_v58, %v7771_v15  ;;  %v4120_v15 = vsel %vm8630_vm15, %v4104_v48, %v3994_v3  ;;  %vm8640_vm10 = vmmov %vm8634_vm7 }
 0x80d   : > { %v2993_v61 = vadd.f32 %v2992_v29, %v2991_v16  ;;  %v4062_v55 = vpop.permute.xlu2 %4061  ;;  %vm8644_vm15 = vmmov %vm8634_vm7 }
 0x80e   : > { %4021 = vrot.lane.b32.xlu1 %v3946_v46, %s5608_s22  ;;  %2802 = vmatpush.msra.mxu0 %v7820_v9 }
 0x80f   : > { %v2994_v43 = vrot.slane %v2993_v61, 4 }
 0x810   : > { %v4058_v39 = vpop.permute.xlu0 %4057  ;;  %2803 = vmatpush.msra.mxu0 %v7797_v24 }
 0x811   : > { %v4136_v11 = vsel %vm3916_vm5, %v4120_v15, %v4058_v39  ;;  %v2995_v16 = vadd.f32 %v2994_v43, %v2993_v61 }
 0x812   : > { %4152 = vst [vmem:[%s7845_s9 + $0x8] sm:$0xff] %v4136_v11  ;;  %2804 = vmatpush.msra.mxu0 %v7766_v63  ;;  %v3078_v63 = vsel %vm3075_vm0, %v3077_v44, %v3073_v14  ;;  %vm8646_vm0 = vmmov %vm8634_vm7 }
 0x813   : > { %v2996_v53 = vrot.slane %v2995_v16, 2  ;;  %vm8647_vm6 = vmmov %vm8646_vm0 }
 0x814   : > { %2805 = vmatpush.msra.mxu0 %v7702_v2 }
 0x815   : > { %v2997_v10 = vadd.f32 %v2996_v53, %v2995_v16  ;;  %v4000_v43 = vpop.permute.xlu2 %3999 }
 0x816   : > { %2806 = vmatpush.msra.mxu0 %v7669_v49 }
 0x817   : > { %v2998_v27 = vrot.slane %v2997_v10, 1 }
 0x818   : > { %v3996_v47 = vpop.permute.xlu0 %3995  ;;  %v4060_v4 = vpop.permute.xlu1 %4059  ;;  %2807 = vmatpush.msra.mxu0 %v7632_v31  ;;  %v4106_v31 = vsel %vm8636_vm4, %v7513_v52, %v7695_v40  ;;  %v4107_v40 = vsel %vm8638_vm2, %v7529_v13, %v7817_v5  ;;  %vm8650_vm4 = vmmov %vm8646_vm0 }
 0x819   : > { %v4121_v2 = vsel %vm8634_vm7, %v4105_v45, %v3996_v47  ;;  %v2999_v46 = vadd.f32 %v2998_v27, %v2997_v10  ;;  %v4123_v56 = vsel %vm8639_vm9, %v4107_v40, %v4000_v43  ;;  %vm8648_vm7 = vmmov %vm8646_vm0  ;;  %v4698_v43 = vld [vmem:[%s8289_s3 + $0x90] sm:$0xff] }
 0x81a   : > { %v4137_v29 = vsel %vm3916_vm5, %v4121_v2, %v4060_v4  ;;  %2808 = vmatpush.msra.mxu0 %v7597_v0  ;;  %vm8652_vm2 = vmmov %vm8646_vm0 }
 0x81b   : > { %4153 = vst [vmem:[%s7845_s9 + $0x10] sm:$0xff] %v4137_v29  ;;  %v3079_v49 = vmul.f32 %v3078_v63, %v2999_v46  ;;  %vm8653_vm9 = vmmov %vm8627_vm1 }
 0x81c   : > { %2809 = vmatpush.msra.mxu0 %v7579_v41 }
 0x81d   : > { %v3906_v42 = vsel %vm8635_vm3, %v3079_v49, %v7814_v57  ;;  %v3961_v57 = vsub.f32 %v7820_v9, %v7299_v1  ;;  %vm8649_vm3 = vmmov %vm8646_vm0 }
 0x81e   : > { %3907 = vrot.lane.b32.xlu1 %v3906_v42, %s5608_s22  ;;  %2810 = vmatpush.msra.mxu0 %v7563_v8  ;;  %s4364_s22 = sshll.u32 %s7823_s23, 2 }
 0x81f   : > { %s324_s14 = scalar_lea.vmem [#allocation4], %s4364_s22 }
 0x820   : > { %v3998_v3 = vpop.permute.xlu1 %3997  ;;  %2811 = vmatpush.msra.mxu0 %v7547_v23  ;;  %v4068_v17 = vpop.permute.xlu2 %4067 }
 0x821   : > { %v4122_v61 = vsel %vm8637_vm11, %v4106_v31, %v3998_v3  ;;  %vm8651_vm11 = vmmov %vm8646_vm0 }
 0x822   : > { %v4138_v48 = vsel %vm3916_vm5, %v4122_v61, %v4062_v55  ;;  %2812 = vmatpush.msra.mxu0 %v7529_v13 }
 0x823   : > { %4154 = vst [vmem:[%s7845_s9 + $0x18] sm:$0xff] %v4138_v48 }
 0x824   : > { %2813 = vmatpush.msra.mxu0 %v7513_v52 }
 0x826   : > { %4083 = vrot.lane.b32.xlu1 %v3961_v57, %s5607_s21  ;;  %2814 = vmatpush.msra.mxu0 %v7497_v6  ;;  %v4108_v6 = vsel %vm8627_vm1, %v7547_v23, %v7817_v5  ;;  %v4701_v57 = vld [vmem:[%s8289_s3 + $0xa8] sm:$0xff] }
 0x828   : > { %v4064_v15 = vpop.permute.xlu0 %4063  ;;  %2815 = vmatpush.msra.mxu0 %v7483_v54  ;;  %v4109_v54 = vsel %vm8641_vm12, %v7563_v8, %v7817_v5  ;;  %v4006_v23 = vpop.permute.xlu2 %4005  ;;  %v4111_v8 = vsel %vm8645_vm8, %v7597_v0, %v7636_v38  ;;  %vm8656_vm12 = vmmov %vm8627_vm1 }
 0x829   : > { %v4139_v52 = vsel %vm3916_vm5, %v4123_v56, %v4064_v15  ;;  %v4126_v53 = vsel %vm8644_vm15, %v4110_v21, %v4006_v23  ;;  %vm8661_vm15 = vmmov %vm8627_vm1 }
 0x82a   : > { %4155 = vst [vmem:[%s7845_s9 + $0x20] sm:$0xff] %v4139_v52  ;;  %2816 = vmatpush.msra.mxu0 %v7469_v18  ;;  %vm8664_vm8 = vmmov %vm8627_vm1 }
 0x82b   : > { %4737 = vmatmul.lmr.bf16.vlgmr.msra.gmra.8.mxu0 }
 0x82c   : > { %3358 = vmatpush.bf16.msra.mxu0 %v4701_v57 }
 0x830   : > { %v4002_v9 = vpop.permute.xlu0 %4001  ;;  %v4066_v39 = vpop.permute.xlu1 %4065 }
 0x831   : > { %v4124_v13 = vsel %vm8640_vm10, %v4108_v6, %v4002_v9  ;;  %vm8655_vm10 = vmmov %vm8627_vm1 }
 0x832   : > { %v4140_v32 = vsel %vm3916_vm5, %v4124_v13, %v4066_v39 }
 0x833   : > { %4156 = vst [vmem:[%s7845_s9 + $0x28] sm:$0xff] %v4140_v32  ;;  %4738 = vmatmul.lmr.bf16.gmra.8.mxu0  ;;  %v8654_v32 = vld [vmem:[#allocation61_spill] sm:$0xff] }
 0x838   : > { %v4004_v18 = vpop.permute.xlu1 %4003  ;;  %v4074_v41 = vpop.permute.xlu2 %4073 }
 0x839   : > { %v4125_v11 = vsel %vm8642_vm13, %v4109_v54, %v4004_v18  ;;  %vm8657_vm13 = vmmov %vm8627_vm1 }
 0x83a   : > { %v4141_v16 = vsel %vm3916_vm5, %v4125_v11, %v4068_v17 }
 0x83b   : > { %4157 = vst [vmem:[%s7845_s9 + $0x30] sm:$0xff] %v4141_v16  ;;  %4739 = vmatmul.lmr.bf16.gmra.8.mxu0 }
 0x840   : > { %v4070_v44 = vpop.permute.xlu0 %4069  ;;  %v4012_v0 = vpop.permute.xlu2 %4011 }
 0x841   : > { %v4142_v10 = vsel %vm3916_vm5, %v4126_v53, %v4070_v44  ;;  %v4129_v38 = vsel %vm8648_vm7, %v7682_v59, %v4012_v0  ;;  %v5437_v53 = vpop.eup %5436 }
 0x842   : > { %4158 = vst [vmem:[%s7845_s9 + $0x38] sm:$0xff] %v4142_v10  ;;  %v5439_v44 = vpop.eup %5438 }
 0x843   : > { %4740 = vmatmul.lmr.bf16.gmra.8.mxu0 }
 0x848   : > { %v4008_v14 = vpop.permute.xlu0 %4007  ;;  %v4072_v27 = vpop.permute.xlu1 %4071 }
 0x849   : > { %v4127_v45 = vsel %vm8646_vm0, %v4111_v8, %v4008_v14  ;;  %v3177_v8 = vmul.f32 %v5437_v53, %v7574_v30  ;;  %v3192_v14 = vmul.f32 %v5439_v44, %v7654_v25  ;;  %vm8665_vm0 = vmmov %vm8627_vm1 }
 0x84a   : > { %v4143_v47 = vsel %vm3916_vm5, %v4127_v45, %v4072_v27  ;;  %v8662_v45 = vld [vmem:[#allocation55_spill] sm:$0xff]  ;;  %vm8667_vm7 = vmmov %vm8665_vm0 }
 0x84b   : > { %4159 = vst [vmem:[%s7845_s9 + $0x40] sm:$0xff] %v4143_v47  ;;  %4741 = vmatmul.lmr.bf16.gmra.8.mxu0 }
 0x850   : > { %v4010_v5 = vpop.permute.xlu1 %4009  ;;  %v4080_v31 = vpop.permute.xlu2 %4079 }
 0x851   : > { %v4128_v4 = vsel %vm8647_vm6, %v7645_v60, %v4010_v5  ;;  %v3178_v5 = vsub.f32 1.0, %v3177_v8  ;;  %vm8666_vm6 = vmmov %vm8665_vm0 }
 0x852   : > { %v4144_v63 = vsel %vm3916_vm5, %v4128_v4, %v4074_v41 }
 0x853   : > { %4160 = vst [vmem:[%s7845_s9 + $0x48] sm:$0xff] %v4144_v63  ;;  %4742 = vmatmul.lmr.bf16.gmra.8.mxu0  ;;  %v8663_v63 = vld [vmem:[#allocation59_spill] sm:$0xff] }
 0x858   : > { %v4076_v2 = vpop.permute.xlu0 %4075 }
 0x859   : > { %v4145_v46 = vsel %vm3916_vm5, %v4129_v38, %v4076_v2  ;;  %v3193_v38 = vsub.f32 1.0, %v3192_v14 }
 0x85a   : > { %4161 = vst [vmem:[%s7845_s9 + $0x50] sm:$0xff] %v4145_v46 }
 0x85b   : > { %4743 = vmatmul.lmr.bf16.gmra.8.mxu0 }
 0x860   : > { %v4014_v29 = vpop.permute.xlu0 %4013  ;;  %v4078_v55 = vpop.permute.xlu1 %4077 }
 0x861   : > { %v4130_v49 = vsel %vm8649_vm3, %v7718_v37, %v4014_v29  ;;  %v4699_v37 = vld [vmem:[%s8289_s3 + $0x98] sm:$0xff]  ;;  %vm8668_vm3 = vmmov %vm8665_vm0 }
 0x862   : > { %v4146_v60 = vsel %vm3916_vm5, %v4130_v49, %v4078_v55  ;;  %3311 = vmatpush.bf16.msra.mxu3 %v4699_v37  ;;  %v3179_v55 = vmul.f32 %v5437_v53, %v3178_v5 }
 0x863   : > { %4162 = vst [vmem:[%s7845_s9 + $0x58] sm:$0xff] %v4146_v60  ;;  %4744 = vmatmul.lmr.bf16.gmra.8.mxu0 }
 0x864   : > { %v3180_v57 = vadd.f32 %v5437_v53, %v3179_v55  ;;  %v8685_v55 = vld [vmem:[#allocation54_spill] sm:$0xff] }
 0x866   : > { %3312 = vmatpush.bf16.msra.mxu3 %v4698_v43  ;;  %v3187_v43 = vand.u32 2147483648, %v7574_v30 }
 0x868   : > { %v4016_v42 = vpop.permute.xlu1 %4015 }
 0x869   : > { %v4131_v3 = vsel %vm8650_vm4, %v7782_v26, %v4016_v42  ;;  %vm3181_vm4 = vweird.f32 %v7574_v30 }
 0x86a   : > { %v4147_v59 = vsel %vm3916_vm5, %v4131_v3, %v4080_v31  ;;  %v8669_v3 = vld [vmem:[#allocation53_spill] sm:$0xff] }
 0x86b   : > { %4163 = vst [vmem:[%s7845_s9 + $0x60] sm:$0xff] %v4147_v59 }
 0x878   : > { %v4020_v40 = vpop.permute.xlu0 %4019 }
 0x879   : > { %v4133_v56 = vsel %vm8652_vm2, %v7832_v22, %v4020_v40  ;;  %vm3196_vm2 = vweird.f32 %v7654_v25  ;;  %v8670_v40 = vld [vmem:[#allocation58_spill] sm:$0xff] }
 0x880   : > { %v4022_v61 = vpop.permute.xlu1 %4021 }
 0x881   : > { %v7955_v48 = vsel %vm8651_vm11, %v7856_v50, %v4022_v61  ;;  %v4700_v50 = vld [vmem:[%s8289_s3 + $0xa0] sm:$0xff]  ;;  %vm3182_vm11 = vweird.f32 %v5437_v53 }
 0x882   : > { %3359 = vmatpush.bf16.msra.mxu0 %v4700_v50  ;;  %v3202_v50 = vand.u32 2147483648, %v7654_v25 }
 0x890   : > { %v7963_v26 = vpop.permute.xlu1 %3907 }
 0x898   : > { %v4084_v15 = vpop.permute.xlu1 %4083 }
 0x899   : > { %v4149_v52 = vsel %vm3916_vm5, %v4133_v56, %v4084_v15 }
 0x89a   : > { %4165 = vst [vmem:[%s7845_s9 + $0x70] sm:$0xff] %v4149_v52 }
 0x8a8   : > { %v2818_v6 = vpop.f32.mrf.mxu0 }
 0x8a9   : > { %v2842_v9 = vmul.f32 %v2818_v6, %v6937_v19  ;;  %v3200_v6 = vand.u32 2147483647, %v7654_v25 }
 0x8ab   : > { %v2850_v39 = vadd.f32 %v2842_v9, %v6952_v33 }
 0x8ad   : > { %4167 = vst.msk [vmem:[%s7981_s16] sm:$0xff] %vm8653_vm9, %v2850_v39  ;;  %v3112_v54 = vmul.f32 %v7508_v51, %v2850_v39  ;;  %v8659_v51 = vld [vmem:[#allocation57_spill] sm:$0xff]  ;;  %vm3197_vm9 = vweird.f32 %v5439_v44 }
 0x8af   : > { %v3120_v11 = vsel %vm8658_vm14, %v3112_v54, 0.0  ;;  %v3203_v54 = vor.u32 1.1754944e-38, %v3202_v50  ;;  %vm3201_vm14 = vcmp.eq.f32.partialorder %v3200_v6, 8.507059e+37 }
 0x8b0   : > { %v2821_v22 = vpop.f32.mrf.mxu0 }
 0x8b1   : > { %v2843_v13 = vmul.f32 %v2821_v22, %v6928_v35 }
 0x8b3   : > { %v2851_v17 = vadd.f32 %v2843_v13, %v8654_v32 }
 0x8b5   : > { %v3113_v19 = vmul.f32 %v7581_v20, %v2851_v17  ;;  %v3276_v18 = vpack.c.bf16 %v2851_v17, %v2850_v39  ;;  %4168 = vst.msk [vmem:[%s7981_s16 + $0x8] sm:$0xff] %vm8627_vm1, %v2851_v17  ;;  %v8660_v20 = vld [vmem:[#allocation60_spill] sm:$0xff]  ;;  %vm8022_vm1 = vmor %vm3181_vm4, %vm3182_vm11  ;;  %v5441_v39 = vpop.eup %5440  ;;  %v3188_v17 = vor.u32 1.1754944e-38, %v3187_v43  ;;  %vm3211_vm4 = vweird.f32 %v7788_v36  ;;  %v8687_v43 = vld [vmem:[#allocation50_spill] sm:$0xff] }
 0x8b6   : > { %v3184_v32 = vsel %vm8022_vm1, %v5437_v53, %v3180_v57  ;;  %v3207_v25 = vmul.f32 %v5441_v39, %v7788_v36  ;;  %v8677_v53 = vld [vmem:[#allocation56_spill] sm:$0xff]  ;;  %vm3212_vm11 = vweird.f32 %v5441_v39 }
 0x8b7   : > { %v3121_v33 = vsel %vm8655_vm10, %v3113_v19, 0.0  ;;  %4618 = vmatmul.msk.bf16.vlgmr.msra.gmra.mxu3 %vm8656_vm12, %v3276_v18  ;;  %4630 = vmatmul.msk.bf16.vlgmr.msra.gmra.mxu0 %vm8657_vm13, %v3276_v18  ;;  %vm8027_vm10 = vmor %vm3196_vm2, %vm3197_vm9 }
 0x8b8   : > { %v2824_v35 = vpop.f32.mrf.mxu0  ;;  %v3122_v23 = vadd.f32 %v3121_v33, %v3120_v11  ;;  %vm8675_vm12 = vmmov %vm8665_vm0  ;;  %v3208_v8 = vsub.f32 1.0, %v3207_v25 }
 0x8b9   : > { %v2844_v16 = vmul.f32 %v2824_v35, %v8659_v51  ;;  %v8676_v35 = vld [vmem:[#allocation51_spill] sm:$0xff]  ;;  %vm3213_vm2 = vmor %vm3211_vm4, %vm3212_vm11  ;;  %vm8697_vm4 = vcmask 1043459  }
 0x8ba   : > { %v3123_v10 = vrot.slane %v3122_v23, 4  ;;  %vm8686_vm9 = vmmov %vm8665_vm0 }
 0x8bb   : > { %v2852_v21 = vadd.f32 %v2844_v16, %v8660_v20 }
 0x8bc   : > { %v3124_v41 = vadd.f32 %v3123_v10, %v3122_v23 }
 0x8bd   : > { %4169 = vst.msk [vmem:[%s7981_s16 + $0x10] sm:$0xff] %vm8661_vm15, %v2852_v21  ;;  %v3114_v4 = vmul.f32 %v7617_v12, %v2852_v21  ;;  %v3194_v12 = vmul.f32 %v5439_v44, %v3193_v38  ;;  %vm8678_vm15 = vmmov %vm8665_vm0  ;;  %v8684_v38 = vld [vmem:[#allocation49_spill] sm:$0xff] }
 0x8be   : > { %v3125_v29 = vrot.slane %v3124_v41, 2 }
 0x8bf   : > { %v3129_v49 = vsel %vm8665_vm0, %v3114_v4, 0.0  ;;  %v3195_v52 = vadd.f32 %v5439_v44, %v3194_v12  ;;  %v3215_v12 = vand.u32 2147483647, %v7788_v36 }
 0x8c0   : > { %v2827_v27 = vpop.f32.mrf.mxu0  ;;  %v3126_v61 = vadd.f32 %v3125_v29, %v3124_v41  ;;  %v8679_v41 = vld [vmem:[#allocation21_spill] sm:$0xff]  ;;  %v3217_v29 = vand.u32 2147483648, %v7788_v36  ;;  %v8689_v36 = vld [vmem:[#allocation52_spill] sm:$0xff] }
 0x8c1   : > { %v2845_v47 = vmul.f32 %v2827_v27, %v8662_v45  ;;  %v3199_v19 = vsel %vm8027_vm10, %v5439_v44, %v3195_v52  ;;  %5442 = vrcp.f32 %v8679_v41  ;;  %vm3216_vm1 = vcmp.eq.f32.partialorder %v3215_v12, 8.507059e+37  ;;  %vm8691_vm10 = vmmov %vm8665_vm0 }
 0x8c2   : > { %v3127_v13 = vrot.slane %v3126_v61, 1  ;;  %v3204_v20 = vsel %vm3201_vm14, %v3203_v54, %v3199_v19  ;;  %vm8694_vm14 = vmmov %vm8665_vm0 }
 0x8c3   : > { %v2853_v0 = vadd.f32 %v2845_v47, %v8663_v63 }
 0x8c4   : > { %v3128_v51 = vadd.f32 %v3127_v13, %v3126_v61 }
 0x8c5   : > { %v3115_v2 = vmul.f32 %v7531_v28, %v2853_v0  ;;  %v3277_v46 = vpack.c.bf16 %v2853_v0, %v2852_v21  ;;  %4170 = vst.msk [vmem:[%s7981_s16 + $0x18] sm:$0xff] %vm8664_vm8, %v2853_v0  ;;  %v3185_v28 = vand.u32 2147483647, %v7574_v30  ;;  %vm8680_vm8 = vmmov %vm8665_vm0 }
 0x8c7   : > { %v3130_v60 = vsel %vm8666_vm6, %v3115_v2, 0.0  ;;  %4619 = vmatmul.msk.bf16.gmra.mxu3 %vm8667_vm7, %v3277_v46  ;;  %4631 = vmatmul.msk.bf16.gmra.mxu0 %vm8668_vm3, %v3277_v46  ;;  %vm3186_vm13 = vcmp.eq.f32.partialorder %v3185_v28, 8.507059e+37  ;;  %vm8681_vm6 = vmmov %vm8665_vm0  ;;  %vm8683_vm3 = vcmask 1041409  }
 0x8c8   : > { %v3131_v42 = vadd.f32 %v3130_v60, %v3129_v49  ;;  %v2830_v31 = vpop.f32.mrf.mxu0  ;;  %v3189_v23 = vsel %vm3186_vm13, %v3188_v17, %v3184_v32  ;;  %vm8682_vm7 = vmmov %vm8665_vm0 }
 0x8c9   : > { %v2846_v59 = vmul.f32 %v2830_v31, %v8669_v3  ;;  %v3190_v45 = vmul.f32 %v3189_v23, %v3128_v51  ;;  %v5443_v31 = vpop.eup %5442  ;;  %v3218_v3 = vor.u32 1.1754944e-38, %v3217_v29  ;;  %vm8693_vm13 = vmmov %vm8665_vm0  ;;  %v3230_v51 = vand.u32 2147483647, %v8679_v41 }
 0x8ca   : > { %v3132_v37 = vrot.slane %v3131_v42, 4 }
 0x8cb   : > { %v2854_v56 = vadd.f32 %v2846_v59, %v8670_v40  ;;  %v3222_v59 = vmul.f32 %v5443_v31, %v8679_v41 }
 0x8cc   : > { %v3133_v9 = vadd.f32 %v3132_v37, %v3131_v42 }
 0x8cd   : > { %4171 = vst.msk [vmem:[%s7981_s16 + $0x20] sm:$0xff] %vm8675_vm12, %v2854_v56  ;;  %v3116_v21 = vmul.f32 %v7662_v34, %v2854_v56  ;;  %v3209_v34 = vmul.f32 %v5441_v39, %v3208_v8  ;;  %vm8692_vm12 = vmmov %vm8665_vm0 }
 0x8ce   : > { %v3134_v30 = vrot.slane %v3133_v9, 2 }
 0x8cf   : > { %v3138_v5 = vsel %vm8680_vm8, %v3116_v21, 0.0  ;;  %v3210_v60 = vadd.f32 %v5441_v39, %v3209_v34  ;;  %vm8696_vm8 = vcmask 1042434  }
 0x8d0   : > { %v3135_v18 = vadd.f32 %v3134_v30, %v3133_v9  ;;  %v2833_v33 = vpop.f32.mrf.mxu0  ;;  %v3223_v9 = vsub.f32 1.0, %v3222_v59  ;;  %v8690_v30 = vld [vmem:[#allocation19_spill] sm:$0xff] }
 0x8d1   : > { %v2847_v11 = vmul.f32 %v2833_v33, %v8676_v35  ;;  %v3214_v57 = vsel %vm3213_vm2, %v5441_v39, %v3210_v60  ;;  %v3232_v35 = vand.u32 2147483648, %v8679_v41  ;;  %v8708_v60 = vld [vmem:[#allocation24_spill] sm:$0xff] }
 0x8d2   : > { %v3136_v16 = vrot.slane %v3135_v18, 1  ;;  %v3219_v6 = vsel %vm3216_vm1, %v3218_v3, %v3214_v57  ;;  %v3224_v19 = vmul.f32 %v5443_v31, %v3223_v9 }
 0x8d3   : > { %v2855_v10 = vadd.f32 %v2847_v11, %v8677_v53 }
 0x8d4   : > { %v3137_v14 = vadd.f32 %v3136_v16, %v3135_v18  ;;  %v3225_v11 = vadd.f32 %v5443_v31, %v3224_v19 }
 0x8d5   : > { %v3117_v44 = vmul.f32 %v7553_v62, %v2855_v10  ;;  %v3278_v27 = vpack.c.bf16 %v2855_v10, %v2854_v56  ;;  %4172 = vst.msk [vmem:[%s7981_s16 + $0x28] sm:$0xff] %vm8678_vm15, %v2855_v10  ;;  %v8688_v56 = vld [vmem:[#allocation20_spill] sm:$0xff]  ;;  %vm8695_vm15 = vmmov %vm8665_vm0 }
 0x8d6   : > { %v3205_v47 = vmul.f32 %v3204_v20, %v3137_v14  ;;  %v3233_v20 = vor.u32 1.1754944e-38, %v3232_v35 }
 0x8d7   : > { %v3139_v4 = vsel %vm8665_vm0, %v3117_v44, 0.0  ;;  %4620 = vmatmul.msk.bf16.gmra.mxu3 %vm8681_vm6, %v3278_v27  ;;  %4632 = vmatmul.msk.bf16.gmra.mxu0 %vm8682_vm7, %v3278_v27  ;;  %vm3226_vm0 = vweird.f32 %v8679_v41  ;;  %vm3227_vm6 = vweird.f32 %v5443_v31 }
 0x8d8   : > { %v3140_v63 = vadd.f32 %v3139_v4, %v3138_v5  ;;  %v2836_v0 = vpop.f32.mrf.mxu0  ;;  %v3894_v62 = vsel %vm8683_vm3, %v3205_v47, %v3190_v45  ;;  %vm3228_vm7 = vmor %vm3226_vm0, %vm3227_vm6  ;;  %vm3231_vm3 = vcmp.eq.f32.partialorder %v3230_v51, 8.507059e+37  ;;  %v3960_v45 = vsub.f32 %v7797_v24, %v7299_v1  ;;  %v8699_v5 = vld [vmem:[#allocation8_spill] sm:$0xff] }
 0x8d9   : > { %v2848_v2 = vmul.f32 %v2836_v0, %v8684_v38  ;;  %v3229_v53 = vsel %vm3228_vm7, %v5443_v31, %v3225_v11  ;;  %v8698_v47 = vlaneseq  ;;  %v3391_v4 = vadd.s32 1, %v8699_v5 }
 0x8da   : > { %v3141_v46 = vrot.slane %v3140_v63, 4  ;;  %v3234_v8 = vsel %vm3231_vm3, %v3233_v20, %v3229_v53  ;;  %vm8709_vm7 = vcmask 261120   ;;  %v4018_v53 = vpop.permute.xlu2 %4017 }
 0x8db   : > { %v2856_v49 = vadd.f32 %v2848_v2, %v8685_v55  ;;  %v3382_v41 = vshrl.u32 %v8698_v47, 7  ;;  %v3392_v0 = vmul.u32 8, %v3391_v4  ;;  %v5609_v2 = vmov 1.0   ;;  %vm8710_vm3 = vmmov %vm8709_vm7  ;;  %v8721_v4 = vld [vmem:[#allocation28_spill] sm:$0xff] }
 0x8dc   : > { %v3142_v42 = vadd.f32 %v3141_v46, %v3140_v63  ;;  %v3386_v63 = vmul.u32 8, %v8699_v5  ;;  %v8720_v5 = vld [vmem:[#allocation27_spill] sm:$0xff] }
 0x8dd   : > { %4173 = vst.msk [vmem:[%s7981_s16 + $0x30] sm:$0xff] %vm8686_vm9, %v2856_v49  ;;  %v3118_v15 = vmul.f32 %v8688_v56, %v2856_v49  ;;  %v3385_v34 = vadd.s32 24, %v3382_v41  ;;  %v3383_v24 = vadd.s32 8, %v3382_v41  ;;  %vm3393_vm0 = vcmp.lt.s32.totalorder %v3382_v41, %v3392_v0 }
 0x8de   : > { %v3143_v28 = vrot.slane %v3142_v42, 2 }
 0x8df   : > { %v3147_v54 = vsel %vm8692_vm12, %v3118_v15, 0.0  ;;  %vm3390_vm11 = vcmp.ge.s32.totalorder %v3385_v34, %v3386_v63  ;;  %vm3396_vm2 = vcmp.lt.s32.totalorder %v3385_v34, %v3392_v0 }
 0x8e0   : > { %v2839_v61 = vpop.f32.mrf.mxu0  ;;  %v3144_v37 = vadd.f32 %v3143_v28, %v3142_v42  ;;  %vm8080_vm9 = vmand %vm3390_vm11, %vm3396_vm2  ;;  %v5152_v42 = vld [vmem:[%s8290_s4 + $0x40] ss:$0 sm:$0xff] }
 0x8e1   : > { %v2849_v50 = vmul.f32 %v2839_v61, %v8687_v43  ;;  %4638 = vmatpush.msk.msra.mxu3 %vm8080_vm9, %v5609_v2  ;;  %vm8712_vm11 = vmmov %vm8710_vm3 }
 0x8e2   : > { %v3145_v40 = vrot.slane %v3144_v37, 1  ;;  %vm8713_vm2 = vmmov %vm8710_vm3 }
 0x8e3   : > { %v2857_v52 = vadd.f32 %v2849_v50, %v8689_v36 }
 0x8e4   : > { %v3146_v22 = vadd.f32 %v3145_v40, %v3144_v37 }
 0x8e5   : > { %v3119_v13 = vmul.f32 %v8690_v30, %v2857_v52  ;;  %v3279_v32 = vpack.c.bf16 %v2857_v52, %v2856_v49  ;;  %4174 = vst.msk [vmem:[%s7981_s16 + $0x38] sm:$0xff] %vm8691_vm10, %v2857_v52  ;;  %v5148_v49 = vld [vmem:[%s8290_s4 + $0x38] ss:$0 sm:$0xff]  ;;  %s4218_s16 = sshll.u32 %s324_s14, 4  ;;  %s4219_s16 = int_to_ptr.vmem [resolvable:$true] %s4218_s16 }
 0x8e6   : > { %v3220_v17 = vmul.f32 %v3219_v6, %v3146_v22  ;;  %v3268_v12 = vadd.f32 %v5148_v49, %v8708_v60 }
 0x8e7   : > { %v3148_v39 = vsel %vm8693_vm13, %v3119_v13, 0.0  ;;  %4621 = vmatmul.msk.bf16.gmra.mxu3 %vm8694_vm14, %v3279_v32  ;;  %4633 = vmatmul.msk.bf16.gmra.mxu0 %vm8695_vm15, %v3279_v32  ;;  %vm3388_vm13 = vcmp.ge.s32.totalorder %v3383_v24, %v3386_v63  ;;  %vm3394_vm14 = vcmp.lt.s32.totalorder %v3383_v24, %v3392_v0  ;;  %v5145_v32 = vld [vmem:[%s8290_s4 + $0x8] ss:$0 sm:$0xff] }
 0x8e8   : > { %v3149_v25 = vadd.f32 %v3148_v39, %v3147_v54  ;;  %v3895_v18 = vsel %vm8696_vm8, %v3220_v17, %v3894_v62  ;;  %v3384_v62 = vadd.s32 16, %v3382_v41  ;;  %vm8092_vm15 = vmand %vm3388_vm13, %vm3394_vm14  ;;  %vm3387_vm8 = vcmp.ge.s32.totalorder %v3382_v41, %v3386_v63  ;;  %v8714_v54 = vld [vmem:[#allocation32_spill] sm:$0xff] }
 0x8e9   : > { %vm8098_vm6 = vmand %vm3387_vm8, %vm3393_vm0  ;;  %v3413_v3 = vperm.slane %v3268_v12, 0  ;;  %v3410_v43 = vrot.slane %v3268_v12, 1  ;;  %v3411_v9 = vrot.slane %v3268_v12, 2  ;;  %v437_v39 = vadd.f32 %v5145_v32, %v8714_v54 }
 0x8ea   : > { %v3150_v33 = vrot.slane %v3149_v25, 4  ;;  %vm3389_vm1 = vcmp.ge.s32.totalorder %v3384_v62, %v3386_v63  ;;  %vm3395_vm10 = vcmp.lt.s32.totalorder %v3384_v62, %v3392_v0  ;;  %vm8718_vm14 = vcmask 523264  }
 0x8eb   : > { %vm8086_vm12 = vmand %vm3389_vm1, %vm3395_vm10  ;;  %v3414_v56 = vperm.slane %v3410_v43, 0  ;;  %v3415_v13 = vperm.slane %v3411_v9, 0  ;;  %5444 = vtanh.f32 %v437_v39  ;;  %vm3542_vm0 = vcmp.eq.s32.totalorder %v8720_v5, 1 }
 0x8ec   : > { %v3151_v16 = vadd.f32 %v3150_v33, %v3149_v25  ;;  %4639 = vmatpush.msk.msra.mxu3 %vm8086_vm12, %v5609_v2  ;;  %vm8715_vm1 = vmmov %vm8713_vm2  ;;  %v3412_v33 = vrot.slane %v3268_v12, 3 }
 0x8ed   : > { %vm8716_vm10 = vmmov %vm8715_vm1 }
 0x8ee   : > { %v3152_v23 = vrot.slane %v3151_v16, 2  ;;  %4640 = vmatpush.msk.msra.mxu3 %vm8092_vm15, %v5609_v2  ;;  %vm8717_vm13 = vmmov %vm8715_vm1 }
 0x8ef   : > { %vm8719_vm8 = vmmov %vm8715_vm1 }
 0x8f0   : > { %v3153_v21 = vadd.f32 %v3152_v23, %v3151_v16  ;;  %4641 = vmatpush.msk.msra.mxu3 %vm8098_vm6, %v5609_v2  ;;  %v3416_v16 = vperm.slane %v3412_v33, 0 }
 0x8f1   : > { %v5445_v11 = vpop.eup %5444 }
 0x8f2   : > { %v3154_v10 = vrot.slane %v3153_v21, 1 }
 0x8f4   : > { %v3155_v14 = vadd.f32 %v3154_v10, %v3153_v21 }
 0x8f6   : > { %v3235_v44 = vmul.f32 %v3234_v8, %v3155_v14  ;;  %v4132_v8 = vsel %vm8718_vm14, %v7810_v7, %v4018_v53 }
 0x8f8   : > { %v3896_v27 = vsel %vm8697_vm4, %v3235_v44, %v3895_v18  ;;  %vm8711_vm4 = vmmov %vm8710_vm3 }
 0x8f9   : > { %3897 = vrot.lane.b32.xlu0 %v3896_v27, %s5603_s20  ;;  %s4220_s20 = sshll.u32 %s4216_s29, 4  ;;  %s5523_s29 = scalar_lea.hbm %s8293_s7, 8  ;;  %s4221_s20 = int_to_ptr.hbm [resolvable:$true] %s4220_s20 }
 0x8fa   : > { %s5517_s22 = sshra.s32 %s4221_s20, 4  ;;  %s5518_s22 = int_to_ptr.hbm [resolvable:$true] %s5517_s22 }
 0x8fb   : > { %s5519_s8 = scalar_lea.hbm %s5518_s22, 4  ;;  %p5524_p1 = scmp.lt.s32.totalorder %s5518_s22, %s8293_s7 }
 0x8fc   : > { %p5520_p12 = scmp.ne.s32.totalorder %s5518_s22, %s5519_s8  ;;  %p5525_p2 = scmp.lt.s32.totalorder %s5523_s29, %s5519_s8 }
 0x8fe   : > { %p5521_p13 = pnand %p5520_p12, %p5692_p5  ;;  %p5526_p3 = por %p5525_p2, %p5524_p1 }
 0x900   : > { %p5522_p0 = pneg %p5521_p13 }
 0x901   : > { %4081 = vrot.lane.b32.xlu0 %v3960_v45, %s5607_s21 }
 0x902   : > { %p5527_p4 = pnand %p5526_p3, %p5522_p0 }
 0x93a   : > { %v3314_v31 = vpop.f32.mrf.mxu3 }
 0x93b   : > { %v3315_v28 = vadd.f32 %v5152_v42, %v3314_v31 }
 0x93d   : > { %v3421_v59 = vmul.f32 %v3413_v3, %v3315_v28 }
 0x93f   : > { %4642 = vmatmul.msk.f32.vlgmr.msra.gmra.mxu3 %vm8709_vm7, %v3421_v59  ;;  %vm3543_vm7 = vcmp.eq.s32.totalorder %v8721_v4, 1 }
 0x942   : > { %v3316_v61 = vpop.f32.mrf.mxu3 }
 0x943   : > { %v3317_v37 = vadd.f32 %v5152_v42, %v3316_v61 }
 0x945   : > { %v3422_v57 = vmul.f32 %v3413_v3, %v3317_v37  ;;  %v8722_v3 = vld [vmem:[#allocation23_spill] sm:$0xff] }
 0x947   : > { %4643 = vmatmul.msk.f32.gmra.mxu3 %vm8710_vm3, %v3422_v57  ;;  %vm3558_vm3 = vcmask 31744  }
 0x94a   : > { %v3319_v50 = vpop.f32.mrf.mxu3 }
 0x94b   : > { %v3320_v40 = vadd.f32 %v5152_v42, %v3319_v50  ;;  %v8723_v50 = vld [vmem:[#allocation26_spill] sm:$0xff] }
 0x94d   : > { %v3423_v15 = vmul.f32 %v3414_v56, %v3320_v40  ;;  %v8724_v40 = vmov 0.0  }
 0x94e   : > { %v4636_v32 = vsel %vm8086_vm12, 1.0, %v8724_v40  ;;  %v4635_v39 = vsel %vm8092_vm15, 1.0, %v8724_v40 }
 0x94f   : > { %4644 = vmatmul.msk.f32.gmra.mxu3 %vm8711_vm4, %v3423_v15  ;;  %vm3544_vm4 = vcmp.eq.s32.totalorder %v8722_v3, 1 }
 0x952   : > { %v3321_v36 = vpop.f32.mrf.mxu3 }
 0x953   : > { %v3322_v52 = vadd.f32 %v5152_v42, %v3321_v36 }
 0x955   : > { %v3424_v6 = vmul.f32 %v3414_v56, %v3322_v52  ;;  %v4637_v56 = vsel %vm8080_vm9, 1.0, %v8724_v40 }
 0x956   : > { %4650 = vmatpush.xpose.msk.msra.mxu0 %vm3558_vm3, %v4637_v56 }
 0x957   : > { %4645 = vmatmul.msk.f32.gmra.mxu3 %vm8712_vm11, %v3424_v6  ;;  %vm3545_vm11 = vcmp.eq.s32.totalorder %v8723_v50, 1  ;;  %v8727_v50 = vld [vmem:[#allocation22_spill] sm:$0xff] }
 0x958   : > { %vm3548_vm15 = vcmp.eq.s32.totalorder %v8727_v50, 1 }
 0x95a   : > { %v3324_v22 = vpop.f32.mrf.mxu3  ;;  %4651 = vmatpush.xpose.msk.msra.mxu0 %vm3558_vm3, %v4636_v32 }
 0x95b   : > { %v3325_v30 = vadd.f32 %v5152_v42, %v3324_v22 }
 0x95d   : > { %v3425_v17 = vmul.f32 %v3415_v13, %v3325_v30 }
 0x95e   : > { %4652 = vmatpush.xpose.msk.msra.mxu0 %vm3558_vm3, %v4635_v39 }
 0x95f   : > { %4646 = vmatmul.msk.f32.gmra.mxu3 %vm8713_vm2, %v3425_v17 }
 0x962   : > { %v3326_v19 = vpop.f32.mrf.mxu3 }
 0x963   : > { %v3327_v25 = vadd.f32 %v5152_v42, %v3326_v19 }
 0x965   : > { %v3426_v18 = vmul.f32 %v3415_v13, %v3327_v25 }
 0x967   : > { %4647 = vmatmul.msk.f32.gmra.mxu3 %vm8715_vm1, %v3426_v18 }
 0x96a   : > { %v3329_v35 = vpop.f32.mrf.mxu3 }
 0x96b   : > { %v3330_v51 = vadd.f32 %v5152_v42, %v3329_v35  ;;  %v3898_v23 = vpop.permute.xlu0 %3897 }
 0x96c   : > { %v8122_v20 = vsel %vm8716_vm10, %v5445_v11, %v3898_v23  ;;  %v4634_v11 = vsel %vm8098_vm6, 1.0, %v8724_v40 }
 0x96d   : > { %v3427_v21 = vmul.f32 %v3416_v16, %v3330_v51  ;;  %4653 = vmatpush.xpose.msk.msra.mxu0 %vm3558_vm3, %v4634_v11 }
 0x96f   : > { %4648 = vmatmul.msk.f32.gmra.mxu3 %vm8717_vm13, %v3427_v21 }
 0x972   : > { %v3331_v10 = vpop.f32.mrf.mxu3 }
 0x973   : > { %v3332_v14 = vadd.f32 %v5152_v42, %v3331_v10  ;;  %v4082_v44 = vpop.permute.xlu0 %4081 }
 0x974   : > { %v4148_v27 = vsel %vm3916_vm5, %v4132_v8, %v4082_v44 }
 0x975   : > { %v3428_v45 = vmul.f32 %v3416_v16, %v3332_v14  ;;  %4164 = vst [vmem:[%s7845_s9 + $0x68] sm:$0xff] %v4148_v27  ;;  %v8725_v16 = vld [vmem:[#allocation29_spill] sm:$0xff] }
 0x976   : > { %vm3546_vm9 = vcmp.eq.s32.totalorder %v8725_v16, 1  ;;  %v8726_v14 = vld [vmem:[#allocation25_spill] sm:$0xff] }
 0x977   : > { %4649 = vmatmul.msk.f32.gmra.mxu3 %vm8719_vm8, %v3428_v45  ;;  %vm3547_vm12 = vcmp.eq.s32.totalorder %v8726_v14, 1 }
 0x9c2   : > { %v3470_v47 = vpop.f32.mrf.mxu3 }
 0x9c3   : > { %v3494_v41 = vmul.f32 0.35355338, %v3470_v47 }
 0x9c5   : > { %v3550_v63 = vsel %vm3542_vm0, %v3494_v41, -1e+30 }
 0x9c6   : > { %v3559_v7 = vsel %vm3558_vm3, %v3550_v63, -inf }
 0x9ca   : > { %v3473_v34 = vpop.f32.mrf.mxu3 }
 0x9cb   : > { %v3495_v0 = vmul.f32 0.35355338, %v3473_v34 }
 0x9cd   : > { %v3551_v62 = vsel %vm3543_vm7, %v3495_v0, -1e+30 }
 0x9ce   : > { %v3560_v2 = vsel %vm3558_vm3, %v3551_v62, -inf }
 0x9cf   : > { %v3561_v24 = vmax.f32 %v3559_v7, %v3560_v2 }
 0x9d1   : > { %v3562_v49 = vrot.slane %v3561_v24, 4 }
 0x9d2   : > { %v3476_v60 = vpop.f32.mrf.mxu3 }
 0x9d3   : > { %v3563_v12 = vmax.f32 %v3561_v24, %v3562_v49  ;;  %v3496_v28 = vmul.f32 0.35355338, %v3476_v60 }
 0x9d5   : > { %v3564_v42 = vrot.slane %v3563_v12, 2  ;;  %v3552_v57 = vsel %vm3544_vm4, %v3496_v28, -1e+30 }
 0x9d6   : > { %v3568_v6 = vsel %vm3558_vm3, %v3552_v57, -inf }
 0x9d7   : > { %v3565_v31 = vmax.f32 %v3563_v12, %v3564_v42 }
 0x9d9   : > { %v3566_v59 = vrot.slane %v3565_v31, 1 }
 0x9da   : > { %v3479_v61 = vpop.f32.mrf.mxu3 }
 0x9db   : > { %v3567_v37 = vmax.f32 %v3565_v31, %v3566_v59  ;;  %v3497_v43 = vmul.f32 0.35355338, %v3479_v61 }
 0x9dd   : > { %v3595_v15 = vsub.f32 %v3550_v63, %v3567_v37  ;;  %v3596_v36 = vsub.f32 %v3551_v62, %v3567_v37  ;;  %v3553_v52 = vsel %vm3545_vm11, %v3497_v43, -1e+30 }
 0x9de   : > { %v3569_v9 = vsel %vm3558_vm3, %v3553_v52, -inf }
 0x9df   : > { %v3603_v22 = vmul.f32 1.442695, %v3595_v15  ;;  %v3605_v30 = vmul.f32 1.442695, %v3596_v36  ;;  %v3570_v13 = vmax.f32 %v3568_v6, %v3569_v9  ;;  %v8728_v15 = vld [vmem:[#allocation30_spill] sm:$0xff] }
 0x9e0   : > { %vm3549_vm6 = vcmp.eq.s32.totalorder %v8728_v15, 1 }
 0x9e1   : > { %5446 = vpow2.f32 %v3603_v22  ;;  %v3571_v17 = vrot.slane %v3570_v13, 4 }
 0x9e2   : > { %5448 = vpow2.f32 %v3605_v30  ;;  %v3482_v38 = vpop.f32.mrf.mxu3 }
 0x9e3   : > { %v3572_v54 = vmax.f32 %v3570_v13, %v3571_v17  ;;  %v3498_v33 = vmul.f32 0.35355338, %v3482_v38 }
 0x9e5   : > { %v3573_v19 = vrot.slane %v3572_v54, 2  ;;  %v3554_v10 = vsel %vm3546_vm9, %v3498_v33, -1e+30 }
 0x9e6   : > { %v3577_v41 = vsel %vm3558_vm3, %v3554_v10, -inf }
 0x9e7   : > { %v8150_v25 = vpop.eup %5446  ;;  %v3574_v18 = vmax.f32 %v3572_v54, %v3573_v19 }
 0x9e8   : > { %v8152_v46 = vpop.eup %5448  ;;  %v3619_v35 = vsel %vm3558_vm3, %v8150_v25, 0.0 }
 0x9e9   : > { %v3620_v29 = vsel %vm3558_vm3, %v8152_v46, 0.0  ;;  %v3575_v51 = vrot.slane %v3574_v18, 1 }
 0x9ea   : > { %v3621_v23 = vadd.f32 %v3620_v29, %v3619_v35  ;;  %v3485_v21 = vpop.f32.mrf.mxu3 }
 0x9eb   : > { %v3576_v53 = vmax.f32 %v3574_v18, %v3575_v51  ;;  %v3499_v8 = vmul.f32 0.35355338, %v3485_v21 }
 0x9ec   : > { %v3622_v44 = vrot.slane %v3621_v23, 4 }
 0x9ed   : > { %v3597_v27 = vsub.f32 %v3552_v57, %v3576_v53  ;;  %v3598_v45 = vsub.f32 %v3553_v52, %v3576_v53  ;;  %v3555_v55 = vsel %vm3547_vm12, %v3499_v8, -1e+30 }
 0x9ee   : > { %v3623_v47 = vadd.f32 %v3622_v44, %v3621_v23  ;;  %v3578_v5 = vsel %vm3558_vm3, %v3555_v55, -inf }
 0x9ef   : > { %v3607_v4 = vmul.f32 1.442695, %v3597_v27  ;;  %v3609_v34 = vmul.f32 1.442695, %v3598_v45  ;;  %v3579_v63 = vmax.f32 %v3577_v41, %v3578_v5 }
 0x9f0   : > { %v3624_v0 = vrot.slane %v3623_v47, 2 }
 0x9f1   : > { %5450 = vpow2.f32 %v3607_v4  ;;  %v3580_v62 = vrot.slane %v3579_v63, 4 }
 0x9f2   : > { %v3625_v7 = vadd.f32 %v3624_v0, %v3623_v47  ;;  %5452 = vpow2.f32 %v3609_v34  ;;  %v3488_v2 = vpop.f32.mrf.mxu3 }
 0x9f3   : > { %v3581_v24 = vmax.f32 %v3579_v63, %v3580_v62  ;;  %v3500_v3 = vmul.f32 0.35355338, %v3488_v2 }
 0x9f4   : > { %v3626_v49 = vrot.slane %v3625_v7, 1 }
 0x9f5   : > { %v3582_v60 = vrot.slane %v3581_v24, 2  ;;  %v3556_v52 = vsel %vm3548_vm15, %v3500_v3, -1e+30 }
 0x9f6   : > { %v3627_v12 = vadd.f32 %v3626_v49, %v3625_v7  ;;  %v3586_v39 = vsel %vm3558_vm3, %v3556_v52, -inf }
 0x9f7   : > { %v8166_v42 = vpop.eup %5450  ;;  %v3583_v31 = vmax.f32 %v3581_v24, %v3582_v60 }
 0x9f8   : > { %v8168_v28 = vpop.eup %5452  ;;  %5454 = vrcp.f32 %v3627_v12  ;;  %v3628_v59 = vsel %vm3558_vm3, %v8166_v42, 0.0  ;;  %v3666_v35 = vand.u32 2147483648, %v3627_v12  ;;  %v3664_v16 = vand.u32 2147483647, %v3627_v12 }
 0x9f9   : > { %v3629_v61 = vsel %vm3558_vm3, %v8168_v28, 0.0  ;;  %v3584_v37 = vrot.slane %v3583_v31, 1  ;;  %vm3660_vm1 = vweird.f32 %v3627_v12 }
 0x9fa   : > { %v3630_v57 = vadd.f32 %v3629_v61, %v3628_v59  ;;  %v3491_v43 = vpop.f32.mrf.mxu3  ;;  %vm3665_vm13 = vcmp.eq.f32.partialorder %v3664_v16, 8.507059e+37 }
 0x9fb   : > { %v3585_v40 = vmax.f32 %v3583_v31, %v3584_v37  ;;  %v3501_v56 = vmul.f32 0.35355338, %v3491_v43 }
 0x9fc   : > { %v3631_v36 = vrot.slane %v3630_v57, 4 }
 0x9fd   : > { %v3599_v6 = vsub.f32 %v3554_v10, %v3585_v40  ;;  %v3600_v9 = vsub.f32 %v3555_v55, %v3585_v40  ;;  %v3557_v22 = vsel %vm3549_vm6, %v3501_v56, -1e+30  ;;  %v3667_v10 = vor.u32 1.1754944e-38, %v3666_v35 }
 0x9fe   : > { %v5455_v30 = vpop.eup %5454  ;;  %v3632_v13 = vadd.f32 %v3631_v36, %v3630_v57  ;;  %v3587_v32 = vsel %vm3558_vm3, %v3557_v22, -inf }
 0x9ff   : > { %v3656_v17 = vmul.f32 %v5455_v30, %v3627_v12  ;;  %v3611_v38 = vmul.f32 1.442695, %v3599_v6  ;;  %v3613_v54 = vmul.f32 1.442695, %v3600_v9  ;;  %v3588_v18 = vmax.f32 %v3586_v39, %v3587_v32 }
 0xa00   : > { %v3633_v19 = vrot.slane %v3632_v13, 2  ;;  %vm3661_vm2 = vweird.f32 %v5455_v30 }
 0xa01   : > { %v3657_v33 = vsub.f32 1.0, %v3656_v17  ;;  %5456 = vpow2.f32 %v3611_v38  ;;  %v3589_v29 = vrot.slane %v3588_v18, 4  ;;  %vm3662_vm10 = vmor %vm3660_vm1, %vm3661_vm2 }
 0xa02   : > { %v3634_v11 = vadd.f32 %v3633_v19, %v3632_v13  ;;  %5458 = vpow2.f32 %v3613_v54 }
 0xa03   : > { %v3658_v51 = vmul.f32 %v5455_v30, %v3657_v33  ;;  %v3590_v21 = vmax.f32 %v3588_v18, %v3589_v29 }
 0xa04   : > { %v3635_v23 = vrot.slane %v3634_v11, 1 }
 0xa05   : > { %v3659_v53 = vadd.f32 %v5455_v30, %v3658_v51  ;;  %v3591_v14 = vrot.slane %v3590_v21, 2 }
 0xa06   : > { %v3636_v8 = vadd.f32 %v3635_v23, %v3634_v11 }
 0xa07   : > { %v8178_v44 = vpop.eup %5456  ;;  %v3663_v27 = vsel %vm3662_vm10, %v5455_v30, %v3659_v53  ;;  %v3592_v41 = vmax.f32 %v3590_v21, %v3591_v14  ;;  %vm8729_vm10 = vcmask 261120  }
 0xa08   : > { %v8180_v45 = vpop.eup %5458  ;;  %v3668_v55 = vsel %vm3665_vm13, %v3667_v10, %v3663_v27  ;;  %5460 = vrcp.f32 %v3636_v8  ;;  %v3637_v47 = vsel %vm3558_vm3, %v8178_v44, 0.0  ;;  %v3682_v37 = vand.u32 2147483648, %v3636_v8  ;;  %vm8730_vm13 = vmmov %vm8729_vm10 }
 0xa09   : > { %v3669_v5 = vmul.f32 %v8150_v25, %v3668_v55  ;;  %v3638_v4 = vsel %vm3558_vm3, %v8180_v45, 0.0  ;;  %v3670_v34 = vmul.f32 %v8152_v46, %v3668_v55  ;;  %v3593_v0 = vrot.slane %v3592_v41, 1 }
 0xa0a   : > { %v3639_v63 = vadd.f32 %v3638_v4, %v3637_v47  ;;  %v3680_v57 = vand.u32 2147483647, %v3636_v8  ;;  %vm3676_vm8 = vweird.f32 %v3636_v8  ;;  %v3683_v56 = vor.u32 1.1754944e-38, %v3682_v37 }
 0xa0b   : > { %4654 = vmatmul.msk.f32.vlgmr.msra.gmra.mxu0 %vm3558_vm3, %v3669_v5  ;;  %v3594_v7 = vmax.f32 %v3592_v41, %v3593_v0 }
 0xa0c   : > { %v3640_v62 = vrot.slane %v3639_v63, 4  ;;  %vm3681_vm7 = vcmp.eq.f32.partialorder %v3680_v57, 8.507059e+37 }
 0xa0d   : > { %v3601_v49 = vsub.f32 %v3556_v52, %v3594_v7  ;;  %v3602_v60 = vsub.f32 %v3557_v22, %v3594_v7 }
 0xa0e   : > { %v5461_v2 = vpop.eup %5460  ;;  %v3641_v24 = vadd.f32 %v3640_v62, %v3639_v63  ;;  %v3361_v63 = vpop.f32.mrf.mxu0 }
 0xa0f   : > { %v3672_v12 = vmul.f32 %v5461_v2, %v3636_v8  ;;  %v3615_v3 = vmul.f32 1.442695, %v3601_v49  ;;  %v3617_v59 = vmul.f32 1.442695, %v3602_v60  ;;  %vm3677_vm14 = vweird.f32 %v5461_v2 }
 0xa10   : > { %v3642_v31 = vrot.slane %v3641_v24, 2  ;;  %vm3678_vm0 = vmor %vm3676_vm8, %vm3677_vm14 }
 0xa11   : > { %v3673_v25 = vsub.f32 1.0, %v3672_v12  ;;  %5462 = vpow2.f32 %v3615_v3  ;;  %v5151_v3 = vld [vmem:[%s8290_s4 + $0x48] ss:$0 sm:$0xff] }
 0xa12   : > { %v3643_v61 = vadd.f32 %v3642_v31, %v3641_v24  ;;  %5464 = vpow2.f32 %v3617_v59  ;;  %v3362_v59 = vadd.f32 %v5151_v3, %v3361_v63 }
 0xa13   : > { %4655 = vmatmul.msk.f32.gmra.mxu0 %vm3558_vm3, %v3670_v34  ;;  %v3674_v46 = vmul.f32 %v5461_v2, %v3673_v25 }
 0xa14   : > { %v3644_v43 = vrot.slane %v3643_v61, 1 }
 0xa15   : > { %v3675_v50 = vadd.f32 %v5461_v2, %v3674_v46 }
 0xa16   : > { %v3645_v40 = vadd.f32 %v3644_v43, %v3643_v61  ;;  %v3363_v62 = vpop.f32.mrf.mxu0 }
 0xa17   : > { %v3679_v15 = vsel %vm3678_vm0, %v5461_v2, %v3675_v50  ;;  %v5463_v36 = vpop.eup %5462  ;;  %v3364_v25 = vadd.f32 %v5151_v3, %v3363_v62 }
 0xa18   : > { %5466 = vrcp.f32 %v3645_v40  ;;  %v3684_v52 = vsel %vm3681_vm7, %v3683_v56, %v3679_v15  ;;  %v5465_v6 = vpop.eup %5464  ;;  %v3646_v9 = vsel %vm3558_vm3, %v5463_v36, 0.0  ;;  %v3698_v33 = vand.u32 2147483648, %v3645_v40 }
 0xa19   : > { %v3685_v22 = vmul.f32 %v8166_v42, %v3684_v52  ;;  %v3686_v30 = vmul.f32 %v8168_v28, %v3684_v52  ;;  %v3647_v13 = vsel %vm3558_vm3, %v5465_v6, 0.0  ;;  %v3696_v42 = vand.u32 2147483647, %v3645_v40 }
 0xa1a   : > { %v3648_v32 = vadd.f32 %v3647_v13, %v3646_v9  ;;  %vm3692_vm11 = vweird.f32 %v3645_v40  ;;  %v3699_v51 = vor.u32 1.1754944e-38, %v3698_v33  ;;  %vm8735_vm7 = vcmask 1041409  }
 0xa1b   : > { %4656 = vmatmul.msk.f32.gmra.mxu0 %vm3558_vm3, %v3685_v22  ;;  %vm3697_vm12 = vcmp.eq.f32.partialorder %v3696_v42, 8.507059e+37 }
 0xa1c   : > { %v3649_v17 = vrot.slane %v3648_v32, 4 }
 0xa1e   : > { %v5467_v38 = vpop.eup %5466  ;;  %v3650_v54 = vadd.f32 %v3649_v17, %v3648_v32  ;;  %v3366_v7 = vpop.f32.mrf.mxu0 }
 0xa1f   : > { %v3688_v39 = vmul.f32 %v5467_v38, %v3645_v40  ;;  %vm3693_vm4 = vweird.f32 %v5467_v38 }
 0xa20   : > { %v3651_v19 = vrot.slane %v3650_v54, 2  ;;  %vm3694_vm9 = vmor %vm3692_vm11, %vm3693_vm4 }
 0xa21   : > { %v3689_v18 = vsub.f32 1.0, %v3688_v39 }
 0xa22   : > { %v3652_v35 = vadd.f32 %v3651_v19, %v3650_v54 }
 0xa23   : > { %4657 = vmatmul.msk.f32.gmra.mxu0 %vm3558_vm3, %v3686_v30  ;;  %v3690_v11 = vmul.f32 %v5467_v38, %v3689_v18 }
 0xa24   : > { %v3653_v29 = vrot.slane %v3652_v35, 1 }
 0xa25   : > { %v3691_v28 = vadd.f32 %v5467_v38, %v3690_v11 }
 0xa26   : > { %v3654_v16 = vadd.f32 %v3653_v29, %v3652_v35  ;;  %v3368_v2 = vpop.f32.mrf.mxu0 }
 0xa27   : > { %v3695_v23 = vsel %vm3694_vm9, %v5467_v38, %v3691_v28  ;;  %v3369_v52 = vadd.f32 %v5151_v3, %v3368_v2  ;;  %vm8738_vm9 = vcmask 1042434  }
 0xa28   : > { %v3700_v21 = vsel %vm3697_vm12, %v3699_v51, %v3695_v23  ;;  %5468 = vrcp.f32 %v3654_v16  ;;  %v3714_v55 = vand.u32 2147483648, %v3654_v16  ;;  %v3712_v41 = vand.u32 2147483647, %v3654_v16 }
 0xa29   : > { %v3701_v53 = vmul.f32 %v8178_v44, %v3700_v21  ;;  %v3702_v10 = vmul.f32 %v8180_v45, %v3700_v21  ;;  %vm3708_vm6 = vweird.f32 %v3654_v16  ;;  %vm8739_vm12 = vcmask 1043459  }
 0xa2a   : > { %v3715_v4 = vor.u32 1.1754944e-38, %v3714_v55  ;;  %vm3713_vm1 = vcmp.eq.f32.partialorder %v3712_v41, 8.507059e+37 }
 0xa2b   : > { %4658 = vmatmul.msk.f32.gmra.mxu0 %vm3558_vm3, %v3701_v53 }
 0xa2e   : > { %v5469_v8 = vpop.eup %5468  ;;  %v3371_v24 = vpop.f32.mrf.mxu0 }
 0xa2f   : > { %v3704_v14 = vmul.f32 %v5469_v8, %v3654_v16  ;;  %vm3709_vm15 = vweird.f32 %v5469_v8  ;;  %v3372_v42 = vadd.f32 %v5151_v3, %v3371_v24 }
 0xa30   : > { %vm3710_vm2 = vmor %vm3708_vm6, %vm3709_vm15  ;;  %vm8741_vm6 = vcmask 523264  }
 0xa31   : > { %v3705_v27 = vsub.f32 1.0, %v3704_v14 }
 0xa33   : > { %4659 = vmatmul.msk.f32.gmra.mxu0 %vm3558_vm3, %v3702_v10  ;;  %v3706_v47 = vmul.f32 %v5469_v8, %v3705_v27 }
 0xa35   : > { %v3707_v5 = vadd.f32 %v5469_v8, %v3706_v47 }
 0xa36   : > { %v3373_v49 = vpop.f32.mrf.mxu0 }
 0xa37   : > { %v3711_v34 = vsel %vm3710_vm2, %v5469_v8, %v3707_v5  ;;  %v3374_v28 = vadd.f32 %v5151_v3, %v3373_v49  ;;  %v4703_v8 = vld [vmem:[%s8289_s3 + $0xb8] sm:$0xff] }
 0xa38   : > { %v3716_v44 = vsel %vm3713_vm1, %v3715_v4, %v3711_v34  ;;  %3883 = vmatpush.bf16.msra.mxu3 %v4703_v8  ;;  %v4702_v34 = vld [vmem:[%s8289_s3 + $0xb0] sm:$0xff] }
 0xa39   : > { %v3717_v45 = vmul.f32 %v5463_v36, %v3716_v44  ;;  %v3718_v0 = vmul.f32 %v5465_v6, %v3716_v44  ;;  %v3367_v36 = vadd.f32 %v5151_v3, %v3366_v7 }
 0xa3b   : > { %4660 = vmatmul.msk.f32.gmra.mxu0 %vm3558_vm3, %v3717_v45 }
 0xa3c   : > { %3884 = vmatpush.bf16.msra.mxu3 %v4702_v34 }
 0xa3e   : > { %v3376_v60 = vpop.f32.mrf.mxu0 }
 0xa3f   : > { %v3377_v62 = vadd.f32 %v5151_v3, %v3376_v60 }
 0xa43   : > { %4661 = vmatmul.msk.f32.gmra.mxu0 %vm3558_vm3, %v3718_v0  ;;  %vm8731_vm3 = vmmov %vm8729_vm10 }
 0xa44   : > { %vm8732_vm14 = vmmov %vm8731_vm3 }
 0xa45   : > { %vm8733_vm8 = vmmov %vm8731_vm3 }
 0xa46   : > { %v3378_v12 = vpop.f32.mrf.mxu0  ;;  %vm8734_vm0 = vmmov %vm8731_vm3 }
 0xa47   : > { %v3379_v2 = vadd.f32 %v5151_v3, %v3378_v12  ;;  %vm8736_vm4 = vmmov %vm8734_vm0 }
 0xa48   : > { %vm8737_vm11 = vmmov %vm8734_vm0 }
 0xa49   : > { %vm8740_vm15 = vmmov %vm8734_vm0 }
 0xa88   : > { %v3772_v31 = vpop.f32.mrf.mxu0 }
 0xa89   : > { %v3796_v61 = vmul.f32 %v3772_v31, %v3362_v59 }
 0xa8b   : > { %v3804_v57 = vsel %vm8729_vm10, %v3796_v61, 0.0 }
 0xa90   : > { %v3775_v37 = vpop.f32.mrf.mxu0 }
 0xa91   : > { %v3797_v46 = vmul.f32 %v3775_v37, %v3364_v25 }
 0xa93   : > { %v3805_v43 = vsel %vm8730_vm13, %v3797_v46, 0.0 }
 0xa94   : > { %v3806_v50 = vadd.f32 %v3805_v43, %v3804_v57 }
 0xa96   : > { %v3807_v40 = vrot.slane %v3806_v50, 4 }
 0xa98   : > { %v3778_v56 = vpop.f32.mrf.mxu0  ;;  %v3808_v15 = vadd.f32 %v3807_v40, %v3806_v50 }
 0xa99   : > { %v3798_v6 = vmul.f32 %v3778_v56, %v3367_v36 }
 0xa9a   : > { %v3809_v9 = vrot.slane %v3808_v15, 2 }
 0xa9b   : > { %v3813_v13 = vsel %vm8731_vm3, %v3798_v6, 0.0 }
 0xa9c   : > { %v3810_v17 = vadd.f32 %v3809_v9, %v3808_v15  ;;  %v5153_v9 = vld [vmem:[%s8290_s4 + $0x50] ss:$0 sm:$0xff] }
 0xa9e   : > { %v3811_v39 = vrot.slane %v3810_v17, 1 }
 0xaa0   : > { %v3781_v22 = vpop.f32.mrf.mxu0  ;;  %v3812_v35 = vadd.f32 %v3811_v39, %v3810_v17 }
 0xaa1   : > { %v3799_v30 = vmul.f32 %v3781_v22, %v3369_v52 }
 0xaa2   : > { %v3845_v16 = vpack.c.bf16 %v3812_v35, %v3812_v35 }
 0xaa3   : > { %v3814_v32 = vsel %vm8732_vm14, %v3799_v30, 0.0 }
 0xaa4   : > { %v3815_v38 = vadd.f32 %v3814_v32, %v3813_v13  ;;  %v3854_v55 = vunpack.c.l.b16 %v3845_v16  ;;  %v3962_v32 = vsub.f32 %v7842_v58, %v7299_v1 }
 0xaa6   : > { %v3816_v54 = vrot.slane %v3815_v38, 4 }
 0xaa8   : > { %v3817_v19 = vadd.f32 %v3816_v54, %v3815_v38  ;;  %v3784_v18 = vpop.f32.mrf.mxu0  ;;  %v3915_v38 = vsel %vm8741_vm6, %v8122_v20, %v7963_v26 }
 0xaa9   : > { %v3800_v51 = vmul.f32 %v3784_v18, %v3372_v42 }
 0xaaa   : > { %v3818_v33 = vrot.slane %v3817_v19, 2 }
 0xaab   : > { %v3822_v14 = vsel %vm8733_vm8, %v3800_v51, 0.0 }
 0xaac   : > { %v3819_v11 = vadd.f32 %v3818_v33, %v3817_v19 }
 0xaae   : > { %v3820_v29 = vrot.slane %v3819_v11, 1 }
 0xab0   : > { %v3821_v23 = vadd.f32 %v3820_v29, %v3819_v11  ;;  %v3787_v21 = vpop.f32.mrf.mxu0 }
 0xab1   : > { %v3801_v53 = vmul.f32 %v3787_v21, %v3374_v28 }
 0xab2   : > { %v3846_v10 = vpack.c.bf16 %v3821_v23, %v3821_v23 }
 0xab3   : > { %v3823_v27 = vsel %vm8734_vm0, %v3801_v53, 0.0 }
 0xab4   : > { %v3855_v47 = vunpack.c.l.b16 %v3846_v10  ;;  %v3824_v41 = vadd.f32 %v3823_v27, %v3822_v14 }
 0xab6   : > { %v3858_v5 = vsel %vm8735_vm7, %v3855_v47, %v3854_v55  ;;  %v3825_v4 = vrot.slane %v3824_v41, 4 }
 0xab8   : > { %v3826_v44 = vadd.f32 %v3825_v4, %v3824_v41  ;;  %v3790_v63 = vpop.f32.mrf.mxu0 }
 0xab9   : > { %v3802_v49 = vmul.f32 %v3790_v63, %v3377_v62 }
 0xaba   : > { %v3827_v45 = vrot.slane %v3826_v44, 2 }
 0xabb   : > { %v3831_v37 = vsel %vm8736_vm4, %v3802_v49, 0.0 }
 0xabc   : > { %v3828_v0 = vadd.f32 %v3827_v45, %v3826_v44 }
 0xabe   : > { %v3829_v7 = vrot.slane %v3828_v0, 1 }
 0xac0   : > { %v3830_v24 = vadd.f32 %v3829_v7, %v3828_v0  ;;  %v3793_v31 = vpop.f32.mrf.mxu0 }
 0xac1   : > { %v3803_v25 = vmul.f32 %v3793_v31, %v3379_v2 }
 0xac2   : > { %v3847_v59 = vpack.c.bf16 %v3830_v24, %v3830_v24 }
 0xac3   : > { %v3832_v46 = vsel %vm8737_vm11, %v3803_v25, 0.0 }
 0xac4   : > { %v3856_v61 = vunpack.c.l.b16 %v3847_v59  ;;  %v3833_v57 = vadd.f32 %v3832_v46, %v3831_v37 }
 0xac6   : > { %v3859_v43 = vsel %vm8738_vm9, %v3856_v61, %v3858_v5  ;;  %v3834_v50 = vrot.slane %v3833_v57, 4 }
 0xac8   : > { %v3835_v40 = vadd.f32 %v3834_v50, %v3833_v57 }
 0xaca   : > { %v3836_v56 = vrot.slane %v3835_v40, 2 }
 0xacc   : > { %v3837_v60 = vadd.f32 %v3836_v56, %v3835_v40 }
 0xace   : > { %v3838_v12 = vrot.slane %v3837_v60, 1 }
 0xad0   : > { %v3839_v3 = vadd.f32 %v3838_v12, %v3837_v60 }
 0xad2   : > { %v3848_v15 = vpack.c.bf16 %v3839_v3, %v3839_v3 }
 0xad4   : > { %v3857_v36 = vunpack.c.l.b16 %v3848_v15 }
 0xad6   : > { %v3860_v52 = vsel %vm8739_vm12, %v3857_v36, %v3859_v43 }
 0xad7   : > { %v3861_v6 = vpack.c.b16 %v3860_v52, %v3860_v52 }
 0xad9   : > { %4670 = vmatmul.msk.bf16.vlgmr.msra.gmra.mxu3 %vm8740_vm15, %v3861_v6 }
 0xb5c   : > { %v3886_v22 = vpop.f32.mrf.mxu3 }
 0xb5d   : > { %v3887_v30 = vadd.f32 %v5153_v9, %v3886_v22 }
 0xb5f   : > { %3911 = vrot.lane.b32.xlu2 %v3887_v30, %s5607_s21 }
 0xb64   : > { %v3888_v13 = vpop.f32.mrf.mxu3 }
 0xb67   : > { %4085 = vrot.lane.b32.xlu2 %v3962_v32, %s5607_s21 }
 0xbb9   : > { %v3912_v17 = vpop.permute.xlu2 %3911 }
 0xbba   : > { %v3917_v1 = vsel %vm3916_vm5, %v3915_v38, %v3912_v17 }
 0xbbb   : > { %3918 = vst [vmem:[%s324_s14] sm:$0xf] %v3917_v1 }
 0xbbc   : > { %5530 = shalt.err (!%p5527_p4)
}
 0xbbd   : > { %4854 = dma.vmem_to_hbm [thread:$0]  (%p5692_p5), %s4219_s16, 64, %s4221_s20, %s4186_s15  }
 0xbbe   : > { %s4198_s14 = sshll.u32 %s7845_s9, 4  ;;  %s4200_s17 = sshll.u32 %s4197_s19, 4  ;;  %s4199_s14 = int_to_ptr.vmem [resolvable:$true] %s4198_s14  ;;  %s4201_s17 = int_to_ptr.hbm [resolvable:$true] %s4200_s17 }
 0xbbf   : > { %s4176_s0 = scalar_lea.sflag [#allocation3], %s7823_s23  ;;  %s5545_s1 = sshra.s32 %s4201_s17, 4  ;;  %s5546_s1 = int_to_ptr.hbm [resolvable:$true] %s5545_s1 }
 0xbc0   : > { %s5547_s21 = scalar_lea.hbm %s5546_s1, 128  ;;  %s5551_s16 = scalar_lea.hbm %s8291_s5, 256 }
 0xbc1   : > { %v4086_v58 = vpop.permute.xlu2 %4085  ;;  %p5548_p7 = scmp.ne.s32.totalorder %s5546_s1, %s5547_s21  ;;  %p5552_p10 = scmp.lt.s32.totalorder %s5546_s1, %s8291_s5 }
 0xbc2   : > { %v4150_v26 = vsel %vm3916_vm5, %v7955_v48, %v4086_v58  ;;  %p5553_p11 = scmp.lt.s32.totalorder %s5551_s16, %s5547_s21 }
 0xbc3   : > { %4166 = vst [vmem:[%s7845_s9 + $0x78] sm:$0xff] %v4150_v26  ;;  %p5549_p8 = pnand %p5548_p7, %p5692_p5 }
 0xbc4   : > { %p5554_p12 = por %p5553_p11, %p5552_p10 }
 0xbc5   : > { %p5550_p9 = pneg %p5549_p8 }
 0xbc7   : > { %p5555_p13 = pnand %p5554_p12, %p5550_p9 }
 0xbc9   : > { %5558 = shalt.err (!%p5555_p13)
}
 0xbca   : > { %s5610_s23 = smov 128   ;;  %s5611_s9 = smov 8  }
 0xbcb   : > { %4853 = dma.vmem_to_hbm [thread:$0]  (%p5692_p5), %s4199_s14, 2048, %s4201_s17, %s4176_s0, %s5610_s23, %s5610_s23, %s5611_s9  }
 0xbcc PF: > { %p4864_p0 = scmp.ge.s32.totalorder %s5597_s27, 2  ;;  %s4232_s15 = sand.u32 1, %s5585_s24  }
 0xbcd   : > { %s4233_s8 = scalar_lea.sflag [#allocation3], %s4232_s15 }
 0xbce   : > { %p4858_p1 = pnand %p4864_p0, %p5696_p6 }
 0xbd0   : > { %p4859_p2 = pneg %p4858_p1 }
 0xbd2   : > { %5576 = dma.done.wait (%p4859_p2), %s4233_s8, 2048  }
 0xbd3   : > { %5578 = vsyncadd (%p4859_p2), %s4233_s8, 4294965248  ;;  %s4251_s28 = scalar_lea.sflag [#allocation5], %s4232_s15 }
 0xbd4   : > { %5580 = dma.done.wait (%p4859_p2), %s4251_s28, 64  }
 0xbd5   : > { %5582 = vsyncadd (%p4859_p2), %s4251_s28, 4294967232  ;;  %p21_p5 = scmp.ge.s32.totalorder %s5679_s30, 4   ;;  %s8742_s24 = smov %s5589_s25 }
 0xbd6   : > { %s8743_s25 = smov %s5593_s26  ;;  %s8744_s26 = smov %s5690_s10 }
 0xbd7   : > { %s8745_s27 = smov %s5679_s30  ;;  %23 = sbr.rel (!%p21_p5) target bundleno = 8 (0x8), region = 110 }
 0xbdc   :  { %4257 = vsyncpa [#allocation3], 1 }
 0xbdd   :  { %4259 = vsyncpa [#allocation3 + $0x1], 1 }
 0xbde   :  { %4260 = vsyncpa [#allocation5], 1 }
 0xbdf   :  { %4262 = vsyncpa [#allocation5 + $0x1], 1 }

</bundles_post_ra>
